<compile_context>
chip_gen: v6e
topology: v6e:2x2x1
jax: 0.10.0
libtpu: 0.0.40
codegen_flags: <defaults>
</compile_context>

<pallas_src>
import functools
import math

import jax
import jax.numpy as jnp
from jax.experimental import pallas as pl
from jax.experimental.pallas import tpu as pltpu

# ----------------------------- config ---------------------------------------
PATCH = 16
HIDDEN = 64
HEADS = 4
HEAD_DIM = HIDDEN // HEADS
MLP_DIM = 128
LAYERS = 2
EPS = 1e-6


# ----------------------------- kernel ---------------------------------------
def _layernorm(x, g, b):
    # x: (R, D) f32, g/b: (1, D) f32
    mu = jnp.mean(x, axis=-1, keepdims=True)
    xc = x - mu
    var = jnp.mean(xc * xc, axis=-1, keepdims=True)
    return xc * jax.lax.rsqrt(var + EPS) * g + b


def _vit_fused_kernel(
    patches_ref,                       # (T, C*p*p)  f32   T = n_imgs * seq_pad
    tok_bias_ref,                      # (T, D)      f32   cls/pos/conv-bias fold
    attn_bias_ref,                     # (T, T)      f32   0 / -1e30 block-diag mask
    conv_w_ref,                        # (C*p*p, D)  bf16
    ln1_g_ref, ln1_b_ref,              # (L, 1, D)   f32
    wq_ref, wk_ref, wv_ref,            # (L, H, D, Hd) bf16  per-head, lane-aligned
    bq_ref, bk_ref, bv_ref,            # (L, H, 1, Hd) f32
    wo_ref,                            # (L, H, Hd, D) bf16  per-head out-proj slabs
    bo_ref,                            # (L, 1, D)   f32
    ln2_g_ref, ln2_b_ref,              # (L, 1, D)   f32
    wfc1_ref, bfc1_ref,                # (L, D, M) bf16, (L, 1, M) f32
    wfc2_ref, bfc2_ref,                # (L, M, D) bf16, (L, 1, D) f32
    lnf_g_ref, lnf_b_ref,              # (1, D)      f32
    out_ref,                           # (n_imgs, 1, D) f32  class-token embeddings
    *, seq_pad, n_imgs,
):
    f32 = jnp.float32
    bf16 = jnp.bfloat16

    # --- patch projection (Conv2d k=s=patch == matmul), bf16 operands / f32 acc.
    #     tok_bias already contains: cls token (+pos[0]) on row 0 of every image,
    #     conv bias + pos on patch rows, conv bias on pad rows.  Pad rows stay
    #     bounded garbage and are masked out of attention; only class rows are read
    #     at the end.  Everything register-resident, no scratch round trip.
    x = jnp.dot(patches_ref[...].astype(bf16), conv_w_ref[...],
                preferred_element_type=f32) + tok_bias_ref[...]        # (T, D) f32

    attn_bias = attn_bias_ref[...]                                     # (T, T) f32
    scale = 1.0 / math.sqrt(HEAD_DIM)
    contract_last = (((1,), (1,)), ((), ()))     # q . k^T without transposing k
    n_layers = ln1_g_ref.shape[0]

    for l in range(n_layers):                    # static unroll (LAYERS=2)
        # ---- self-attention block (pre-LN), per-head weights --------------------
        h = _layernorm(x, ln1_g_ref[l], ln1_b_ref[l]).astype(bf16)
        proj = None
        for hd in range(HEADS):
            q = jnp.dot(h, wq_ref[l, hd], preferred_element_type=f32) + bq_ref[l, hd]
            k = jnp.dot(h, wk_ref[l, hd], preferred_element_type=f32) + bk_ref[l, hd]
            v = jnp.dot(h, wv_ref[l, hd], preferred_element_type=f32) + bv_ref[l, hd]
            # block-diagonal attention over the folded batch (pad keys masked out)
            s = jax.lax.dot_general(q, k, contract_last,
                                    preferred_element_type=f32) * scale + attn_bias
            s = s - jnp.max(s, axis=-1, keepdims=True)
            e = jnp.exp(s)
            p = e * pl.reciprocal(jnp.sum(e, axis=-1, keepdims=True), approx=True)
            o = jnp.dot(p, v, preferred_element_type=f32)              # (T, Hd)
            # out-projection accumulated per head: no lane concat of head outputs
            part = jnp.dot(o.astype(bf16), wo_ref[l, hd],
                           preferred_element_type=f32)                 # (T, D)
            proj = part if proj is None else proj + part
        x = x + proj + bo_ref[l]                 # residual fused

        # ---- MLP block (fc1 -> GELU -> fc2) -------------------------------------
        h2 = _layernorm(x, ln2_g_ref[l], ln2_b_ref[l]).astype(bf16)
        m = jnp.dot(h2, wfc1_ref[l], preferred_element_type=f32) + bfc1_ref[l]
        m = jax.nn.gelu(m, approximate=True)     # tanh GELU -> EUP (see header note)
        m = jnp.dot(m.astype(bf16), wfc2_ref[l],
                    preferred_element_type=f32) + bfc2_ref[l]
        x = x + m                                # residual fused

    # ---- final LayerNorm on the class rows only (rows b*seq_pad, tile-aligned) ---
    cls_rows = jnp.concatenate(
        [x[b * seq_pad:b * seq_pad + 1, :] for b in range(n_imgs)], axis=0)
    out_ref[:, 0, :] = _layernorm(cls_rows, lnf_g_ref[...], lnf_b_ref[...])


# ----------------------------- wrapper ---------------------------------------
def vit_branch_forward(x, params, pos_emb, images_per_step=None, core_parallel=False):
    """x: (N, C, H, W) float32, NCHW like PyTorch.  Returns (N, HIDDEN).

    images_per_step: images folded into one grid step (default: whole batch — best
      for the serial-grid v5e/v6e).  On v7x with larger batches, set it to N//2 and
      pass core_parallel=True so the batch-tile axis is sharded across both TCs.
    """
    N, C, H, W = x.shape
    p = PATCH
    nh, nw = H // p, W // p
    n_patches = nh * nw
    S = n_patches + 1
    S_pad = ((S + 7) // 8) * 8          # per-image rows padded to a sublane tile
    cpp = C * p * p
    D = HIDDEN

    BT = N if images_per_step is None else int(images_per_step)
    assert N % BT == 0, "batch must be divisible by images_per_step"
    T = BT * S_pad

    # ---- layout plumbing / parameter folding (cold path, tiny arrays) ----------
    # non-overlapping patch extraction in torch Conv2d (c, i, j) flatten order,
    # one padded image block of S_pad rows per image (row 0 = cls slot, then patches)
    patches = (x.reshape(N, C, nh, p, nw, p)
                 .transpose(0, 2, 4, 1, 3, 5)
                 .reshape(N, n_patches, cpp))
    patches_pad = (jnp.zeros((N, S_pad, cpp), jnp.float32)
                     .at[:, 1:1 + n_patches, :].set(patches)
                     .reshape(N * S_pad, cpp))

    pos = pos_emb.reshape(S, D)
    pos_pad = jnp.zeros((S_pad, D), jnp.float32).at[:S, :].set(pos)
    pos_full = jnp.tile(pos_pad, (BT, 1))                        # (T, D)

    rows = jnp.arange(T)
    cls_mask = ((rows % S_pad) == 0).astype(jnp.float32).reshape(T, 1)
    # per-row additive bias: cls rows -> class_token + pos[0];
    # patch rows -> conv_bias + pos[row]; pad rows -> conv_bias (bounded, masked out)
    tok_bias = (cls_mask * params["class_token"]
                + (1.0 - cls_mask) * params["conv_b"]
                + pos_full)                                       # (T, D) f32

    # block-diagonal attention mask: query attends only the real tokens of its image
    img_id = rows // S_pad
    real_key = (rows % S_pad) < S
    allowed = (img_id[:, None] == img_id[None, :]) & real_key[None, :]
    attn_bias = jnp.where(allowed, 0.0, -1e30).astype(jnp.float32)   # (T, T)

    def fixed(a):   # full-array block, resident across grid steps
        return pl.BlockSpec(a.shape, lambda g, _n=a.ndim: (0,) * _n)

    kernel = functools.partial(_vit_fused_kernel, seq_pad=S_pad, n_imgs=BT)

    in_arrays = [
        patches_pad, tok_bias, attn_bias,
        params["conv_w"],
        params["ln1_g"], params["ln1_b"],
        params["w_q"], params["w_k"], params["w_v"],
        params["b_q"], params["b_k"], params["b_v"],
        params["w_o"], params["b_o"],
        params["ln2_g"], params["ln2_b"],
        params["w_fc1"], params["b_fc1"], params["w_fc2"], params["b_fc2"],
        params["lnf_g"], params["lnf_b"],
    ]
    in_specs = ([pl.BlockSpec((T, cpp), lambda g: (g, 0))]
                + [fixed(a) for a in in_arrays[1:]])

    sem = (pltpu.CORE_PARALLEL,) if core_parallel else ("arbitrary",)

    out = pl.pallas_call(
        kernel,
        out_shape=jax.ShapeDtypeStruct((N, 1, D), jnp.float32),
        grid=(N // BT,),                                   # batch-tile loop (1 step here)
        in_specs=in_specs,
        out_specs=pl.BlockSpec((BT, 1, D), lambda g: (g, 0, 0)),
        compiler_params=pltpu.CompilerParams(dimension_semantics=sem),
    )(*in_arrays)
    return out.reshape(N, D)


# ----------------------------- parameters ------------------------------------
def init_params(key, c_in=3):
    """Random init in torch layouts, then pre-transposed / per-head-split / stacked
    ONCE so the forward pass never pays per-call transposes or lane extracts."""
    std = 0.02
    keys = iter(jax.random.split(key, 3 + 8 * LAYERS))

    def rnd(shape):
        return std * jax.random.normal(next(keys), shape, jnp.float32)

    conv_w = rnd((HIDDEN, c_in, PATCH, PATCH))   # torch Conv2d weight (D, C, p, p)
    conv_b = rnd((HIDDEN,))
    cls_tok = rnd((1, 1, HIDDEN))

    stacks = {k: [] for k in ("w_q", "w_k", "w_v", "b_q", "b_k", "b_v",
                              "w_o", "b_o", "w_fc1", "b_fc1", "w_fc2", "b_fc2")}

    def head_split_w(w):          # torch (D_out=D, D_in=D) -> (HEADS, D_in, HEAD_DIM)
        return w.reshape(HEADS, HEAD_DIM, HIDDEN).transpose(0, 2, 1)

    def head_split_b(b):          # (D,) -> (HEADS, 1, HEAD_DIM)
        return b.reshape(HEADS, 1, HEAD_DIM)

    for _ in range(LAYERS):
        in_proj_w = rnd((3 * HIDDEN, HIDDEN))    # torch (out, in)
        in_proj_b = rnd((3 * HIDDEN,))
        out_proj_w = rnd((HIDDEN, HIDDEN))
        out_proj_b = rnd((HIDDEN,))
        fc1_w = rnd((MLP_DIM, HIDDEN))
        fc1_b = rnd((MLP_DIM,))
        fc2_w = rnd((HIDDEN, MLP_DIM))
        fc2_b = rnd((HIDDEN,))

        stacks["w_q"].append(head_split_w(in_proj_w[:HIDDEN]))
        stacks["w_k"].append(head_split_w(in_proj_w[HIDDEN:2 * HIDDEN]))
        stacks["w_v"].append(head_split_w(in_proj_w[2 * HIDDEN:]))
        stacks["b_q"].append(head_split_b(in_proj_b[:HIDDEN]))
        stacks["b_k"].append(head_split_b(in_proj_b[HIDDEN:2 * HIDDEN]))
        stacks["b_v"].append(head_split_b(in_proj_b[2 * HIDDEN:]))
        # out = concat_h(attn_h) @ W_out.T  ==  sum_h attn_h @ W_out.T[h*Hd:(h+1)*Hd]
        stacks["w_o"].append(out_proj_w.T.reshape(HEADS, HEAD_DIM, HIDDEN))
        stacks["b_o"].append(out_proj_b.reshape(1, HIDDEN))
        stacks["w_fc1"].append(fc1_w.T)          # (D, M)
        stacks["b_fc1"].append(fc1_b.reshape(1, MLP_DIM))
        stacks["w_fc2"].append(fc2_w.T)          # (M, D)
        stacks["b_fc2"].append(fc2_b.reshape(1, HIDDEN))

    params = {
        "conv_w": conv_w.reshape(HIDDEN, c_in * PATCH * PATCH).T.astype(jnp.bfloat16),
        "conv_b": conv_b.reshape(1, HIDDEN),
        "class_token": cls_tok.reshape(1, HIDDEN),
        "ln1_g": jnp.ones((LAYERS, 1, HIDDEN), jnp.float32),
        "ln1_b": jnp.zeros((LAYERS, 1, HIDDEN), jnp.float32),
        "ln2_g": jnp.ones((LAYERS, 1, HIDDEN), jnp.float32),
        "ln2_b": jnp.zeros((LAYERS, 1, HIDDEN), jnp.float32),
        "lnf_g": jnp.ones((1, HIDDEN), jnp.float32),
        "lnf_b": jnp.zeros((1, HIDDEN), jnp.float32),
    }
    weight_keys = {"w_q", "w_k", "w_v", "w_o", "w_fc1", "w_fc2"}
    for k, v in stacks.items():
        arr = jnp.stack(v, axis=0)
        params[k] = arr.astype(jnp.bfloat16) if k in weight_keys else arr
    return params


def init_pos_embedding(key, seq_len):
    return 0.02 * jax.random.normal(key, (1, seq_len, HIDDEN), jnp.float32)


# ----------------------------- main -------------------------------------------
if __name__ == "__main__":
    key = jax.random.PRNGKey(0)
    k_x, k_p, k_pos = jax.random.split(key, 3)

    B, C, Hh, Ww = 2, 3, 32, 32
    x = jax.random.normal(k_x, (B, C, Hh, Ww), jnp.float32)

    seq_len = (Hh // PATCH) * (Ww // PATCH) + 1
    params = init_params(k_p, c_in=C)
    pos_emb = init_pos_embedding(k_pos, seq_len)

    fwd = jax.jit(vit_branch_forward,
                  static_argnames=("images_per_step", "core_parallel"))
    out = fwd(x, params, pos_emb)
    out = jax.block_until_ready(out)
    assert out.shape == (B, HIDDEN), out.shape
    assert bool(jnp.all(jnp.isfinite(out)))
    print("KERNEL_OK")
</pallas_src>

<mosaic_0001>
module attributes {stable_mosaic.version = 11 : i64} {
  func.func @_vit_fused_kernel(%arg0: i32, %arg1: memref<16x768xf32, #tpu.memory_space<vmem>>, %arg2: memref<16x64xf32, #tpu.memory_space<vmem>>, %arg3: memref<16x16xf32, #tpu.memory_space<vmem>>, %arg4: memref<768x64xbf16, #tpu.memory_space<vmem>>, %arg5: memref<2x1x64xf32, #tpu.memory_space<vmem>>, %arg6: memref<2x1x64xf32, #tpu.memory_space<vmem>>, %arg7: memref<2x4x64x16xbf16, #tpu.memory_space<vmem>>, %arg8: memref<2x4x64x16xbf16, #tpu.memory_space<vmem>>, %arg9: memref<2x4x64x16xbf16, #tpu.memory_space<vmem>>, %arg10: memref<2x4x1x16xf32, #tpu.memory_space<vmem>>, %arg11: memref<2x4x1x16xf32, #tpu.memory_space<vmem>>, %arg12: memref<2x4x1x16xf32, #tpu.memory_space<vmem>>, %arg13: memref<2x4x16x64xbf16, #tpu.memory_space<vmem>>, %arg14: memref<2x1x64xf32, #tpu.memory_space<vmem>>, %arg15: memref<2x1x64xf32, #tpu.memory_space<vmem>>, %arg16: memref<2x1x64xf32, #tpu.memory_space<vmem>>, %arg17: memref<2x64x128xbf16, #tpu.memory_space<vmem>>, %arg18: memref<2x1x128xf32, #tpu.memory_space<vmem>>, %arg19: memref<2x128x64xbf16, #tpu.memory_space<vmem>>, %arg20: memref<2x1x64xf32, #tpu.memory_space<vmem>>, %arg21: memref<1x64xf32, #tpu.memory_space<vmem>>, %arg22: memref<1x64xf32, #tpu.memory_space<vmem>>, %arg23: memref<2x1x64xf32, #tpu.memory_space<vmem>>) attributes {dimension_semantics = [#tpu.dimension_semantics<arbitrary>], iteration_bounds = array<i64: 1>, scalar_prefetch = 0 : i64, scratch_operands = 0 : i64, tpu.core_type = #tpu.core_type<tc>, window_params = [{transform_indices = @transform_0, window_bounds = array<i64: 16, 768>}, {pipeline_mode = #tpu.pipeline_mode<synchronous>, transform_indices = @transform_1, window_bounds = array<i64: 16, 64>}, {pipeline_mode = #tpu.pipeline_mode<synchronous>, transform_indices = @transform_2, window_bounds = array<i64: 16, 16>}, {pipeline_mode = #tpu.pipeline_mode<synchronous>, transform_indices = @transform_3, window_bounds = array<i64: 768, 64>}, {pipeline_mode = #tpu.pipeline_mode<synchronous>, transform_indices = @transform_4, window_bounds = array<i64: 2, 1, 64>}, {pipeline_mode = #tpu.pipeline_mode<synchronous>, transform_indices = @transform_5, window_bounds = array<i64: 2, 1, 64>}, {pipeline_mode = #tpu.pipeline_mode<synchronous>, transform_indices = @transform_6, window_bounds = array<i64: 2, 4, 64, 16>}, {pipeline_mode = #tpu.pipeline_mode<synchronous>, transform_indices = @transform_7, window_bounds = array<i64: 2, 4, 64, 16>}, {pipeline_mode = #tpu.pipeline_mode<synchronous>, transform_indices = @transform_8, window_bounds = array<i64: 2, 4, 64, 16>}, {pipeline_mode = #tpu.pipeline_mode<synchronous>, transform_indices = @transform_9, window_bounds = array<i64: 2, 4, 1, 16>}, {pipeline_mode = #tpu.pipeline_mode<synchronous>, transform_indices = @transform_10, window_bounds = array<i64: 2, 4, 1, 16>}, {pipeline_mode = #tpu.pipeline_mode<synchronous>, transform_indices = @transform_11, window_bounds = array<i64: 2, 4, 1, 16>}, {pipeline_mode = #tpu.pipeline_mode<synchronous>, transform_indices = @transform_12, window_bounds = array<i64: 2, 4, 16, 64>}, {pipeline_mode = #tpu.pipeline_mode<synchronous>, transform_indices = @transform_13, window_bounds = array<i64: 2, 1, 64>}, {pipeline_mode = #tpu.pipeline_mode<synchronous>, transform_indices = @transform_14, window_bounds = array<i64: 2, 1, 64>}, {pipeline_mode = #tpu.pipeline_mode<synchronous>, transform_indices = @transform_15, window_bounds = array<i64: 2, 1, 64>}, {pipeline_mode = #tpu.pipeline_mode<synchronous>, transform_indices = @transform_16, window_bounds = array<i64: 2, 64, 128>}, {pipeline_mode = #tpu.pipeline_mode<synchronous>, transform_indices = @transform_17, window_bounds = array<i64: 2, 1, 128>}, {pipeline_mode = #tpu.pipeline_mode<synchronous>, transform_indices = @transform_18, window_bounds = array<i64: 2, 128, 64>}, {pipeline_mode = #tpu.pipeline_mode<synchronous>, transform_indices = @transform_19, window_bounds = array<i64: 2, 1, 64>}, {pipeline_mode = #tpu.pipeline_mode<synchronous>, transform_indices = @transform_20, window_bounds = array<i64: 1, 64>}, {pipeline_mode = #tpu.pipeline_mode<synchronous>, transform_indices = @transform_21, window_bounds = array<i64: 1, 64>}, {transform_indices = @transform_22, window_bounds = array<i64: 2, 1, 64>}]} {
    %c0 = arith.constant 0 : index
    %c0_0 = arith.constant 0 : index
    %0 = vector.load %arg1[%c0, %c0_0] : memref<16x768xf32, #tpu.memory_space<vmem>>, vector<16x768xf32>
    %1 = arith.truncf %0 : vector<16x768xf32> to vector<16x768xbf16>
    %c0_1 = arith.constant 0 : index
    %c0_2 = arith.constant 0 : index
    %2 = vector.load %arg4[%c0_1, %c0_2] : memref<768x64xbf16, #tpu.memory_space<vmem>>, vector<768x64xbf16>
    %cst = arith.constant dense<0.000000e+00> : vector<16x64xf32>
    %3 = tpu.matmul %1, %2, %cst {dimension_numbers = #tpu.dot_dimension_numbers<[1], [0], [0], [1], [0, 0, 1, 1], [], []>} : vector<16x768xbf16>, vector<768x64xbf16>, vector<16x64xf32> -> vector<16x64xf32>
    %c0_3 = arith.constant 0 : index
    %c0_4 = arith.constant 0 : index
    %4 = vector.load %arg2[%c0_3, %c0_4] : memref<16x64xf32, #tpu.memory_space<vmem>>, vector<16x64xf32>
    %5 = arith.addf %3, %4 : vector<16x64xf32>
    %c0_5 = arith.constant 0 : index
    %c0_6 = arith.constant 0 : index
    %6 = vector.load %arg3[%c0_5, %c0_6] : memref<16x16xf32, #tpu.memory_space<vmem>>, vector<16x16xf32>
    %c0_7 = arith.constant 0 : index
    %c0_8 = arith.constant 0 : index
    %c0_9 = arith.constant 0 : index
    %7 = vector.load %arg5[%c0_7, %c0_8, %c0_9] : memref<2x1x64xf32, #tpu.memory_space<vmem>>, vector<1x1x64xf32>
    %8 = vector.shape_cast %7 : vector<1x1x64xf32> to vector<1x64xf32>
    %c0_10 = arith.constant 0 : index
    %c0_11 = arith.constant 0 : index
    %c0_12 = arith.constant 0 : index
    %9 = vector.load %arg6[%c0_10, %c0_11, %c0_12] : memref<2x1x64xf32, #tpu.memory_space<vmem>>, vector<1x1x64xf32>
    %10 = vector.shape_cast %9 : vector<1x1x64xf32> to vector<1x64xf32>
    %cst_13 = arith.constant dense<0.000000e+00> : vector<16xf32>
    %11 = vector.multi_reduction <add>, %5, %cst_13 [1] : vector<16x64xf32> to vector<16xf32>
    %12 = vector.shape_cast %11 : vector<16xf32> to vector<16x1xf32>
    %cst_14 = arith.constant 6.400000e+01 : f32
    %13 = vector.broadcast %cst_14 : f32 to vector<16x1xf32>
    %14 = arith.divf %12, %13 : vector<16x1xf32>
    %15 = vector.broadcast %14 : vector<16x1xf32> to vector<16x64xf32>
    %16 = arith.subf %5, %15 : vector<16x64xf32>
    %17 = arith.mulf %16, %16 : vector<16x64xf32>
    %cst_15 = arith.constant dense<0.000000e+00> : vector<16xf32>
    %18 = vector.multi_reduction <add>, %17, %cst_15 [1] : vector<16x64xf32> to vector<16xf32>
    %19 = vector.shape_cast %18 : vector<16xf32> to vector<16x1xf32>
    %cst_16 = arith.constant 6.400000e+01 : f32
    %20 = vector.broadcast %cst_16 : f32 to vector<16x1xf32>
    %21 = arith.divf %19, %20 : vector<16x1xf32>
    %cst_17 = arith.constant 9.99999997E-7 : f32
    %22 = vector.broadcast %cst_17 : f32 to vector<16x1xf32>
    %23 = arith.addf %21, %22 : vector<16x1xf32>
    %24 = math.rsqrt %23 : vector<16x1xf32>
    %25 = vector.broadcast %24 : vector<16x1xf32> to vector<16x64xf32>
    %26 = arith.mulf %16, %25 : vector<16x64xf32>
    %27 = vector.broadcast %8 : vector<1x64xf32> to vector<16x64xf32>
    %28 = arith.mulf %26, %27 : vector<16x64xf32>
    %29 = vector.broadcast %10 : vector<1x64xf32> to vector<16x64xf32>
    %30 = arith.addf %28, %29 : vector<16x64xf32>
    %31 = arith.truncf %30 : vector<16x64xf32> to vector<16x64xbf16>
    %c0_18 = arith.constant 0 : index
    %c0_19 = arith.constant 0 : index
    %c0_20 = arith.constant 0 : index
    %c0_21 = arith.constant 0 : index
    %32 = vector.load %arg7[%c0_18, %c0_19, %c0_20, %c0_21] : memref<2x4x64x16xbf16, #tpu.memory_space<vmem>>, vector<1x1x64x16xbf16>
    %33 = vector.shape_cast %32 : vector<1x1x64x16xbf16> to vector<64x16xbf16>
    %cst_22 = arith.constant dense<0.000000e+00> : vector<16x16xf32>
    %34 = tpu.matmul %31, %33, %cst_22 {dimension_numbers = #tpu.dot_dimension_numbers<[1], [0], [0], [1], [0, 0, 1, 1], [], []>} : vector<16x64xbf16>, vector<64x16xbf16>, vector<16x16xf32> -> vector<16x16xf32>
    %c0_23 = arith.constant 0 : index
    %c0_24 = arith.constant 0 : index
    %c0_25 = arith.constant 0 : index
    %c0_26 = arith.constant 0 : index
    %35 = vector.load %arg10[%c0_23, %c0_24, %c0_25, %c0_26] : memref<2x4x1x16xf32, #tpu.memory_space<vmem>>, vector<1x1x1x16xf32>
    %36 = vector.shape_cast %35 : vector<1x1x1x16xf32> to vector<1x16xf32>
    %37 = vector.broadcast %36 : vector<1x16xf32> to vector<16x16xf32>
    %38 = arith.addf %34, %37 : vector<16x16xf32>
    %c0_27 = arith.constant 0 : index
    %c0_28 = arith.constant 0 : index
    %c0_29 = arith.constant 0 : index
    %c0_30 = arith.constant 0 : index
    %39 = vector.load %arg8[%c0_27, %c0_28, %c0_29, %c0_30] : memref<2x4x64x16xbf16, #tpu.memory_space<vmem>>, vector<1x1x64x16xbf16>
    %40 = vector.shape_cast %39 : vector<1x1x64x16xbf16> to vector<64x16xbf16>
    %cst_31 = arith.constant dense<0.000000e+00> : vector<16x16xf32>
    %41 = tpu.matmul %31, %40, %cst_31 {dimension_numbers = #tpu.dot_dimension_numbers<[1], [0], [0], [1], [0, 0, 1, 1], [], []>} : vector<16x64xbf16>, vector<64x16xbf16>, vector<16x16xf32> -> vector<16x16xf32>
    %c0_32 = arith.constant 0 : index
    %c0_33 = arith.constant 0 : index
    %c0_34 = arith.constant 0 : index
    %c0_35 = arith.constant 0 : index
    %42 = vector.load %arg11[%c0_32, %c0_33, %c0_34, %c0_35] : memref<2x4x1x16xf32, #tpu.memory_space<vmem>>, vector<1x1x1x16xf32>
    %43 = vector.shape_cast %42 : vector<1x1x1x16xf32> to vector<1x16xf32>
    %44 = vector.broadcast %43 : vector<1x16xf32> to vector<16x16xf32>
    %45 = arith.addf %41, %44 : vector<16x16xf32>
    %c0_36 = arith.constant 0 : index
    %c0_37 = arith.constant 0 : index
    %c0_38 = arith.constant 0 : index
    %c0_39 = arith.constant 0 : index
    %46 = vector.load %arg9[%c0_36, %c0_37, %c0_38, %c0_39] : memref<2x4x64x16xbf16, #tpu.memory_space<vmem>>, vector<1x1x64x16xbf16>
    %47 = vector.shape_cast %46 : vector<1x1x64x16xbf16> to vector<64x16xbf16>
    %cst_40 = arith.constant dense<0.000000e+00> : vector<16x16xf32>
    %48 = tpu.matmul %31, %47, %cst_40 {dimension_numbers = #tpu.dot_dimension_numbers<[1], [0], [0], [1], [0, 0, 1, 1], [], []>} : vector<16x64xbf16>, vector<64x16xbf16>, vector<16x16xf32> -> vector<16x16xf32>
    %c0_41 = arith.constant 0 : index
    %c0_42 = arith.constant 0 : index
    %c0_43 = arith.constant 0 : index
    %c0_44 = arith.constant 0 : index
    %49 = vector.load %arg12[%c0_41, %c0_42, %c0_43, %c0_44] : memref<2x4x1x16xf32, #tpu.memory_space<vmem>>, vector<1x1x1x16xf32>
    %50 = vector.shape_cast %49 : vector<1x1x1x16xf32> to vector<1x16xf32>
    %51 = vector.broadcast %50 : vector<1x16xf32> to vector<16x16xf32>
    %52 = arith.addf %48, %51 : vector<16x16xf32>
    %cst_45 = arith.constant dense<0.000000e+00> : vector<16x16xf32>
    %53 = tpu.matmul %38, %45, %cst_45 {dimension_numbers = #tpu.dot_dimension_numbers<[1], [1], [0], [0], [0, 0, 1, 0], [], []>} : vector<16x16xf32>, vector<16x16xf32>, vector<16x16xf32> -> vector<16x16xf32>
    %cst_46 = arith.constant 2.500000e-01 : f32
    %54 = vector.broadcast %cst_46 : f32 to vector<16x16xf32>
    %55 = arith.mulf %53, %54 : vector<16x16xf32>
    %56 = arith.addf %55, %6 : vector<16x16xf32>
    %cst_47 = arith.constant dense<0xFF800000> : vector<16xf32>
    %57 = vector.multi_reduction <maximumf>, %56, %cst_47 [1] : vector<16x16xf32> to vector<16xf32>
    %58 = vector.shape_cast %57 : vector<16xf32> to vector<16x1xf32>
    %59 = vector.broadcast %58 : vector<16x1xf32> to vector<16x16xf32>
    %60 = arith.subf %56, %59 : vector<16x16xf32>
    %61 = math.exp %60 : vector<16x16xf32>
    %cst_48 = arith.constant dense<0.000000e+00> : vector<16xf32>
    %62 = vector.multi_reduction <add>, %61, %cst_48 [1] : vector<16x16xf32> to vector<16xf32>
    %63 = vector.shape_cast %62 : vector<16xf32> to vector<16x1xf32>
    %64 = tpu.reciprocal %63 {approx = true} : vector<16x1xf32> -> vector<16x1xf32>
    %65 = vector.broadcast %64 : vector<16x1xf32> to vector<16x16xf32>
    %66 = arith.mulf %61, %65 : vector<16x16xf32>
    %cst_49 = arith.constant dense<0.000000e+00> : vector<16x16xf32>
    %67 = tpu.matmul %66, %52, %cst_49 {dimension_numbers = #tpu.dot_dimension_numbers<[1], [0], [0], [1], [0, 0, 1, 1], [], []>} : vector<16x16xf32>, vector<16x16xf32>, vector<16x16xf32> -> vector<16x16xf32>
    %68 = arith.truncf %67 : vector<16x16xf32> to vector<16x16xbf16>
    %c0_50 = arith.constant 0 : index
    %c0_51 = arith.constant 0 : index
    %c0_52 = arith.constant 0 : index
    %c0_53 = arith.constant 0 : index
    %69 = vector.load %arg13[%c0_50, %c0_51, %c0_52, %c0_53] : memref<2x4x16x64xbf16, #tpu.memory_space<vmem>>, vector<1x1x16x64xbf16>
    %70 = vector.shape_cast %69 : vector<1x1x16x64xbf16> to vector<16x64xbf16>
    %cst_54 = arith.constant dense<0.000000e+00> : vector<16x64xf32>
    %71 = tpu.matmul %68, %70, %cst_54 {dimension_numbers = #tpu.dot_dimension_numbers<[1], [0], [0], [1], [0, 0, 1, 1], [], []>} : vector<16x16xbf16>, vector<16x64xbf16>, vector<16x64xf32> -> vector<16x64xf32>
    %c0_55 = arith.constant 0 : index
    %c1 = arith.constant 1 : index
    %c0_56 = arith.constant 0 : index
    %c0_57 = arith.constant 0 : index
    %72 = vector.load %arg7[%c0_55, %c1, %c0_56, %c0_57] : memref<2x4x64x16xbf16, #tpu.memory_space<vmem>>, vector<1x1x64x16xbf16>
    %73 = vector.shape_cast %72 : vector<1x1x64x16xbf16> to vector<64x16xbf16>
    %cst_58 = arith.constant dense<0.000000e+00> : vector<16x16xf32>
    %74 = tpu.matmul %31, %73, %cst_58 {dimension_numbers = #tpu.dot_dimension_numbers<[1], [0], [0], [1], [0, 0, 1, 1], [], []>} : vector<16x64xbf16>, vector<64x16xbf16>, vector<16x16xf32> -> vector<16x16xf32>
    %c0_59 = arith.constant 0 : index
    %c1_60 = arith.constant 1 : index
    %c0_61 = arith.constant 0 : index
    %c0_62 = arith.constant 0 : index
    %75 = vector.load %arg10[%c0_59, %c1_60, %c0_61, %c0_62] : memref<2x4x1x16xf32, #tpu.memory_space<vmem>>, vector<1x1x1x16xf32>
    %76 = vector.shape_cast %75 : vector<1x1x1x16xf32> to vector<1x16xf32>
    %77 = vector.broadcast %76 : vector<1x16xf32> to vector<16x16xf32>
    %78 = arith.addf %74, %77 : vector<16x16xf32>
    %c0_63 = arith.constant 0 : index
    %c1_64 = arith.constant 1 : index
    %c0_65 = arith.constant 0 : index
    %c0_66 = arith.constant 0 : index
    %79 = vector.load %arg8[%c0_63, %c1_64, %c0_65, %c0_66] : memref<2x4x64x16xbf16, #tpu.memory_space<vmem>>, vector<1x1x64x16xbf16>
    %80 = vector.shape_cast %79 : vector<1x1x64x16xbf16> to vector<64x16xbf16>
    %cst_67 = arith.constant dense<0.000000e+00> : vector<16x16xf32>
    %81 = tpu.matmul %31, %80, %cst_67 {dimension_numbers = #tpu.dot_dimension_numbers<[1], [0], [0], [1], [0, 0, 1, 1], [], []>} : vector<16x64xbf16>, vector<64x16xbf16>, vector<16x16xf32> -> vector<16x16xf32>
    %c0_68 = arith.constant 0 : index
    %c1_69 = arith.constant 1 : index
    %c0_70 = arith.constant 0 : index
    %c0_71 = arith.constant 0 : index
    %82 = vector.load %arg11[%c0_68, %c1_69, %c0_70, %c0_71] : memref<2x4x1x16xf32, #tpu.memory_space<vmem>>, vector<1x1x1x16xf32>
    %83 = vector.shape_cast %82 : vector<1x1x1x16xf32> to vector<1x16xf32>
    %84 = vector.broadcast %83 : vector<1x16xf32> to vector<16x16xf32>
    %85 = arith.addf %81, %84 : vector<16x16xf32>
    %c0_72 = arith.constant 0 : index
    %c1_73 = arith.constant 1 : index
    %c0_74 = arith.constant 0 : index
    %c0_75 = arith.constant 0 : index
    %86 = vector.load %arg9[%c0_72, %c1_73, %c0_74, %c0_75] : memref<2x4x64x16xbf16, #tpu.memory_space<vmem>>, vector<1x1x64x16xbf16>
    %87 = vector.shape_cast %86 : vector<1x1x64x16xbf16> to vector<64x16xbf16>
    %cst_76 = arith.constant dense<0.000000e+00> : vector<16x16xf32>
    %88 = tpu.matmul %31, %87, %cst_76 {dimension_numbers = #tpu.dot_dimension_numbers<[1], [0], [0], [1], [0, 0, 1, 1], [], []>} : vector<16x64xbf16>, vector<64x16xbf16>, vector<16x16xf32> -> vector<16x16xf32>
    %c0_77 = arith.constant 0 : index
    %c1_78 = arith.constant 1 : index
    %c0_79 = arith.constant 0 : index
    %c0_80 = arith.constant 0 : index
    %89 = vector.load %arg12[%c0_77, %c1_78, %c0_79, %c0_80] : memref<2x4x1x16xf32, #tpu.memory_space<vmem>>, vector<1x1x1x16xf32>
    %90 = vector.shape_cast %89 : vector<1x1x1x16xf32> to vector<1x16xf32>
    %91 = vector.broadcast %90 : vector<1x16xf32> to vector<16x16xf32>
    %92 = arith.addf %88, %91 : vector<16x16xf32>
    %cst_81 = arith.constant dense<0.000000e+00> : vector<16x16xf32>
    %93 = tpu.matmul %78, %85, %cst_81 {dimension_numbers = #tpu.dot_dimension_numbers<[1], [1], [0], [0], [0, 0, 1, 0], [], []>} : vector<16x16xf32>, vector<16x16xf32>, vector<16x16xf32> -> vector<16x16xf32>
    %cst_82 = arith.constant 2.500000e-01 : f32
    %94 = vector.broadcast %cst_82 : f32 to vector<16x16xf32>
    %95 = arith.mulf %93, %94 : vector<16x16xf32>
    %96 = arith.addf %95, %6 : vector<16x16xf32>
    %cst_83 = arith.constant dense<0xFF800000> : vector<16xf32>
    %97 = vector.multi_reduction <maximumf>, %96, %cst_83 [1] : vector<16x16xf32> to vector<16xf32>
    %98 = vector.shape_cast %97 : vector<16xf32> to vector<16x1xf32>
    %99 = vector.broadcast %98 : vector<16x1xf32> to vector<16x16xf32>
    %100 = arith.subf %96, %99 : vector<16x16xf32>
    %101 = math.exp %100 : vector<16x16xf32>
    %cst_84 = arith.constant dense<0.000000e+00> : vector<16xf32>
    %102 = vector.multi_reduction <add>, %101, %cst_84 [1] : vector<16x16xf32> to vector<16xf32>
    %103 = vector.shape_cast %102 : vector<16xf32> to vector<16x1xf32>
    %104 = tpu.reciprocal %103 {approx = true} : vector<16x1xf32> -> vector<16x1xf32>
    %105 = vector.broadcast %104 : vector<16x1xf32> to vector<16x16xf32>
    %106 = arith.mulf %101, %105 : vector<16x16xf32>
    %cst_85 = arith.constant dense<0.000000e+00> : vector<16x16xf32>
    %107 = tpu.matmul %106, %92, %cst_85 {dimension_numbers = #tpu.dot_dimension_numbers<[1], [0], [0], [1], [0, 0, 1, 1], [], []>} : vector<16x16xf32>, vector<16x16xf32>, vector<16x16xf32> -> vector<16x16xf32>
    %108 = arith.truncf %107 : vector<16x16xf32> to vector<16x16xbf16>
    %c0_86 = arith.constant 0 : index
    %c1_87 = arith.constant 1 : index
    %c0_88 = arith.constant 0 : index
    %c0_89 = arith.constant 0 : index
    %109 = vector.load %arg13[%c0_86, %c1_87, %c0_88, %c0_89] : memref<2x4x16x64xbf16, #tpu.memory_space<vmem>>, vector<1x1x16x64xbf16>
    %110 = vector.shape_cast %109 : vector<1x1x16x64xbf16> to vector<16x64xbf16>
    %cst_90 = arith.constant dense<0.000000e+00> : vector<16x64xf32>
    %111 = tpu.matmul %108, %110, %cst_90 {dimension_numbers = #tpu.dot_dimension_numbers<[1], [0], [0], [1], [0, 0, 1, 1], [], []>} : vector<16x16xbf16>, vector<16x64xbf16>, vector<16x64xf32> -> vector<16x64xf32>
    %112 = arith.addf %71, %111 : vector<16x64xf32>
    %c0_91 = arith.constant 0 : index
    %c2 = arith.constant 2 : index
    %c0_92 = arith.constant 0 : index
    %c0_93 = arith.constant 0 : index
    %113 = vector.load %arg7[%c0_91, %c2, %c0_92, %c0_93] : memref<2x4x64x16xbf16, #tpu.memory_space<vmem>>, vector<1x1x64x16xbf16>
    %114 = vector.shape_cast %113 : vector<1x1x64x16xbf16> to vector<64x16xbf16>
    %cst_94 = arith.constant dense<0.000000e+00> : vector<16x16xf32>
    %115 = tpu.matmul %31, %114, %cst_94 {dimension_numbers = #tpu.dot_dimension_numbers<[1], [0], [0], [1], [0, 0, 1, 1], [], []>} : vector<16x64xbf16>, vector<64x16xbf16>, vector<16x16xf32> -> vector<16x16xf32>
    %c0_95 = arith.constant 0 : index
    %c2_96 = arith.constant 2 : index
    %c0_97 = arith.constant 0 : index
    %c0_98 = arith.constant 0 : index
    %116 = vector.load %arg10[%c0_95, %c2_96, %c0_97, %c0_98] : memref<2x4x1x16xf32, #tpu.memory_space<vmem>>, vector<1x1x1x16xf32>
    %117 = vector.shape_cast %116 : vector<1x1x1x16xf32> to vector<1x16xf32>
    %118 = vector.broadcast %117 : vector<1x16xf32> to vector<16x16xf32>
    %119 = arith.addf %115, %118 : vector<16x16xf32>
    %c0_99 = arith.constant 0 : index
    %c2_100 = arith.constant 2 : index
    %c0_101 = arith.constant 0 : index
    %c0_102 = arith.constant 0 : index
    %120 = vector.load %arg8[%c0_99, %c2_100, %c0_101, %c0_102] : memref<2x4x64x16xbf16, #tpu.memory_space<vmem>>, vector<1x1x64x16xbf16>
    %121 = vector.shape_cast %120 : vector<1x1x64x16xbf16> to vector<64x16xbf16>
    %cst_103 = arith.constant dense<0.000000e+00> : vector<16x16xf32>
    %122 = tpu.matmul %31, %121, %cst_103 {dimension_numbers = #tpu.dot_dimension_numbers<[1], [0], [0], [1], [0, 0, 1, 1], [], []>} : vector<16x64xbf16>, vector<64x16xbf16>, vector<16x16xf32> -> vector<16x16xf32>
    %c0_104 = arith.constant 0 : index
    %c2_105 = arith.constant 2 : index
    %c0_106 = arith.constant 0 : index
    %c0_107 = arith.constant 0 : index
    %123 = vector.load %arg11[%c0_104, %c2_105, %c0_106, %c0_107] : memref<2x4x1x16xf32, #tpu.memory_space<vmem>>, vector<1x1x1x16xf32>
    %124 = vector.shape_cast %123 : vector<1x1x1x16xf32> to vector<1x16xf32>
    %125 = vector.broadcast %124 : vector<1x16xf32> to vector<16x16xf32>
    %126 = arith.addf %122, %125 : vector<16x16xf32>
    %c0_108 = arith.constant 0 : index
    %c2_109 = arith.constant 2 : index
    %c0_110 = arith.constant 0 : index
    %c0_111 = arith.constant 0 : index
    %127 = vector.load %arg9[%c0_108, %c2_109, %c0_110, %c0_111] : memref<2x4x64x16xbf16, #tpu.memory_space<vmem>>, vector<1x1x64x16xbf16>
    %128 = vector.shape_cast %127 : vector<1x1x64x16xbf16> to vector<64x16xbf16>
    %cst_112 = arith.constant dense<0.000000e+00> : vector<16x16xf32>
    %129 = tpu.matmul %31, %128, %cst_112 {dimension_numbers = #tpu.dot_dimension_numbers<[1], [0], [0], [1], [0, 0, 1, 1], [], []>} : vector<16x64xbf16>, vector<64x16xbf16>, vector<16x16xf32> -> vector<16x16xf32>
    %c0_113 = arith.constant 0 : index
    %c2_114 = arith.constant 2 : index
    %c0_115 = arith.constant 0 : index
    %c0_116 = arith.constant 0 : index
    %130 = vector.load %arg12[%c0_113, %c2_114, %c0_115, %c0_116] : memref<2x4x1x16xf32, #tpu.memory_space<vmem>>, vector<1x1x1x16xf32>
    %131 = vector.shape_cast %130 : vector<1x1x1x16xf32> to vector<1x16xf32>
    %132 = vector.broadcast %131 : vector<1x16xf32> to vector<16x16xf32>
    %133 = arith.addf %129, %132 : vector<16x16xf32>
    %cst_117 = arith.constant dense<0.000000e+00> : vector<16x16xf32>
    %134 = tpu.matmul %119, %126, %cst_117 {dimension_numbers = #tpu.dot_dimension_numbers<[1], [1], [0], [0], [0, 0, 1, 0], [], []>} : vector<16x16xf32>, vector<16x16xf32>, vector<16x16xf32> -> vector<16x16xf32>
    %cst_118 = arith.constant 2.500000e-01 : f32
    %135 = vector.broadcast %cst_118 : f32 to vector<16x16xf32>
    %136 = arith.mulf %134, %135 : vector<16x16xf32>
    %137 = arith.addf %136, %6 : vector<16x16xf32>
    %cst_119 = arith.constant dense<0xFF800000> : vector<16xf32>
    %138 = vector.multi_reduction <maximumf>, %137, %cst_119 [1] : vector<16x16xf32> to vector<16xf32>
    %139 = vector.shape_cast %138 : vector<16xf32> to vector<16x1xf32>
    %140 = vector.broadcast %139 : vector<16x1xf32> to vector<16x16xf32>
    %141 = arith.subf %137, %140 : vector<16x16xf32>
    %142 = math.exp %141 : vector<16x16xf32>
    %cst_120 = arith.constant dense<0.000000e+00> : vector<16xf32>
    %143 = vector.multi_reduction <add>, %142, %cst_120 [1] : vector<16x16xf32> to vector<16xf32>
    %144 = vector.shape_cast %143 : vector<16xf32> to vector<16x1xf32>
    %145 = tpu.reciprocal %144 {approx = true} : vector<16x1xf32> -> vector<16x1xf32>
    %146 = vector.broadcast %145 : vector<16x1xf32> to vector<16x16xf32>
    %147 = arith.mulf %142, %146 : vector<16x16xf32>
    %cst_121 = arith.constant dense<0.000000e+00> : vector<16x16xf32>
    %148 = tpu.matmul %147, %133, %cst_121 {dimension_numbers = #tpu.dot_dimension_numbers<[1], [0], [0], [1], [0, 0, 1, 1], [], []>} : vector<16x16xf32>, vector<16x16xf32>, vector<16x16xf32> -> vector<16x16xf32>
    %149 = arith.truncf %148 : vector<16x16xf32> to vector<16x16xbf16>
    %c0_122 = arith.constant 0 : index
    %c2_123 = arith.constant 2 : index
    %c0_124 = arith.constant 0 : index
    %c0_125 = arith.constant 0 : index
    %150 = vector.load %arg13[%c0_122, %c2_123, %c0_124, %c0_125] : memref<2x4x16x64xbf16, #tpu.memory_space<vmem>>, vector<1x1x16x64xbf16>
    %151 = vector.shape_cast %150 : vector<1x1x16x64xbf16> to vector<16x64xbf16>
    %cst_126 = arith.constant dense<0.000000e+00> : vector<16x64xf32>
    %152 = tpu.matmul %149, %151, %cst_126 {dimension_numbers = #tpu.dot_dimension_numbers<[1], [0], [0], [1], [0, 0, 1, 1], [], []>} : vector<16x16xbf16>, vector<16x64xbf16>, vector<16x64xf32> -> vector<16x64xf32>
    %153 = arith.addf %112, %152 : vector<16x64xf32>
    %c0_127 = arith.constant 0 : index
    %c3 = arith.constant 3 : index
    %c0_128 = arith.constant 0 : index
    %c0_129 = arith.constant 0 : index
    %154 = vector.load %arg7[%c0_127, %c3, %c0_128, %c0_129] : memref<2x4x64x16xbf16, #tpu.memory_space<vmem>>, vector<1x1x64x16xbf16>
    %155 = vector.shape_cast %154 : vector<1x1x64x16xbf16> to vector<64x16xbf16>
    %cst_130 = arith.constant dense<0.000000e+00> : vector<16x16xf32>
    %156 = tpu.matmul %31, %155, %cst_130 {dimension_numbers = #tpu.dot_dimension_numbers<[1], [0], [0], [1], [0, 0, 1, 1], [], []>} : vector<16x64xbf16>, vector<64x16xbf16>, vector<16x16xf32> -> vector<16x16xf32>
    %c0_131 = arith.constant 0 : index
    %c3_132 = arith.constant 3 : index
    %c0_133 = arith.constant 0 : index
    %c0_134 = arith.constant 0 : index
    %157 = vector.load %arg10[%c0_131, %c3_132, %c0_133, %c0_134] : memref<2x4x1x16xf32, #tpu.memory_space<vmem>>, vector<1x1x1x16xf32>
    %158 = vector.shape_cast %157 : vector<1x1x1x16xf32> to vector<1x16xf32>
    %159 = vector.broadcast %158 : vector<1x16xf32> to vector<16x16xf32>
    %160 = arith.addf %156, %159 : vector<16x16xf32>
    %c0_135 = arith.constant 0 : index
    %c3_136 = arith.constant 3 : index
    %c0_137 = arith.constant 0 : index
    %c0_138 = arith.constant 0 : index
    %161 = vector.load %arg8[%c0_135, %c3_136, %c0_137, %c0_138] : memref<2x4x64x16xbf16, #tpu.memory_space<vmem>>, vector<1x1x64x16xbf16>
    %162 = vector.shape_cast %161 : vector<1x1x64x16xbf16> to vector<64x16xbf16>
    %cst_139 = arith.constant dense<0.000000e+00> : vector<16x16xf32>
    %163 = tpu.matmul %31, %162, %cst_139 {dimension_numbers = #tpu.dot_dimension_numbers<[1], [0], [0], [1], [0, 0, 1, 1], [], []>} : vector<16x64xbf16>, vector<64x16xbf16>, vector<16x16xf32> -> vector<16x16xf32>
    %c0_140 = arith.constant 0 : index
    %c3_141 = arith.constant 3 : index
    %c0_142 = arith.constant 0 : index
    %c0_143 = arith.constant 0 : index
    %164 = vector.load %arg11[%c0_140, %c3_141, %c0_142, %c0_143] : memref<2x4x1x16xf32, #tpu.memory_space<vmem>>, vector<1x1x1x16xf32>
    %165 = vector.shape_cast %164 : vector<1x1x1x16xf32> to vector<1x16xf32>
    %166 = vector.broadcast %165 : vector<1x16xf32> to vector<16x16xf32>
    %167 = arith.addf %163, %166 : vector<16x16xf32>
    %c0_144 = arith.constant 0 : index
    %c3_145 = arith.constant 3 : index
    %c0_146 = arith.constant 0 : index
    %c0_147 = arith.constant 0 : index
    %168 = vector.load %arg9[%c0_144, %c3_145, %c0_146, %c0_147] : memref<2x4x64x16xbf16, #tpu.memory_space<vmem>>, vector<1x1x64x16xbf16>
    %169 = vector.shape_cast %168 : vector<1x1x64x16xbf16> to vector<64x16xbf16>
    %cst_148 = arith.constant dense<0.000000e+00> : vector<16x16xf32>
    %170 = tpu.matmul %31, %169, %cst_148 {dimension_numbers = #tpu.dot_dimension_numbers<[1], [0], [0], [1], [0, 0, 1, 1], [], []>} : vector<16x64xbf16>, vector<64x16xbf16>, vector<16x16xf32> -> vector<16x16xf32>
    %c0_149 = arith.constant 0 : index
    %c3_150 = arith.constant 3 : index
    %c0_151 = arith.constant 0 : index
    %c0_152 = arith.constant 0 : index
    %171 = vector.load %arg12[%c0_149, %c3_150, %c0_151, %c0_152] : memref<2x4x1x16xf32, #tpu.memory_space<vmem>>, vector<1x1x1x16xf32>
    %172 = vector.shape_cast %171 : vector<1x1x1x16xf32> to vector<1x16xf32>
    %173 = vector.broadcast %172 : vector<1x16xf32> to vector<16x16xf32>
    %174 = arith.addf %170, %173 : vector<16x16xf32>
    %cst_153 = arith.constant dense<0.000000e+00> : vector<16x16xf32>
    %175 = tpu.matmul %160, %167, %cst_153 {dimension_numbers = #tpu.dot_dimension_numbers<[1], [1], [0], [0], [0, 0, 1, 0], [], []>} : vector<16x16xf32>, vector<16x16xf32>, vector<16x16xf32> -> vector<16x16xf32>
    %cst_154 = arith.constant 2.500000e-01 : f32
    %176 = vector.broadcast %cst_154 : f32 to vector<16x16xf32>
    %177 = arith.mulf %175, %176 : vector<16x16xf32>
    %178 = arith.addf %177, %6 : vector<16x16xf32>
    %cst_155 = arith.constant dense<0xFF800000> : vector<16xf32>
    %179 = vector.multi_reduction <maximumf>, %178, %cst_155 [1] : vector<16x16xf32> to vector<16xf32>
    %180 = vector.shape_cast %179 : vector<16xf32> to vector<16x1xf32>
    %181 = vector.broadcast %180 : vector<16x1xf32> to vector<16x16xf32>
    %182 = arith.subf %178, %181 : vector<16x16xf32>
    %183 = math.exp %182 : vector<16x16xf32>
    %cst_156 = arith.constant dense<0.000000e+00> : vector<16xf32>
    %184 = vector.multi_reduction <add>, %183, %cst_156 [1] : vector<16x16xf32> to vector<16xf32>
    %185 = vector.shape_cast %184 : vector<16xf32> to vector<16x1xf32>
    %186 = tpu.reciprocal %185 {approx = true} : vector<16x1xf32> -> vector<16x1xf32>
    %187 = vector.broadcast %186 : vector<16x1xf32> to vector<16x16xf32>
    %188 = arith.mulf %183, %187 : vector<16x16xf32>
    %cst_157 = arith.constant dense<0.000000e+00> : vector<16x16xf32>
    %189 = tpu.matmul %188, %174, %cst_157 {dimension_numbers = #tpu.dot_dimension_numbers<[1], [0], [0], [1], [0, 0, 1, 1], [], []>} : vector<16x16xf32>, vector<16x16xf32>, vector<16x16xf32> -> vector<16x16xf32>
    %190 = arith.truncf %189 : vector<16x16xf32> to vector<16x16xbf16>
    %c0_158 = arith.constant 0 : index
    %c3_159 = arith.constant 3 : index
    %c0_160 = arith.constant 0 : index
    %c0_161 = arith.constant 0 : index
    %191 = vector.load %arg13[%c0_158, %c3_159, %c0_160, %c0_161] : memref<2x4x16x64xbf16, #tpu.memory_space<vmem>>, vector<1x1x16x64xbf16>
    %192 = vector.shape_cast %191 : vector<1x1x16x64xbf16> to vector<16x64xbf16>
    %cst_162 = arith.constant dense<0.000000e+00> : vector<16x64xf32>
    %193 = tpu.matmul %190, %192, %cst_162 {dimension_numbers = #tpu.dot_dimension_numbers<[1], [0], [0], [1], [0, 0, 1, 1], [], []>} : vector<16x16xbf16>, vector<16x64xbf16>, vector<16x64xf32> -> vector<16x64xf32>
    %194 = arith.addf %153, %193 : vector<16x64xf32>
    %195 = arith.addf %5, %194 : vector<16x64xf32>
    %c0_163 = arith.constant 0 : index
    %c0_164 = arith.constant 0 : index
    %c0_165 = arith.constant 0 : index
    %196 = vector.load %arg14[%c0_163, %c0_164, %c0_165] : memref<2x1x64xf32, #tpu.memory_space<vmem>>, vector<1x1x64xf32>
    %197 = vector.shape_cast %196 : vector<1x1x64xf32> to vector<1x64xf32>
    %198 = vector.broadcast %197 : vector<1x64xf32> to vector<16x64xf32>
    %199 = arith.addf %195, %198 : vector<16x64xf32>
    %c0_166 = arith.constant 0 : index
    %c0_167 = arith.constant 0 : index
    %c0_168 = arith.constant 0 : index
    %200 = vector.load %arg15[%c0_166, %c0_167, %c0_168] : memref<2x1x64xf32, #tpu.memory_space<vmem>>, vector<1x1x64xf32>
    %201 = vector.shape_cast %200 : vector<1x1x64xf32> to vector<1x64xf32>
    %c0_169 = arith.constant 0 : index
    %c0_170 = arith.constant 0 : index
    %c0_171 = arith.constant 0 : index
    %202 = vector.load %arg16[%c0_169, %c0_170, %c0_171] : memref<2x1x64xf32, #tpu.memory_space<vmem>>, vector<1x1x64xf32>
    %203 = vector.shape_cast %202 : vector<1x1x64xf32> to vector<1x64xf32>
    %cst_172 = arith.constant dense<0.000000e+00> : vector<16xf32>
    %204 = vector.multi_reduction <add>, %199, %cst_172 [1] : vector<16x64xf32> to vector<16xf32>
    %205 = vector.shape_cast %204 : vector<16xf32> to vector<16x1xf32>
    %cst_173 = arith.constant 6.400000e+01 : f32
    %206 = vector.broadcast %cst_173 : f32 to vector<16x1xf32>
    %207 = arith.divf %205, %206 : vector<16x1xf32>
    %208 = vector.broadcast %207 : vector<16x1xf32> to vector<16x64xf32>
    %209 = arith.subf %199, %208 : vector<16x64xf32>
    %210 = arith.mulf %209, %209 : vector<16x64xf32>
    %cst_174 = arith.constant dense<0.000000e+00> : vector<16xf32>
    %211 = vector.multi_reduction <add>, %210, %cst_174 [1] : vector<16x64xf32> to vector<16xf32>
    %212 = vector.shape_cast %211 : vector<16xf32> to vector<16x1xf32>
    %cst_175 = arith.constant 6.400000e+01 : f32
    %213 = vector.broadcast %cst_175 : f32 to vector<16x1xf32>
    %214 = arith.divf %212, %213 : vector<16x1xf32>
    %cst_176 = arith.constant 9.99999997E-7 : f32
    %215 = vector.broadcast %cst_176 : f32 to vector<16x1xf32>
    %216 = arith.addf %214, %215 : vector<16x1xf32>
    %217 = math.rsqrt %216 : vector<16x1xf32>
    %218 = vector.broadcast %217 : vector<16x1xf32> to vector<16x64xf32>
    %219 = arith.mulf %209, %218 : vector<16x64xf32>
    %220 = vector.broadcast %201 : vector<1x64xf32> to vector<16x64xf32>
    %221 = arith.mulf %219, %220 : vector<16x64xf32>
    %222 = vector.broadcast %203 : vector<1x64xf32> to vector<16x64xf32>
    %223 = arith.addf %221, %222 : vector<16x64xf32>
    %224 = arith.truncf %223 : vector<16x64xf32> to vector<16x64xbf16>
    %c0_177 = arith.constant 0 : index
    %c0_178 = arith.constant 0 : index
    %c0_179 = arith.constant 0 : index
    %225 = vector.load %arg17[%c0_177, %c0_178, %c0_179] : memref<2x64x128xbf16, #tpu.memory_space<vmem>>, vector<1x64x128xbf16>
    %226 = vector.shape_cast %225 : vector<1x64x128xbf16> to vector<64x128xbf16>
    %cst_180 = arith.constant dense<0.000000e+00> : vector<16x128xf32>
    %227 = tpu.matmul %224, %226, %cst_180 {dimension_numbers = #tpu.dot_dimension_numbers<[1], [0], [0], [1], [0, 0, 1, 1], [], []>} : vector<16x64xbf16>, vector<64x128xbf16>, vector<16x128xf32> -> vector<16x128xf32>
    %c0_181 = arith.constant 0 : index
    %c0_182 = arith.constant 0 : index
    %c0_183 = arith.constant 0 : index
    %228 = vector.load %arg18[%c0_181, %c0_182, %c0_183] : memref<2x1x128xf32, #tpu.memory_space<vmem>>, vector<1x1x128xf32>
    %229 = vector.shape_cast %228 : vector<1x1x128xf32> to vector<1x128xf32>
    %230 = vector.broadcast %229 : vector<1x128xf32> to vector<16x128xf32>
    %231 = arith.addf %227, %230 : vector<16x128xf32>
    %232 = arith.mulf %231, %231 : vector<16x128xf32>
    %233 = arith.mulf %231, %232 : vector<16x128xf32>
    %cst_184 = arith.constant 4.471500e-02 : f32
    %234 = vector.broadcast %cst_184 : f32 to vector<16x128xf32>
    %235 = arith.mulf %234, %233 : vector<16x128xf32>
    %236 = arith.addf %231, %235 : vector<16x128xf32>
    %cst_185 = arith.constant 0.797884583 : f32
    %237 = vector.broadcast %cst_185 : f32 to vector<16x128xf32>
    %238 = arith.mulf %237, %236 : vector<16x128xf32>
    %239 = math.tanh %238 : vector<16x128xf32>
    %cst_186 = arith.constant 1.000000e+00 : f32
    %240 = vector.broadcast %cst_186 : f32 to vector<16x128xf32>
    %241 = arith.addf %240, %239 : vector<16x128xf32>
    %cst_187 = arith.constant 5.000000e-01 : f32
    %242 = vector.broadcast %cst_187 : f32 to vector<16x128xf32>
    %243 = arith.mulf %242, %241 : vector<16x128xf32>
    %244 = arith.mulf %231, %243 : vector<16x128xf32>
    %245 = arith.truncf %244 : vector<16x128xf32> to vector<16x128xbf16>
    %c0_188 = arith.constant 0 : index
    %c0_189 = arith.constant 0 : index
    %c0_190 = arith.constant 0 : index
    %246 = vector.load %arg19[%c0_188, %c0_189, %c0_190] : memref<2x128x64xbf16, #tpu.memory_space<vmem>>, vector<1x128x64xbf16>
    %247 = vector.shape_cast %246 : vector<1x128x64xbf16> to vector<128x64xbf16>
    %cst_191 = arith.constant dense<0.000000e+00> : vector<16x64xf32>
    %248 = tpu.matmul %245, %247, %cst_191 {dimension_numbers = #tpu.dot_dimension_numbers<[1], [0], [0], [1], [0, 0, 1, 1], [], []>} : vector<16x128xbf16>, vector<128x64xbf16>, vector<16x64xf32> -> vector<16x64xf32>
    %c0_192 = arith.constant 0 : index
    %c0_193 = arith.constant 0 : index
    %c0_194 = arith.constant 0 : index
    %249 = vector.load %arg20[%c0_192, %c0_193, %c0_194] : memref<2x1x64xf32, #tpu.memory_space<vmem>>, vector<1x1x64xf32>
    %250 = vector.shape_cast %249 : vector<1x1x64xf32> to vector<1x64xf32>
    %251 = vector.broadcast %250 : vector<1x64xf32> to vector<16x64xf32>
    %252 = arith.addf %248, %251 : vector<16x64xf32>
    %253 = arith.addf %199, %252 : vector<16x64xf32>
    %c1_195 = arith.constant 1 : index
    %c0_196 = arith.constant 0 : index
    %c0_197 = arith.constant 0 : index
    %254 = vector.load %arg5[%c1_195, %c0_196, %c0_197] : memref<2x1x64xf32, #tpu.memory_space<vmem>>, vector<1x1x64xf32>
    %255 = vector.shape_cast %254 : vector<1x1x64xf32> to vector<1x64xf32>
    %c1_198 = arith.constant 1 : index
    %c0_199 = arith.constant 0 : index
    %c0_200 = arith.constant 0 : index
    %256 = vector.load %arg6[%c1_198, %c0_199, %c0_200] : memref<2x1x64xf32, #tpu.memory_space<vmem>>, vector<1x1x64xf32>
    %257 = vector.shape_cast %256 : vector<1x1x64xf32> to vector<1x64xf32>
    %cst_201 = arith.constant dense<0.000000e+00> : vector<16xf32>
    %258 = vector.multi_reduction <add>, %253, %cst_201 [1] : vector<16x64xf32> to vector<16xf32>
    %259 = vector.shape_cast %258 : vector<16xf32> to vector<16x1xf32>
    %cst_202 = arith.constant 6.400000e+01 : f32
    %260 = vector.broadcast %cst_202 : f32 to vector<16x1xf32>
    %261 = arith.divf %259, %260 : vector<16x1xf32>
    %262 = vector.broadcast %261 : vector<16x1xf32> to vector<16x64xf32>
    %263 = arith.subf %253, %262 : vector<16x64xf32>
    %264 = arith.mulf %263, %263 : vector<16x64xf32>
    %cst_203 = arith.constant dense<0.000000e+00> : vector<16xf32>
    %265 = vector.multi_reduction <add>, %264, %cst_203 [1] : vector<16x64xf32> to vector<16xf32>
    %266 = vector.shape_cast %265 : vector<16xf32> to vector<16x1xf32>
    %cst_204 = arith.constant 6.400000e+01 : f32
    %267 = vector.broadcast %cst_204 : f32 to vector<16x1xf32>
    %268 = arith.divf %266, %267 : vector<16x1xf32>
    %cst_205 = arith.constant 9.99999997E-7 : f32
    %269 = vector.broadcast %cst_205 : f32 to vector<16x1xf32>
    %270 = arith.addf %268, %269 : vector<16x1xf32>
    %271 = math.rsqrt %270 : vector<16x1xf32>
    %272 = vector.broadcast %271 : vector<16x1xf32> to vector<16x64xf32>
    %273 = arith.mulf %263, %272 : vector<16x64xf32>
    %274 = vector.broadcast %255 : vector<1x64xf32> to vector<16x64xf32>
    %275 = arith.mulf %273, %274 : vector<16x64xf32>
    %276 = vector.broadcast %257 : vector<1x64xf32> to vector<16x64xf32>
    %277 = arith.addf %275, %276 : vector<16x64xf32>
    %278 = arith.truncf %277 : vector<16x64xf32> to vector<16x64xbf16>
    %c1_206 = arith.constant 1 : index
    %c0_207 = arith.constant 0 : index
    %c0_208 = arith.constant 0 : index
    %c0_209 = arith.constant 0 : index
    %279 = vector.load %arg7[%c1_206, %c0_207, %c0_208, %c0_209] : memref<2x4x64x16xbf16, #tpu.memory_space<vmem>>, vector<1x1x64x16xbf16>
    %280 = vector.shape_cast %279 : vector<1x1x64x16xbf16> to vector<64x16xbf16>
    %cst_210 = arith.constant dense<0.000000e+00> : vector<16x16xf32>
    %281 = tpu.matmul %278, %280, %cst_210 {dimension_numbers = #tpu.dot_dimension_numbers<[1], [0], [0], [1], [0, 0, 1, 1], [], []>} : vector<16x64xbf16>, vector<64x16xbf16>, vector<16x16xf32> -> vector<16x16xf32>
    %c1_211 = arith.constant 1 : index
    %c0_212 = arith.constant 0 : index
    %c0_213 = arith.constant 0 : index
    %c0_214 = arith.constant 0 : index
    %282 = vector.load %arg10[%c1_211, %c0_212, %c0_213, %c0_214] : memref<2x4x1x16xf32, #tpu.memory_space<vmem>>, vector<1x1x1x16xf32>
    %283 = vector.shape_cast %282 : vector<1x1x1x16xf32> to vector<1x16xf32>
    %284 = vector.broadcast %283 : vector<1x16xf32> to vector<16x16xf32>
    %285 = arith.addf %281, %284 : vector<16x16xf32>
    %c1_215 = arith.constant 1 : index
    %c0_216 = arith.constant 0 : index
    %c0_217 = arith.constant 0 : index
    %c0_218 = arith.constant 0 : index
    %286 = vector.load %arg8[%c1_215, %c0_216, %c0_217, %c0_218] : memref<2x4x64x16xbf16, #tpu.memory_space<vmem>>, vector<1x1x64x16xbf16>
    %287 = vector.shape_cast %286 : vector<1x1x64x16xbf16> to vector<64x16xbf16>
    %cst_219 = arith.constant dense<0.000000e+00> : vector<16x16xf32>
    %288 = tpu.matmul %278, %287, %cst_219 {dimension_numbers = #tpu.dot_dimension_numbers<[1], [0], [0], [1], [0, 0, 1, 1], [], []>} : vector<16x64xbf16>, vector<64x16xbf16>, vector<16x16xf32> -> vector<16x16xf32>
    %c1_220 = arith.constant 1 : index
    %c0_221 = arith.constant 0 : index
    %c0_222 = arith.constant 0 : index
    %c0_223 = arith.constant 0 : index
    %289 = vector.load %arg11[%c1_220, %c0_221, %c0_222, %c0_223] : memref<2x4x1x16xf32, #tpu.memory_space<vmem>>, vector<1x1x1x16xf32>
    %290 = vector.shape_cast %289 : vector<1x1x1x16xf32> to vector<1x16xf32>
    %291 = vector.broadcast %290 : vector<1x16xf32> to vector<16x16xf32>
    %292 = arith.addf %288, %291 : vector<16x16xf32>
    %c1_224 = arith.constant 1 : index
    %c0_225 = arith.constant 0 : index
    %c0_226 = arith.constant 0 : index
    %c0_227 = arith.constant 0 : index
    %293 = vector.load %arg9[%c1_224, %c0_225, %c0_226, %c0_227] : memref<2x4x64x16xbf16, #tpu.memory_space<vmem>>, vector<1x1x64x16xbf16>
    %294 = vector.shape_cast %293 : vector<1x1x64x16xbf16> to vector<64x16xbf16>
    %cst_228 = arith.constant dense<0.000000e+00> : vector<16x16xf32>
    %295 = tpu.matmul %278, %294, %cst_228 {dimension_numbers = #tpu.dot_dimension_numbers<[1], [0], [0], [1], [0, 0, 1, 1], [], []>} : vector<16x64xbf16>, vector<64x16xbf16>, vector<16x16xf32> -> vector<16x16xf32>
    %c1_229 = arith.constant 1 : index
    %c0_230 = arith.constant 0 : index
    %c0_231 = arith.constant 0 : index
    %c0_232 = arith.constant 0 : index
    %296 = vector.load %arg12[%c1_229, %c0_230, %c0_231, %c0_232] : memref<2x4x1x16xf32, #tpu.memory_space<vmem>>, vector<1x1x1x16xf32>
    %297 = vector.shape_cast %296 : vector<1x1x1x16xf32> to vector<1x16xf32>
    %298 = vector.broadcast %297 : vector<1x16xf32> to vector<16x16xf32>
    %299 = arith.addf %295, %298 : vector<16x16xf32>
    %cst_233 = arith.constant dense<0.000000e+00> : vector<16x16xf32>
    %300 = tpu.matmul %285, %292, %cst_233 {dimension_numbers = #tpu.dot_dimension_numbers<[1], [1], [0], [0], [0, 0, 1, 0], [], []>} : vector<16x16xf32>, vector<16x16xf32>, vector<16x16xf32> -> vector<16x16xf32>
    %cst_234 = arith.constant 2.500000e-01 : f32
    %301 = vector.broadcast %cst_234 : f32 to vector<16x16xf32>
    %302 = arith.mulf %300, %301 : vector<16x16xf32>
    %303 = arith.addf %302, %6 : vector<16x16xf32>
    %cst_235 = arith.constant dense<0xFF800000> : vector<16xf32>
    %304 = vector.multi_reduction <maximumf>, %303, %cst_235 [1] : vector<16x16xf32> to vector<16xf32>
    %305 = vector.shape_cast %304 : vector<16xf32> to vector<16x1xf32>
    %306 = vector.broadcast %305 : vector<16x1xf32> to vector<16x16xf32>
    %307 = arith.subf %303, %306 : vector<16x16xf32>
    %308 = math.exp %307 : vector<16x16xf32>
    %cst_236 = arith.constant dense<0.000000e+00> : vector<16xf32>
    %309 = vector.multi_reduction <add>, %308, %cst_236 [1] : vector<16x16xf32> to vector<16xf32>
    %310 = vector.shape_cast %309 : vector<16xf32> to vector<16x1xf32>
    %311 = tpu.reciprocal %310 {approx = true} : vector<16x1xf32> -> vector<16x1xf32>
    %312 = vector.broadcast %311 : vector<16x1xf32> to vector<16x16xf32>
    %313 = arith.mulf %308, %312 : vector<16x16xf32>
    %cst_237 = arith.constant dense<0.000000e+00> : vector<16x16xf32>
    %314 = tpu.matmul %313, %299, %cst_237 {dimension_numbers = #tpu.dot_dimension_numbers<[1], [0], [0], [1], [0, 0, 1, 1], [], []>} : vector<16x16xf32>, vector<16x16xf32>, vector<16x16xf32> -> vector<16x16xf32>
    %315 = arith.truncf %314 : vector<16x16xf32> to vector<16x16xbf16>
    %c1_238 = arith.constant 1 : index
    %c0_239 = arith.constant 0 : index
    %c0_240 = arith.constant 0 : index
    %c0_241 = arith.constant 0 : index
    %316 = vector.load %arg13[%c1_238, %c0_239, %c0_240, %c0_241] : memref<2x4x16x64xbf16, #tpu.memory_space<vmem>>, vector<1x1x16x64xbf16>
    %317 = vector.shape_cast %316 : vector<1x1x16x64xbf16> to vector<16x64xbf16>
    %cst_242 = arith.constant dense<0.000000e+00> : vector<16x64xf32>
    %318 = tpu.matmul %315, %317, %cst_242 {dimension_numbers = #tpu.dot_dimension_numbers<[1], [0], [0], [1], [0, 0, 1, 1], [], []>} : vector<16x16xbf16>, vector<16x64xbf16>, vector<16x64xf32> -> vector<16x64xf32>
    %c1_243 = arith.constant 1 : index
    %c1_244 = arith.constant 1 : index
    %c0_245 = arith.constant 0 : index
    %c0_246 = arith.constant 0 : index
    %319 = vector.load %arg7[%c1_243, %c1_244, %c0_245, %c0_246] : memref<2x4x64x16xbf16, #tpu.memory_space<vmem>>, vector<1x1x64x16xbf16>
    %320 = vector.shape_cast %319 : vector<1x1x64x16xbf16> to vector<64x16xbf16>
    %cst_247 = arith.constant dense<0.000000e+00> : vector<16x16xf32>
    %321 = tpu.matmul %278, %320, %cst_247 {dimension_numbers = #tpu.dot_dimension_numbers<[1], [0], [0], [1], [0, 0, 1, 1], [], []>} : vector<16x64xbf16>, vector<64x16xbf16>, vector<16x16xf32> -> vector<16x16xf32>
    %c1_248 = arith.constant 1 : index
    %c1_249 = arith.constant 1 : index
    %c0_250 = arith.constant 0 : index
    %c0_251 = arith.constant 0 : index
    %322 = vector.load %arg10[%c1_248, %c1_249, %c0_250, %c0_251] : memref<2x4x1x16xf32, #tpu.memory_space<vmem>>, vector<1x1x1x16xf32>
    %323 = vector.shape_cast %322 : vector<1x1x1x16xf32> to vector<1x16xf32>
    %324 = vector.broadcast %323 : vector<1x16xf32> to vector<16x16xf32>
    %325 = arith.addf %321, %324 : vector<16x16xf32>
    %c1_252 = arith.constant 1 : index
    %c1_253 = arith.constant 1 : index
    %c0_254 = arith.constant 0 : index
    %c0_255 = arith.constant 0 : index
    %326 = vector.load %arg8[%c1_252, %c1_253, %c0_254, %c0_255] : memref<2x4x64x16xbf16, #tpu.memory_space<vmem>>, vector<1x1x64x16xbf16>
    %327 = vector.shape_cast %326 : vector<1x1x64x16xbf16> to vector<64x16xbf16>
    %cst_256 = arith.constant dense<0.000000e+00> : vector<16x16xf32>
    %328 = tpu.matmul %278, %327, %cst_256 {dimension_numbers = #tpu.dot_dimension_numbers<[1], [0], [0], [1], [0, 0, 1, 1], [], []>} : vector<16x64xbf16>, vector<64x16xbf16>, vector<16x16xf32> -> vector<16x16xf32>
    %c1_257 = arith.constant 1 : index
    %c1_258 = arith.constant 1 : index
    %c0_259 = arith.constant 0 : index
    %c0_260 = arith.constant 0 : index
    %329 = vector.load %arg11[%c1_257, %c1_258, %c0_259, %c0_260] : memref<2x4x1x16xf32, #tpu.memory_space<vmem>>, vector<1x1x1x16xf32>
    %330 = vector.shape_cast %329 : vector<1x1x1x16xf32> to vector<1x16xf32>
    %331 = vector.broadcast %330 : vector<1x16xf32> to vector<16x16xf32>
    %332 = arith.addf %328, %331 : vector<16x16xf32>
    %c1_261 = arith.constant 1 : index
    %c1_262 = arith.constant 1 : index
    %c0_263 = arith.constant 0 : index
    %c0_264 = arith.constant 0 : index
    %333 = vector.load %arg9[%c1_261, %c1_262, %c0_263, %c0_264] : memref<2x4x64x16xbf16, #tpu.memory_space<vmem>>, vector<1x1x64x16xbf16>
    %334 = vector.shape_cast %333 : vector<1x1x64x16xbf16> to vector<64x16xbf16>
    %cst_265 = arith.constant dense<0.000000e+00> : vector<16x16xf32>
    %335 = tpu.matmul %278, %334, %cst_265 {dimension_numbers = #tpu.dot_dimension_numbers<[1], [0], [0], [1], [0, 0, 1, 1], [], []>} : vector<16x64xbf16>, vector<64x16xbf16>, vector<16x16xf32> -> vector<16x16xf32>
    %c1_266 = arith.constant 1 : index
    %c1_267 = arith.constant 1 : index
    %c0_268 = arith.constant 0 : index
    %c0_269 = arith.constant 0 : index
    %336 = vector.load %arg12[%c1_266, %c1_267, %c0_268, %c0_269] : memref<2x4x1x16xf32, #tpu.memory_space<vmem>>, vector<1x1x1x16xf32>
    %337 = vector.shape_cast %336 : vector<1x1x1x16xf32> to vector<1x16xf32>
    %338 = vector.broadcast %337 : vector<1x16xf32> to vector<16x16xf32>
    %339 = arith.addf %335, %338 : vector<16x16xf32>
    %cst_270 = arith.constant dense<0.000000e+00> : vector<16x16xf32>
    %340 = tpu.matmul %325, %332, %cst_270 {dimension_numbers = #tpu.dot_dimension_numbers<[1], [1], [0], [0], [0, 0, 1, 0], [], []>} : vector<16x16xf32>, vector<16x16xf32>, vector<16x16xf32> -> vector<16x16xf32>
    %cst_271 = arith.constant 2.500000e-01 : f32
    %341 = vector.broadcast %cst_271 : f32 to vector<16x16xf32>
    %342 = arith.mulf %340, %341 : vector<16x16xf32>
    %343 = arith.addf %342, %6 : vector<16x16xf32>
    %cst_272 = arith.constant dense<0xFF800000> : vector<16xf32>
    %344 = vector.multi_reduction <maximumf>, %343, %cst_272 [1] : vector<16x16xf32> to vector<16xf32>
    %345 = vector.shape_cast %344 : vector<16xf32> to vector<16x1xf32>
    %346 = vector.broadcast %345 : vector<16x1xf32> to vector<16x16xf32>
    %347 = arith.subf %343, %346 : vector<16x16xf32>
    %348 = math.exp %347 : vector<16x16xf32>
    %cst_273 = arith.constant dense<0.000000e+00> : vector<16xf32>
    %349 = vector.multi_reduction <add>, %348, %cst_273 [1] : vector<16x16xf32> to vector<16xf32>
    %350 = vector.shape_cast %349 : vector<16xf32> to vector<16x1xf32>
    %351 = tpu.reciprocal %350 {approx = true} : vector<16x1xf32> -> vector<16x1xf32>
    %352 = vector.broadcast %351 : vector<16x1xf32> to vector<16x16xf32>
    %353 = arith.mulf %348, %352 : vector<16x16xf32>
    %cst_274 = arith.constant dense<0.000000e+00> : vector<16x16xf32>
    %354 = tpu.matmul %353, %339, %cst_274 {dimension_numbers = #tpu.dot_dimension_numbers<[1], [0], [0], [1], [0, 0, 1, 1], [], []>} : vector<16x16xf32>, vector<16x16xf32>, vector<16x16xf32> -> vector<16x16xf32>
    %355 = arith.truncf %354 : vector<16x16xf32> to vector<16x16xbf16>
    %c1_275 = arith.constant 1 : index
    %c1_276 = arith.constant 1 : index
    %c0_277 = arith.constant 0 : index
    %c0_278 = arith.constant 0 : index
    %356 = vector.load %arg13[%c1_275, %c1_276, %c0_277, %c0_278] : memref<2x4x16x64xbf16, #tpu.memory_space<vmem>>, vector<1x1x16x64xbf16>
    %357 = vector.shape_cast %356 : vector<1x1x16x64xbf16> to vector<16x64xbf16>
    %cst_279 = arith.constant dense<0.000000e+00> : vector<16x64xf32>
    %358 = tpu.matmul %355, %357, %cst_279 {dimension_numbers = #tpu.dot_dimension_numbers<[1], [0], [0], [1], [0, 0, 1, 1], [], []>} : vector<16x16xbf16>, vector<16x64xbf16>, vector<16x64xf32> -> vector<16x64xf32>
    %359 = arith.addf %318, %358 : vector<16x64xf32>
    %c1_280 = arith.constant 1 : index
    %c2_281 = arith.constant 2 : index
    %c0_282 = arith.constant 0 : index
    %c0_283 = arith.constant 0 : index
    %360 = vector.load %arg7[%c1_280, %c2_281, %c0_282, %c0_283] : memref<2x4x64x16xbf16, #tpu.memory_space<vmem>>, vector<1x1x64x16xbf16>
    %361 = vector.shape_cast %360 : vector<1x1x64x16xbf16> to vector<64x16xbf16>
    %cst_284 = arith.constant dense<0.000000e+00> : vector<16x16xf32>
    %362 = tpu.matmul %278, %361, %cst_284 {dimension_numbers = #tpu.dot_dimension_numbers<[1], [0], [0], [1], [0, 0, 1, 1], [], []>} : vector<16x64xbf16>, vector<64x16xbf16>, vector<16x16xf32> -> vector<16x16xf32>
    %c1_285 = arith.constant 1 : index
    %c2_286 = arith.constant 2 : index
    %c0_287 = arith.constant 0 : index
    %c0_288 = arith.constant 0 : index
    %363 = vector.load %arg10[%c1_285, %c2_286, %c0_287, %c0_288] : memref<2x4x1x16xf32, #tpu.memory_space<vmem>>, vector<1x1x1x16xf32>
    %364 = vector.shape_cast %363 : vector<1x1x1x16xf32> to vector<1x16xf32>
    %365 = vector.broadcast %364 : vector<1x16xf32> to vector<16x16xf32>
    %366 = arith.addf %362, %365 : vector<16x16xf32>
    %c1_289 = arith.constant 1 : index
    %c2_290 = arith.constant 2 : index
    %c0_291 = arith.constant 0 : index
    %c0_292 = arith.constant 0 : index
    %367 = vector.load %arg8[%c1_289, %c2_290, %c0_291, %c0_292] : memref<2x4x64x16xbf16, #tpu.memory_space<vmem>>, vector<1x1x64x16xbf16>
    %368 = vector.shape_cast %367 : vector<1x1x64x16xbf16> to vector<64x16xbf16>
    %cst_293 = arith.constant dense<0.000000e+00> : vector<16x16xf32>
    %369 = tpu.matmul %278, %368, %cst_293 {dimension_numbers = #tpu.dot_dimension_numbers<[1], [0], [0], [1], [0, 0, 1, 1], [], []>} : vector<16x64xbf16>, vector<64x16xbf16>, vector<16x16xf32> -> vector<16x16xf32>
    %c1_294 = arith.constant 1 : index
    %c2_295 = arith.constant 2 : index
    %c0_296 = arith.constant 0 : index
    %c0_297 = arith.constant 0 : index
    %370 = vector.load %arg11[%c1_294, %c2_295, %c0_296, %c0_297] : memref<2x4x1x16xf32, #tpu.memory_space<vmem>>, vector<1x1x1x16xf32>
    %371 = vector.shape_cast %370 : vector<1x1x1x16xf32> to vector<1x16xf32>
    %372 = vector.broadcast %371 : vector<1x16xf32> to vector<16x16xf32>
    %373 = arith.addf %369, %372 : vector<16x16xf32>
    %c1_298 = arith.constant 1 : index
    %c2_299 = arith.constant 2 : index
    %c0_300 = arith.constant 0 : index
    %c0_301 = arith.constant 0 : index
    %374 = vector.load %arg9[%c1_298, %c2_299, %c0_300, %c0_301] : memref<2x4x64x16xbf16, #tpu.memory_space<vmem>>, vector<1x1x64x16xbf16>
    %375 = vector.shape_cast %374 : vector<1x1x64x16xbf16> to vector<64x16xbf16>
    %cst_302 = arith.constant dense<0.000000e+00> : vector<16x16xf32>
    %376 = tpu.matmul %278, %375, %cst_302 {dimension_numbers = #tpu.dot_dimension_numbers<[1], [0], [0], [1], [0, 0, 1, 1], [], []>} : vector<16x64xbf16>, vector<64x16xbf16>, vector<16x16xf32> -> vector<16x16xf32>
    %c1_303 = arith.constant 1 : index
    %c2_304 = arith.constant 2 : index
    %c0_305 = arith.constant 0 : index
    %c0_306 = arith.constant 0 : index
    %377 = vector.load %arg12[%c1_303, %c2_304, %c0_305, %c0_306] : memref<2x4x1x16xf32, #tpu.memory_space<vmem>>, vector<1x1x1x16xf32>
    %378 = vector.shape_cast %377 : vector<1x1x1x16xf32> to vector<1x16xf32>
    %379 = vector.broadcast %378 : vector<1x16xf32> to vector<16x16xf32>
    %380 = arith.addf %376, %379 : vector<16x16xf32>
    %cst_307 = arith.constant dense<0.000000e+00> : vector<16x16xf32>
    %381 = tpu.matmul %366, %373, %cst_307 {dimension_numbers = #tpu.dot_dimension_numbers<[1], [1], [0], [0], [0, 0, 1, 0], [], []>} : vector<16x16xf32>, vector<16x16xf32>, vector<16x16xf32> -> vector<16x16xf32>
    %cst_308 = arith.constant 2.500000e-01 : f32
    %382 = vector.broadcast %cst_308 : f32 to vector<16x16xf32>
    %383 = arith.mulf %381, %382 : vector<16x16xf32>
    %384 = arith.addf %383, %6 : vector<16x16xf32>
    %cst_309 = arith.constant dense<0xFF800000> : vector<16xf32>
    %385 = vector.multi_reduction <maximumf>, %384, %cst_309 [1] : vector<16x16xf32> to vector<16xf32>
    %386 = vector.shape_cast %385 : vector<16xf32> to vector<16x1xf32>
    %387 = vector.broadcast %386 : vector<16x1xf32> to vector<16x16xf32>
    %388 = arith.subf %384, %387 : vector<16x16xf32>
    %389 = math.exp %388 : vector<16x16xf32>
    %cst_310 = arith.constant dense<0.000000e+00> : vector<16xf32>
    %390 = vector.multi_reduction <add>, %389, %cst_310 [1] : vector<16x16xf32> to vector<16xf32>
    %391 = vector.shape_cast %390 : vector<16xf32> to vector<16x1xf32>
    %392 = tpu.reciprocal %391 {approx = true} : vector<16x1xf32> -> vector<16x1xf32>
    %393 = vector.broadcast %392 : vector<16x1xf32> to vector<16x16xf32>
    %394 = arith.mulf %389, %393 : vector<16x16xf32>
    %cst_311 = arith.constant dense<0.000000e+00> : vector<16x16xf32>
    %395 = tpu.matmul %394, %380, %cst_311 {dimension_numbers = #tpu.dot_dimension_numbers<[1], [0], [0], [1], [0, 0, 1, 1], [], []>} : vector<16x16xf32>, vector<16x16xf32>, vector<16x16xf32> -> vector<16x16xf32>
    %396 = arith.truncf %395 : vector<16x16xf32> to vector<16x16xbf16>
    %c1_312 = arith.constant 1 : index
    %c2_313 = arith.constant 2 : index
    %c0_314 = arith.constant 0 : index
    %c0_315 = arith.constant 0 : index
    %397 = vector.load %arg13[%c1_312, %c2_313, %c0_314, %c0_315] : memref<2x4x16x64xbf16, #tpu.memory_space<vmem>>, vector<1x1x16x64xbf16>
    %398 = vector.shape_cast %397 : vector<1x1x16x64xbf16> to vector<16x64xbf16>
    %cst_316 = arith.constant dense<0.000000e+00> : vector<16x64xf32>
    %399 = tpu.matmul %396, %398, %cst_316 {dimension_numbers = #tpu.dot_dimension_numbers<[1], [0], [0], [1], [0, 0, 1, 1], [], []>} : vector<16x16xbf16>, vector<16x64xbf16>, vector<16x64xf32> -> vector<16x64xf32>
    %400 = arith.addf %359, %399 : vector<16x64xf32>
    %c1_317 = arith.constant 1 : index
    %c3_318 = arith.constant 3 : index
    %c0_319 = arith.constant 0 : index
    %c0_320 = arith.constant 0 : index
    %401 = vector.load %arg7[%c1_317, %c3_318, %c0_319, %c0_320] : memref<2x4x64x16xbf16, #tpu.memory_space<vmem>>, vector<1x1x64x16xbf16>
    %402 = vector.shape_cast %401 : vector<1x1x64x16xbf16> to vector<64x16xbf16>
    %cst_321 = arith.constant dense<0.000000e+00> : vector<16x16xf32>
    %403 = tpu.matmul %278, %402, %cst_321 {dimension_numbers = #tpu.dot_dimension_numbers<[1], [0], [0], [1], [0, 0, 1, 1], [], []>} : vector<16x64xbf16>, vector<64x16xbf16>, vector<16x16xf32> -> vector<16x16xf32>
    %c1_322 = arith.constant 1 : index
    %c3_323 = arith.constant 3 : index
    %c0_324 = arith.constant 0 : index
    %c0_325 = arith.constant 0 : index
    %404 = vector.load %arg10[%c1_322, %c3_323, %c0_324, %c0_325] : memref<2x4x1x16xf32, #tpu.memory_space<vmem>>, vector<1x1x1x16xf32>
    %405 = vector.shape_cast %404 : vector<1x1x1x16xf32> to vector<1x16xf32>
    %406 = vector.broadcast %405 : vector<1x16xf32> to vector<16x16xf32>
    %407 = arith.addf %403, %406 : vector<16x16xf32>
    %c1_326 = arith.constant 1 : index
    %c3_327 = arith.constant 3 : index
    %c0_328 = arith.constant 0 : index
    %c0_329 = arith.constant 0 : index
    %408 = vector.load %arg8[%c1_326, %c3_327, %c0_328, %c0_329] : memref<2x4x64x16xbf16, #tpu.memory_space<vmem>>, vector<1x1x64x16xbf16>
    %409 = vector.shape_cast %408 : vector<1x1x64x16xbf16> to vector<64x16xbf16>
    %cst_330 = arith.constant dense<0.000000e+00> : vector<16x16xf32>
    %410 = tpu.matmul %278, %409, %cst_330 {dimension_numbers = #tpu.dot_dimension_numbers<[1], [0], [0], [1], [0, 0, 1, 1], [], []>} : vector<16x64xbf16>, vector<64x16xbf16>, vector<16x16xf32> -> vector<16x16xf32>
    %c1_331 = arith.constant 1 : index
    %c3_332 = arith.constant 3 : index
    %c0_333 = arith.constant 0 : index
    %c0_334 = arith.constant 0 : index
    %411 = vector.load %arg11[%c1_331, %c3_332, %c0_333, %c0_334] : memref<2x4x1x16xf32, #tpu.memory_space<vmem>>, vector<1x1x1x16xf32>
    %412 = vector.shape_cast %411 : vector<1x1x1x16xf32> to vector<1x16xf32>
    %413 = vector.broadcast %412 : vector<1x16xf32> to vector<16x16xf32>
    %414 = arith.addf %410, %413 : vector<16x16xf32>
    %c1_335 = arith.constant 1 : index
    %c3_336 = arith.constant 3 : index
    %c0_337 = arith.constant 0 : index
    %c0_338 = arith.constant 0 : index
    %415 = vector.load %arg9[%c1_335, %c3_336, %c0_337, %c0_338] : memref<2x4x64x16xbf16, #tpu.memory_space<vmem>>, vector<1x1x64x16xbf16>
    %416 = vector.shape_cast %415 : vector<1x1x64x16xbf16> to vector<64x16xbf16>
    %cst_339 = arith.constant dense<0.000000e+00> : vector<16x16xf32>
    %417 = tpu.matmul %278, %416, %cst_339 {dimension_numbers = #tpu.dot_dimension_numbers<[1], [0], [0], [1], [0, 0, 1, 1], [], []>} : vector<16x64xbf16>, vector<64x16xbf16>, vector<16x16xf32> -> vector<16x16xf32>
    %c1_340 = arith.constant 1 : index
    %c3_341 = arith.constant 3 : index
    %c0_342 = arith.constant 0 : index
    %c0_343 = arith.constant 0 : index
    %418 = vector.load %arg12[%c1_340, %c3_341, %c0_342, %c0_343] : memref<2x4x1x16xf32, #tpu.memory_space<vmem>>, vector<1x1x1x16xf32>
    %419 = vector.shape_cast %418 : vector<1x1x1x16xf32> to vector<1x16xf32>
    %420 = vector.broadcast %419 : vector<1x16xf32> to vector<16x16xf32>
    %421 = arith.addf %417, %420 : vector<16x16xf32>
    %cst_344 = arith.constant dense<0.000000e+00> : vector<16x16xf32>
    %422 = tpu.matmul %407, %414, %cst_344 {dimension_numbers = #tpu.dot_dimension_numbers<[1], [1], [0], [0], [0, 0, 1, 0], [], []>} : vector<16x16xf32>, vector<16x16xf32>, vector<16x16xf32> -> vector<16x16xf32>
    %cst_345 = arith.constant 2.500000e-01 : f32
    %423 = vector.broadcast %cst_345 : f32 to vector<16x16xf32>
    %424 = arith.mulf %422, %423 : vector<16x16xf32>
    %425 = arith.addf %424, %6 : vector<16x16xf32>
    %cst_346 = arith.constant dense<0xFF800000> : vector<16xf32>
    %426 = vector.multi_reduction <maximumf>, %425, %cst_346 [1] : vector<16x16xf32> to vector<16xf32>
    %427 = vector.shape_cast %426 : vector<16xf32> to vector<16x1xf32>
    %428 = vector.broadcast %427 : vector<16x1xf32> to vector<16x16xf32>
    %429 = arith.subf %425, %428 : vector<16x16xf32>
    %430 = math.exp %429 : vector<16x16xf32>
    %cst_347 = arith.constant dense<0.000000e+00> : vector<16xf32>
    %431 = vector.multi_reduction <add>, %430, %cst_347 [1] : vector<16x16xf32> to vector<16xf32>
    %432 = vector.shape_cast %431 : vector<16xf32> to vector<16x1xf32>
    %433 = tpu.reciprocal %432 {approx = true} : vector<16x1xf32> -> vector<16x1xf32>
    %434 = vector.broadcast %433 : vector<16x1xf32> to vector<16x16xf32>
    %435 = arith.mulf %430, %434 : vector<16x16xf32>
    %cst_348 = arith.constant dense<0.000000e+00> : vector<16x16xf32>
    %436 = tpu.matmul %435, %421, %cst_348 {dimension_numbers = #tpu.dot_dimension_numbers<[1], [0], [0], [1], [0, 0, 1, 1], [], []>} : vector<16x16xf32>, vector<16x16xf32>, vector<16x16xf32> -> vector<16x16xf32>
    %437 = arith.truncf %436 : vector<16x16xf32> to vector<16x16xbf16>
    %c1_349 = arith.constant 1 : index
    %c3_350 = arith.constant 3 : index
    %c0_351 = arith.constant 0 : index
    %c0_352 = arith.constant 0 : index
    %438 = vector.load %arg13[%c1_349, %c3_350, %c0_351, %c0_352] : memref<2x4x16x64xbf16, #tpu.memory_space<vmem>>, vector<1x1x16x64xbf16>
    %439 = vector.shape_cast %438 : vector<1x1x16x64xbf16> to vector<16x64xbf16>
    %cst_353 = arith.constant dense<0.000000e+00> : vector<16x64xf32>
    %440 = tpu.matmul %437, %439, %cst_353 {dimension_numbers = #tpu.dot_dimension_numbers<[1], [0], [0], [1], [0, 0, 1, 1], [], []>} : vector<16x16xbf16>, vector<16x64xbf16>, vector<16x64xf32> -> vector<16x64xf32>
    %441 = arith.addf %400, %440 : vector<16x64xf32>
    %442 = arith.addf %253, %441 : vector<16x64xf32>
    %c1_354 = arith.constant 1 : index
    %c0_355 = arith.constant 0 : index
    %c0_356 = arith.constant 0 : index
    %443 = vector.load %arg14[%c1_354, %c0_355, %c0_356] : memref<2x1x64xf32, #tpu.memory_space<vmem>>, vector<1x1x64xf32>
    %444 = vector.shape_cast %443 : vector<1x1x64xf32> to vector<1x64xf32>
    %445 = vector.broadcast %444 : vector<1x64xf32> to vector<16x64xf32>
    %446 = arith.addf %442, %445 : vector<16x64xf32>
    %c1_357 = arith.constant 1 : index
    %c0_358 = arith.constant 0 : index
    %c0_359 = arith.constant 0 : index
    %447 = vector.load %arg15[%c1_357, %c0_358, %c0_359] : memref<2x1x64xf32, #tpu.memory_space<vmem>>, vector<1x1x64xf32>
    %448 = vector.shape_cast %447 : vector<1x1x64xf32> to vector<1x64xf32>
    %c1_360 = arith.constant 1 : index
    %c0_361 = arith.constant 0 : index
    %c0_362 = arith.constant 0 : index
    %449 = vector.load %arg16[%c1_360, %c0_361, %c0_362] : memref<2x1x64xf32, #tpu.memory_space<vmem>>, vector<1x1x64xf32>
    %450 = vector.shape_cast %449 : vector<1x1x64xf32> to vector<1x64xf32>
    %cst_363 = arith.constant dense<0.000000e+00> : vector<16xf32>
    %451 = vector.multi_reduction <add>, %446, %cst_363 [1] : vector<16x64xf32> to vector<16xf32>
    %452 = vector.shape_cast %451 : vector<16xf32> to vector<16x1xf32>
    %cst_364 = arith.constant 6.400000e+01 : f32
    %453 = vector.broadcast %cst_364 : f32 to vector<16x1xf32>
    %454 = arith.divf %452, %453 : vector<16x1xf32>
    %455 = vector.broadcast %454 : vector<16x1xf32> to vector<16x64xf32>
    %456 = arith.subf %446, %455 : vector<16x64xf32>
    %457 = arith.mulf %456, %456 : vector<16x64xf32>
    %cst_365 = arith.constant dense<0.000000e+00> : vector<16xf32>
    %458 = vector.multi_reduction <add>, %457, %cst_365 [1] : vector<16x64xf32> to vector<16xf32>
    %459 = vector.shape_cast %458 : vector<16xf32> to vector<16x1xf32>
    %cst_366 = arith.constant 6.400000e+01 : f32
    %460 = vector.broadcast %cst_366 : f32 to vector<16x1xf32>
    %461 = arith.divf %459, %460 : vector<16x1xf32>
    %cst_367 = arith.constant 9.99999997E-7 : f32
    %462 = vector.broadcast %cst_367 : f32 to vector<16x1xf32>
    %463 = arith.addf %461, %462 : vector<16x1xf32>
    %464 = math.rsqrt %463 : vector<16x1xf32>
    %465 = vector.broadcast %464 : vector<16x1xf32> to vector<16x64xf32>
    %466 = arith.mulf %456, %465 : vector<16x64xf32>
    %467 = vector.broadcast %448 : vector<1x64xf32> to vector<16x64xf32>
    %468 = arith.mulf %466, %467 : vector<16x64xf32>
    %469 = vector.broadcast %450 : vector<1x64xf32> to vector<16x64xf32>
    %470 = arith.addf %468, %469 : vector<16x64xf32>
    %471 = arith.truncf %470 : vector<16x64xf32> to vector<16x64xbf16>
    %c1_368 = arith.constant 1 : index
    %c0_369 = arith.constant 0 : index
    %c0_370 = arith.constant 0 : index
    %472 = vector.load %arg17[%c1_368, %c0_369, %c0_370] : memref<2x64x128xbf16, #tpu.memory_space<vmem>>, vector<1x64x128xbf16>
    %473 = vector.shape_cast %472 : vector<1x64x128xbf16> to vector<64x128xbf16>
    %cst_371 = arith.constant dense<0.000000e+00> : vector<16x128xf32>
    %474 = tpu.matmul %471, %473, %cst_371 {dimension_numbers = #tpu.dot_dimension_numbers<[1], [0], [0], [1], [0, 0, 1, 1], [], []>} : vector<16x64xbf16>, vector<64x128xbf16>, vector<16x128xf32> -> vector<16x128xf32>
    %c1_372 = arith.constant 1 : index
    %c0_373 = arith.constant 0 : index
    %c0_374 = arith.constant 0 : index
    %475 = vector.load %arg18[%c1_372, %c0_373, %c0_374] : memref<2x1x128xf32, #tpu.memory_space<vmem>>, vector<1x1x128xf32>
    %476 = vector.shape_cast %475 : vector<1x1x128xf32> to vector<1x128xf32>
    %477 = vector.broadcast %476 : vector<1x128xf32> to vector<16x128xf32>
    %478 = arith.addf %474, %477 : vector<16x128xf32>
    %479 = arith.mulf %478, %478 : vector<16x128xf32>
    %480 = arith.mulf %478, %479 : vector<16x128xf32>
    %cst_375 = arith.constant 4.471500e-02 : f32
    %481 = vector.broadcast %cst_375 : f32 to vector<16x128xf32>
    %482 = arith.mulf %481, %480 : vector<16x128xf32>
    %483 = arith.addf %478, %482 : vector<16x128xf32>
    %cst_376 = arith.constant 0.797884583 : f32
    %484 = vector.broadcast %cst_376 : f32 to vector<16x128xf32>
    %485 = arith.mulf %484, %483 : vector<16x128xf32>
    %486 = math.tanh %485 : vector<16x128xf32>
    %cst_377 = arith.constant 1.000000e+00 : f32
    %487 = vector.broadcast %cst_377 : f32 to vector<16x128xf32>
    %488 = arith.addf %487, %486 : vector<16x128xf32>
    %cst_378 = arith.constant 5.000000e-01 : f32
    %489 = vector.broadcast %cst_378 : f32 to vector<16x128xf32>
    %490 = arith.mulf %489, %488 : vector<16x128xf32>
    %491 = arith.mulf %478, %490 : vector<16x128xf32>
    %492 = arith.truncf %491 : vector<16x128xf32> to vector<16x128xbf16>
    %c1_379 = arith.constant 1 : index
    %c0_380 = arith.constant 0 : index
    %c0_381 = arith.constant 0 : index
    %493 = vector.load %arg19[%c1_379, %c0_380, %c0_381] : memref<2x128x64xbf16, #tpu.memory_space<vmem>>, vector<1x128x64xbf16>
    %494 = vector.shape_cast %493 : vector<1x128x64xbf16> to vector<128x64xbf16>
    %cst_382 = arith.constant dense<0.000000e+00> : vector<16x64xf32>
    %495 = tpu.matmul %492, %494, %cst_382 {dimension_numbers = #tpu.dot_dimension_numbers<[1], [0], [0], [1], [0, 0, 1, 1], [], []>} : vector<16x128xbf16>, vector<128x64xbf16>, vector<16x64xf32> -> vector<16x64xf32>
    %c1_383 = arith.constant 1 : index
    %c0_384 = arith.constant 0 : index
    %c0_385 = arith.constant 0 : index
    %496 = vector.load %arg20[%c1_383, %c0_384, %c0_385] : memref<2x1x64xf32, #tpu.memory_space<vmem>>, vector<1x1x64xf32>
    %497 = vector.shape_cast %496 : vector<1x1x64xf32> to vector<1x64xf32>
    %498 = vector.broadcast %497 : vector<1x64xf32> to vector<16x64xf32>
    %499 = arith.addf %495, %498 : vector<16x64xf32>
    %500 = arith.addf %446, %499 : vector<16x64xf32>
    %501 = vector.extract_strided_slice %500 {offsets = [0, 0], sizes = [1, 64], strides = [1, 1]} : vector<16x64xf32> to vector<1x64xf32>
    %502 = vector.extract_strided_slice %500 {offsets = [8, 0], sizes = [1, 64], strides = [1, 1]} : vector<16x64xf32> to vector<1x64xf32>
    %503 = tpu.concatenate %501, %502 in 0 : vector<1x64xf32>, vector<1x64xf32> -> vector<2x64xf32>
    %c0_386 = arith.constant 0 : index
    %c0_387 = arith.constant 0 : index
    %504 = vector.load %arg21[%c0_386, %c0_387] : memref<1x64xf32, #tpu.memory_space<vmem>>, vector<1x64xf32>
    %c0_388 = arith.constant 0 : index
    %c0_389 = arith.constant 0 : index
    %505 = vector.load %arg22[%c0_388, %c0_389] : memref<1x64xf32, #tpu.memory_space<vmem>>, vector<1x64xf32>
    %cst_390 = arith.constant dense<0.000000e+00> : vector<2xf32>
    %506 = vector.multi_reduction <add>, %503, %cst_390 [1] : vector<2x64xf32> to vector<2xf32>
    %507 = vector.shape_cast %506 : vector<2xf32> to vector<2x1xf32>
    %cst_391 = arith.constant 6.400000e+01 : f32
    %508 = vector.broadcast %cst_391 : f32 to vector<2x1xf32>
    %509 = arith.divf %507, %508 : vector<2x1xf32>
    %510 = vector.broadcast %509 : vector<2x1xf32> to vector<2x64xf32>
    %511 = arith.subf %503, %510 : vector<2x64xf32>
    %512 = arith.mulf %511, %511 : vector<2x64xf32>
    %cst_392 = arith.constant dense<0.000000e+00> : vector<2xf32>
    %513 = vector.multi_reduction <add>, %512, %cst_392 [1] : vector<2x64xf32> to vector<2xf32>
    %514 = vector.shape_cast %513 : vector<2xf32> to vector<2x1xf32>
    %cst_393 = arith.constant 6.400000e+01 : f32
    %515 = vector.broadcast %cst_393 : f32 to vector<2x1xf32>
    %516 = arith.divf %514, %515 : vector<2x1xf32>
    %cst_394 = arith.constant 9.99999997E-7 : f32
    %517 = vector.broadcast %cst_394 : f32 to vector<2x1xf32>
    %518 = arith.addf %516, %517 : vector<2x1xf32>
    %519 = math.rsqrt %518 : vector<2x1xf32>
    %520 = vector.broadcast %519 : vector<2x1xf32> to vector<2x64xf32>
    %521 = arith.mulf %511, %520 : vector<2x64xf32>
    %522 = vector.broadcast %504 : vector<1x64xf32> to vector<2x64xf32>
    %523 = arith.mulf %521, %522 : vector<2x64xf32>
    %524 = vector.broadcast %505 : vector<1x64xf32> to vector<2x64xf32>
    %525 = arith.addf %523, %524 : vector<2x64xf32>
    %c0_395 = arith.constant 0 : index
    %c0_396 = arith.constant 0 : index
    %c0_397 = arith.constant 0 : index
    %526 = vector.load %arg23[%c0_395, %c0_396, %c0_397] : memref<2x1x64xf32, #tpu.memory_space<vmem>>, vector<2x1x64xf32>
    %527 = vector.shape_cast %526 : vector<2x1x64xf32> to vector<2x64xf32>
    %528 = vector.shape_cast %525 : vector<2x64xf32> to vector<2x1x64xf32>
    tpu.vector_store %arg23[%c0_395, %c0_396, %c0_397], %528 {strides = array<i32>} : memref<2x1x64xf32, #tpu.memory_space<vmem>>, vector<2x1x64xf32>,
    return
  }
  func.func @transform_0(%arg0: i32) -> (i32, i32) {
    %c0_i32 = arith.constant 0 : i32
    %c0_i32_0 = arith.constant 0 : i32
    return %arg0, %c0_i32 : i32, i32
  }
  func.func @transform_1(%arg0: i32) -> (i32, i32) {
    %c0_i32 = arith.constant 0 : i32
    %c0_i32_0 = arith.constant 0 : i32
    %c0_i32_1 = arith.constant 0 : i32
    return %c0_i32, %c0_i32_0 : i32, i32
  }
  func.func @transform_2(%arg0: i32) -> (i32, i32) {
    %c0_i32 = arith.constant 0 : i32
    %c0_i32_0 = arith.constant 0 : i32
    %c0_i32_1 = arith.constant 0 : i32
    return %c0_i32, %c0_i32_0 : i32, i32
  }
  func.func @transform_3(%arg0: i32) -> (i32, i32) {
    %c0_i32 = arith.constant 0 : i32
    %c0_i32_0 = arith.constant 0 : i32
    %c0_i32_1 = arith.constant 0 : i32
    return %c0_i32, %c0_i32_0 : i32, i32
  }
  func.func @transform_4(%arg0: i32) -> (i32, i32, i32) {
    %c0_i32 = arith.constant 0 : i32
    %c0_i32_0 = arith.constant 0 : i32
    %c0_i32_1 = arith.constant 0 : i32
    %c0_i32_2 = arith.constant 0 : i32
    return %c0_i32, %c0_i32_0, %c0_i32_1 : i32, i32, i32
  }
  func.func @transform_5(%arg0: i32) -> (i32, i32, i32) {
    %c0_i32 = arith.constant 0 : i32
    %c0_i32_0 = arith.constant 0 : i32
    %c0_i32_1 = arith.constant 0 : i32
    %c0_i32_2 = arith.constant 0 : i32
    return %c0_i32, %c0_i32_0, %c0_i32_1 : i32, i32, i32
  }
  func.func @transform_6(%arg0: i32) -> (i32, i32, i32, i32) {
    %c0_i32 = arith.constant 0 : i32
    %c0_i32_0 = arith.constant 0 : i32
    %c0_i32_1 = arith.constant 0 : i32
    %c0_i32_2 = arith.constant 0 : i32
    %c0_i32_3 = arith.constant 0 : i32
    return %c0_i32, %c0_i32_0, %c0_i32_1, %c0_i32_2 : i32, i32, i32, i32
  }
  func.func @transform_7(%arg0: i32) -> (i32, i32, i32, i32) {
    %c0_i32 = arith.constant 0 : i32
    %c0_i32_0 = arith.constant 0 : i32
    %c0_i32_1 = arith.constant 0 : i32
    %c0_i32_2 = arith.constant 0 : i32
    %c0_i32_3 = arith.constant 0 : i32
    return %c0_i32, %c0_i32_0, %c0_i32_1, %c0_i32_2 : i32, i32, i32, i32
  }
  func.func @transform_8(%arg0: i32) -> (i32, i32, i32, i32) {
    %c0_i32 = arith.constant 0 : i32
    %c0_i32_0 = arith.constant 0 : i32
    %c0_i32_1 = arith.constant 0 : i32
    %c0_i32_2 = arith.constant 0 : i32
    %c0_i32_3 = arith.constant 0 : i32
    return %c0_i32, %c0_i32_0, %c0_i32_1, %c0_i32_2 : i32, i32, i32, i32
  }
  func.func @transform_9(%arg0: i32) -> (i32, i32, i32, i32) {
    %c0_i32 = arith.constant 0 : i32
    %c0_i32_0 = arith.constant 0 : i32
    %c0_i32_1 = arith.constant 0 : i32
    %c0_i32_2 = arith.constant 0 : i32
    %c0_i32_3 = arith.constant 0 : i32
    return %c0_i32, %c0_i32_0, %c0_i32_1, %c0_i32_2 : i32, i32, i32, i32
  }
  func.func @transform_10(%arg0: i32) -> (i32, i32, i32, i32) {
    %c0_i32 = arith.constant 0 : i32
    %c0_i32_0 = arith.constant 0 : i32
    %c0_i32_1 = arith.constant 0 : i32
    %c0_i32_2 = arith.constant 0 : i32
    %c0_i32_3 = arith.constant 0 : i32
    return %c0_i32, %c0_i32_0, %c0_i32_1, %c0_i32_2 : i32, i32, i32, i32
  }
  func.func @transform_11(%arg0: i32) -> (i32, i32, i32, i32) {
    %c0_i32 = arith.constant 0 : i32
    %c0_i32_0 = arith.constant 0 : i32
    %c0_i32_1 = arith.constant 0 : i32
    %c0_i32_2 = arith.constant 0 : i32
    %c0_i32_3 = arith.constant 0 : i32
    return %c0_i32, %c0_i32_0, %c0_i32_1, %c0_i32_2 : i32, i32, i32, i32
  }
  func.func @transform_12(%arg0: i32) -> (i32, i32, i32, i32) {
    %c0_i32 = arith.constant 0 : i32
    %c0_i32_0 = arith.constant 0 : i32
    %c0_i32_1 = arith.constant 0 : i32
    %c0_i32_2 = arith.constant 0 : i32
    %c0_i32_3 = arith.constant 0 : i32
    return %c0_i32, %c0_i32_0, %c0_i32_1, %c0_i32_2 : i32, i32, i32, i32
  }
  func.func @transform_13(%arg0: i32) -> (i32, i32, i32) {
    %c0_i32 = arith.constant 0 : i32
    %c0_i32_0 = arith.constant 0 : i32
    %c0_i32_1 = arith.constant 0 : i32
    %c0_i32_2 = arith.constant 0 : i32
    return %c0_i32, %c0_i32_0, %c0_i32_1 : i32, i32, i32
  }
  func.func @transform_14(%arg0: i32) -> (i32, i32, i32) {
    %c0_i32 = arith.constant 0 : i32
    %c0_i32_0 = arith.constant 0 : i32
    %c0_i32_1 = arith.constant 0 : i32
    %c0_i32_2 = arith.constant 0 : i32
    return %c0_i32, %c0_i32_0, %c0_i32_1 : i32, i32, i32
  }
  func.func @transform_15(%arg0: i32) -> (i32, i32, i32) {
    %c0_i32 = arith.constant 0 : i32
    %c0_i32_0 = arith.constant 0 : i32
    %c0_i32_1 = arith.constant 0 : i32
    %c0_i32_2 = arith.constant 0 : i32
    return %c0_i32, %c0_i32_0, %c0_i32_1 : i32, i32, i32
  }
  func.func @transform_16(%arg0: i32) -> (i32, i32, i32) {
    %c0_i32 = arith.constant 0 : i32
    %c0_i32_0 = arith.constant 0 : i32
    %c0_i32_1 = arith.constant 0 : i32
    %c0_i32_2 = arith.constant 0 : i32
    return %c0_i32, %c0_i32_0, %c0_i32_1 : i32, i32, i32
  }
  func.func @transform_17(%arg0: i32) -> (i32, i32, i32) {
    %c0_i32 = arith.constant 0 : i32
    %c0_i32_0 = arith.constant 0 : i32
    %c0_i32_1 = arith.constant 0 : i32
    %c0_i32_2 = arith.constant 0 : i32
    return %c0_i32, %c0_i32_0, %c0_i32_1 : i32, i32, i32
  }
  func.func @transform_18(%arg0: i32) -> (i32, i32, i32) {
    %c0_i32 = arith.constant 0 : i32
    %c0_i32_0 = arith.constant 0 : i32
    %c0_i32_1 = arith.constant 0 : i32
    %c0_i32_2 = arith.constant 0 : i32
    return %c0_i32, %c0_i32_0, %c0_i32_1 : i32, i32, i32
  }
  func.func @transform_19(%arg0: i32) -> (i32, i32, i32) {
    %c0_i32 = arith.constant 0 : i32
    %c0_i32_0 = arith.constant 0 : i32
    %c0_i32_1 = arith.constant 0 : i32
    %c0_i32_2 = arith.constant 0 : i32
    return %c0_i32, %c0_i32_0, %c0_i32_1 : i32, i32, i32
  }
  func.func @transform_20(%arg0: i32) -> (i32, i32) {
    %c0_i32 = arith.constant 0 : i32
    %c0_i32_0 = arith.constant 0 : i32
    %c0_i32_1 = arith.constant 0 : i32
    return %c0_i32, %c0_i32_0 : i32, i32
  }
  func.func @transform_21(%arg0: i32) -> (i32, i32) {
    %c0_i32 = arith.constant 0 : i32
    %c0_i32_0 = arith.constant 0 : i32
    %c0_i32_1 = arith.constant 0 : i32
    return %c0_i32, %c0_i32_0 : i32, i32
  }
  func.func @transform_22(%arg0: i32) -> (i32, i32, i32) {
    %c0_i32 = arith.constant 0 : i32
    %c0_i32_0 = arith.constant 0 : i32
    %c0_i32_1 = arith.constant 0 : i32
    return %arg0, %c0_i32, %c0_i32_0 : i32, i32, i32
  }
}

</mosaic_0001>

<bundles_post_ra>
// kernel: vit_branch_forward.1
= control target key start
LH: loop header
LB: loop body
LE: loop exit
PB: predicated region body
PF: predicated region fallthrough
CT: control target
= control target key end

     0   :  { %s8263_s0 = inlined_call_operand.vmem [shape: f32[16,768], index: 0, kind: input, shape index: {}]   ;;  %s8264_s1 = inlined_call_operand.vmem [shape: f32[16,64], index: 1, kind: input, shape index: {}]   ;;  %s8265_s2 = inlined_call_operand.vmem [shape: f32[16,16], index: 2, kind: input, shape index: {}]   ;;  %s8266_s3 = inlined_call_operand.vmem [shape: bf16[768,64], index: 3, kind: input, shape index: {}]   ;;  %s8267_s4 = inlined_call_operand.vmem [shape: f32[2,1,64], index: 4, kind: input, shape index: {}]   ;;  %s8268_s5 = inlined_call_operand.vmem [shape: f32[2,1,64], index: 5, kind: input, shape index: {}]   ;;  %s8269_s6 = inlined_call_operand.vmem [shape: bf16[2,4,64,16], index: 6, kind: input, shape index: {}]   ;;  %s8270_s7 = inlined_call_operand.vmem [shape: bf16[2,4,64,16], index: 7, kind: input, shape index: {}]   ;;  %s8271_s8 = inlined_call_operand.vmem [shape: bf16[2,4,64,16], index: 8, kind: input, shape index: {}]   ;;  %s8272_s9 = inlined_call_operand.vmem [shape: f32[2,4,1,16], index: 9, kind: input, shape index: {}]   ;;  %s8273_s10 = inlined_call_operand.vmem [shape: f32[2,4,1,16], index: 10, kind: input, shape index: {}]   ;;  %s8274_s11 = inlined_call_operand.vmem [shape: f32[2,4,1,16], index: 11, kind: input, shape index: {}]   ;;  %s8275_s12 = inlined_call_operand.vmem [shape: bf16[2,4,16,64], index: 12, kind: input, shape index: {}]   ;;  %s8276_s13 = inlined_call_operand.vmem [shape: f32[2,1,64], index: 13, kind: input, shape index: {}]   ;;  %s8277_s14 = inlined_call_operand.vmem [shape: f32[2,1,64], index: 14, kind: input, shape index: {}]   ;;  %s8278_s15 = inlined_call_operand.vmem [shape: f32[2,1,64], index: 15, kind: input, shape index: {}]   ;;  %s8279_s16 = inlined_call_operand.vmem [shape: bf16[2,64,128], index: 16, kind: input, shape index: {}]   ;;  %s8280_s17 = inlined_call_operand.vmem [shape: f32[2,1,128], index: 17, kind: input, shape index: {}]   ;;  %s8281_s18 = inlined_call_operand.vmem [shape: bf16[2,128,64], index: 18, kind: input, shape index: {}]   ;;  %s8282_s19 = inlined_call_operand.vmem [shape: f32[2,1,64], index: 19, kind: input, shape index: {}]   ;;  %s8283_s20 = inlined_call_operand.vmem [shape: f32[1,64], index: 20, kind: input, shape index: {}]   ;;  %s8284_s21 = inlined_call_operand.vmem [shape: f32[1,64], index: 21, kind: input, shape index: {}]   ;;  %s8285_s22 = inlined_call_operand.hbm [shape: f32[2,1,64], index: 22, kind: output, shape index: {}]  }
   0x1   :  { %8293 = sst [smem:[#allocation5_spill]] %s8263_s0 }
   0x2   :  { %8294 = sst [smem:[#allocation6_spill]] %s8264_s1 }
   0x3   :  { %8295 = sst [smem:[#allocation7_spill]] %s8265_s2 }
   0x4   :  { %8296 = sst [smem:[#allocation8_spill]] %s8266_s3 }
   0x5   :  { %8297 = sst [smem:[#allocation9_spill]] %s8267_s4 }
   0x6   :  { %8298 = sst [smem:[#allocation10_spill]] %s8268_s5 }
   0x7   :  { %8299 = sst [smem:[#allocation11_spill]] %s8269_s6 }
   0x8   :  { %s8300_s29 = sld [smem:[#allocation8_spill]] }
   0x9   :  { %s8301_s24 = sld [smem:[#allocation5_spill]] }
   0xe   :  { %v6630_v0 = vld [vmem:[%s8300_s29 + $0x78] sm:$0xff]   ;;  %v6634_v4 = vld [vmem:[%s8300_s29 + $0x70] sm:$0xff]   ;;  %v6638_v8 = vld [vmem:[%s8300_s29 + $0x68] sm:$0xff]  }
   0xf   :  { %v6631_v1 = vld [vmem:[%s8300_s29 + $0x38] sm:$0xff]   ;;  %5818 = vmatprep.subr.bf16.mxu0 %v6630_v0  ;;  %v6635_v5 = vld [vmem:[%s8300_s29 + $0x30] sm:$0xff]   ;;  %v6639_v9 = vld [vmem:[%s8300_s29 + $0x28] sm:$0xff]  }
  0x10   :  { %v6632_v2 = vld [vmem:[%s8300_s29 + $0xf8] sm:$0xff]   ;;  %5819 = vmatpush3.bf16.msra.mxu0 %v6631_v1  ;;  %v6636_v6 = vld [vmem:[%s8300_s29 + $0xf0] sm:$0xff]   ;;  %v6640_v10 = vld [vmem:[%s8300_s29 + $0xe8] sm:$0xff]  }
  0x11   :  { %v6633_v3 = vld [vmem:[%s8300_s29 + $0xb8] sm:$0xff]   ;;  %5840 = vmatprep.subr.bf16.mxu1 %v6632_v2  ;;  %5820 = vmatprep.subr.bf16.mxu0 %v6634_v4  ;;  %v6637_v7 = vld [vmem:[%s8300_s29 + $0xb0] sm:$0xff]   ;;  %v6641_v11 = vld [vmem:[%s8300_s29 + $0xa8] sm:$0xff]  }
  0x12   :  { %5841 = vmatpush3.bf16.msra.mxu1 %v6633_v3  ;;  %v6642_v12 = vld [vmem:[%s8300_s29 + $0x60] sm:$0xff]   ;;  %v6646_v16 = vld [vmem:[%s8300_s29 + $0x58] sm:$0xff]   ;;  %v6650_v20 = vld [vmem:[%s8300_s29 + $0x50] sm:$0xff]  }
  0x13   :  { %5842 = vmatprep.subr.bf16.mxu1 %v6636_v6  ;;  %v6643_v13 = vld [vmem:[%s8300_s29 + $0x20] sm:$0xff]   ;;  %v6647_v17 = vld [vmem:[%s8300_s29 + $0x18] sm:$0xff]   ;;  %v6651_v21 = vld [vmem:[%s8300_s29 + $0x10] sm:$0xff]  }
  0x14   :  { %5821 = vmatpush3.bf16.msra.mxu0 %v6635_v5  ;;  %v6644_v14 = vld [vmem:[%s8300_s29 + $0xe0] sm:$0xff]   ;;  %v6648_v18 = vld [vmem:[%s8300_s29 + $0xd8] sm:$0xff]   ;;  %v6652_v22 = vld [vmem:[%s8300_s29 + $0xd0] sm:$0xff]  }
  0x15   :  { %5822 = vmatprep.subr.bf16.mxu0 %v6638_v8  ;;  %v6645_v15 = vld [vmem:[%s8300_s29 + $0xa0] sm:$0xff]   ;;  %v6649_v19 = vld [vmem:[%s8300_s29 + $0x98] sm:$0xff]   ;;  %v6653_v23 = vld [vmem:[%s8300_s29 + $0x90] sm:$0xff]  }
  0x16   :  { %5843 = vmatpush3.bf16.msra.mxu1 %v6637_v7  ;;  %v6654_v24 = vld [vmem:[%s8300_s29 + $0x48] sm:$0xff]   ;;  %v6658_v28 = vld [vmem:[%s8300_s29 + $0x40] sm:$0xff]   ;;  %v80_v32 = vld [vmem:[%s8301_s24 + $0x38] sm:$0xff] }
  0x17   :  { %5844 = vmatprep.subr.bf16.mxu1 %v6640_v10  ;;  %v6655_v25 = vld [vmem:[%s8300_s29 + $0x8] sm:$0xff]   ;;  %v6659_v29 = vld [vmem:[%s8300_s29] sm:$0xff]   ;;  %v79_v36 = vld [vmem:[%s8301_s24 + $0x30] sm:$0xff] }
  0x18   :  { %5823 = vmatpush3.bf16.msra.mxu0 %v6639_v9  ;;  %v6656_v26 = vld [vmem:[%s8300_s29 + $0xc8] sm:$0xff]   ;;  %v6660_v30 = vld [vmem:[%s8300_s29 + $0xc0] sm:$0xff]   ;;  %v6662_v38 = vld [vmem:[%s8300_s29 + $0x178] sm:$0xff]  }
  0x19   :  { %5824 = vmatprep.subr.bf16.mxu0 %v6642_v12  ;;  %v6657_v27 = vld [vmem:[%s8300_s29 + $0x88] sm:$0xff]   ;;  %v6661_v34 = vld [vmem:[%s8300_s29 + $0x80] sm:$0xff]   ;;  %v76_v39 = vld [vmem:[%s8301_s24 + $0x18] sm:$0xff] }
  0x1a   :  { %5845 = vmatpush3.bf16.msra.mxu1 %v6641_v11  ;;  %v74_v31 = vld [vmem:[%s8301_s24 + $0x8] sm:$0xff]  ;;  %v73_v35 = vld [vmem:[%s8301_s24] sm:$0xff]  ;;  %v6663_v42 = vld [vmem:[%s8300_s29 + $0x138] sm:$0xff]  }
  0x1b   :  { %5846 = vmatprep.subr.bf16.mxu1 %v6644_v14  ;;  %v86_v33 = vpack.c.bf16 %v80_v32, %v74_v31  ;;  %v85_v37 = vpack.c.bf16 %v79_v36, %v73_v35  ;;  %v82_v40 = vld [vmem:[%s8301_s24 + $0x48] sm:$0xff]  ;;  %v75_v43 = vld [vmem:[%s8301_s24 + $0x10] sm:$0xff]  ;;  %v81_v44 = vld [vmem:[%s8301_s24 + $0x40] sm:$0xff] }
  0x1c   :  { %5825 = vmatpush3.bf16.msra.mxu0 %v6643_v13  ;;  %v88_v41 = vpack.c.bf16 %v82_v40, %v76_v39  ;;  %v87_v45 = vpack.c.bf16 %v81_v44, %v75_v43  ;;  %v6664_v46 = vld [vmem:[%s8300_s29 + $0x170] sm:$0xff]   ;;  %v6666_v48 = vld [vmem:[%s8300_s29 + $0x168] sm:$0xff]   ;;  %v6668_v50 = vld [vmem:[%s8300_s29 + $0x160] sm:$0xff]  }
  0x1d   :  { %5826 = vmatprep.subr.bf16.mxu0 %v6646_v16  ;;  %509 = vmatprep.mubr.bf16.mxu0 %v86_v33  ;;  %v6665_v47 = vld [vmem:[%s8300_s29 + $0x130] sm:$0xff]   ;;  %v6667_v49 = vld [vmem:[%s8300_s29 + $0x128] sm:$0xff]   ;;  %v6669_v51 = vld [vmem:[%s8300_s29 + $0x120] sm:$0xff]  }
  0x1e   :  { %5847 = vmatpush3.bf16.msra.mxu1 %v6645_v15  ;;  %550 = vmatprep.mubr.bf16.mxu1 %v88_v41  ;;  %v6670_v52 = vld [vmem:[%s8300_s29 + $0x158] sm:$0xff]   ;;  %v6672_v54 = vld [vmem:[%s8300_s29 + $0x150] sm:$0xff]   ;;  %v78_v55 = vld [vmem:[%s8301_s24 + $0x28] sm:$0xff] }
  0x1f   :  { %5848 = vmatprep.subr.bf16.mxu1 %v6648_v18  ;;  %v6671_v53 = vld [vmem:[%s8300_s29 + $0x118] sm:$0xff]   ;;  %v6673_v56 = vld [vmem:[%s8300_s29 + $0x110] sm:$0xff]   ;;  %v6674_v58 = vld [vmem:[%s8300_s29 + $0x148] sm:$0xff]  }
  0x20   :  { %5827 = vmatpush3.bf16.msra.mxu0 %v6647_v17  ;;  %v84_v57 = vld [vmem:[%s8301_s24 + $0x58] sm:$0xff]  ;;  %v6675_v60 = vld [vmem:[%s8300_s29 + $0x108] sm:$0xff]   ;;  %v6676_v61 = vld [vmem:[%s8300_s29 + $0x140] sm:$0xff]  }
  0x21   :  { %5828 = vmatprep.subr.bf16.mxu0 %v6650_v20  ;;  %v90_v59 = vpack.c.bf16 %v84_v57, %v78_v55  ;;  %v6677_v62 = vld [vmem:[%s8300_s29 + $0x100] sm:$0xff]   ;;  %v83_v0 = vld [vmem:[%s8301_s24 + $0x50] sm:$0xff] }
  0x22   :  { %5849 = vmatpush3.bf16.msra.mxu1 %v6649_v19  ;;  %v77_v63 = vld [vmem:[%s8301_s24 + $0x20] sm:$0xff] }
  0x23   :  { %5850 = vmatprep.subr.bf16.mxu1 %v6652_v22  ;;  %v89_v1 = vpack.c.bf16 %v83_v0, %v77_v63 }
  0x24   :  { %5829 = vmatpush3.bf16.msra.mxu0 %v6651_v21 }
  0x25   :  { %5830 = vmatprep.subr.bf16.mxu0 %v6654_v24 }
  0x26   :  { %5851 = vmatpush3.bf16.msra.mxu1 %v6653_v23 }
  0x27   :  { %5852 = vmatprep.subr.bf16.mxu1 %v6656_v26 }
  0x28   :  { %5831 = vmatpush3.bf16.msra.mxu0 %v6655_v25 }
  0x29   :  { %5832 = vmatprep.subr.bf16.mxu0 %v6658_v28 }
  0x2a   :  { %5853 = vmatpush3.bf16.msra.mxu1 %v6657_v27 }
  0x2b   :  { %5854 = vmatprep.subr.bf16.mxu1 %v6660_v30 }
  0x2c   :  { %5833 = vmatpush3.bf16.msra.mxu0 %v6659_v29 }
  0x2d   :  { %5862 = vmatprep.subr.bf16.mxu0 %v6662_v38 }
  0x2e   :  { %5855 = vmatpush3.bf16.msra.mxu1 %v6661_v34 }
  0x2f   :  { %510 = vmatmul.mubr.bf16.vlgmr.msra.gmra.mxu0 %v85_v37 }
  0x30   :  { %5863 = vmatpush3.bf16.msra.mxu0 %v6663_v42  ;;  %591 = vmatprep.mubr.bf16.mxu0 %v90_v59 }
  0x31   :  { %551 = vmatmul.mubr.bf16.vlgmr.msra.gmra.mxu1 %v87_v45  ;;  %5864 = vmatprep.subr.bf16.mxu0 %v6664_v46 }
  0x34   :  { %5865 = vmatpush3.bf16.msra.mxu0 %v6665_v47 }
  0x35   :  { %5866 = vmatprep.subr.bf16.mxu0 %v6666_v48 }
  0x38   :  { %5867 = vmatpush3.bf16.msra.mxu0 %v6667_v49 }
  0x39   :  { %5868 = vmatprep.subr.bf16.mxu0 %v6668_v50 }
  0x3c   :  { %5869 = vmatpush3.bf16.msra.mxu0 %v6669_v51 }
  0x3d   :  { %5870 = vmatprep.subr.bf16.mxu0 %v6670_v52 }
  0x40   :  { %5871 = vmatpush3.bf16.msra.mxu0 %v6671_v53 }
  0x41   :  { %5872 = vmatprep.subr.bf16.mxu0 %v6672_v54 }
  0x44   :  { %5873 = vmatpush3.bf16.msra.mxu0 %v6673_v56 }
  0x45   :  { %5874 = vmatprep.subr.bf16.mxu0 %v6674_v58 }
  0x48   :  { %5875 = vmatpush3.bf16.msra.mxu0 %v6675_v60 }
  0x49   :  { %5876 = vmatprep.subr.bf16.mxu0 %v6676_v61 }
  0x4c   :  { %5877 = vmatpush3.bf16.msra.mxu0 %v6677_v62 }
  0x4f   :  { %592 = vmatmul.mubr.bf16.vlgmr.msra.gmra.mxu0 %v89_v1 }
  0x50   :  { %27 = vsyncpa [#allocation3], 0  ;;  %s8302_s3 = sld [smem:[#allocation6_spill]]  ;;  %vm604_vm0 = vcmask 523264   ;;  %v6679_v41 = vld [vmem:[%s8271_s8 + $0x18] sm:$0xff]   ;;  %v6920_v42 = vmov 0.0  }
  0x51   :  { %s8303_s0 = sld [smem:[#allocation11_spill]]  ;;  %6112 = vmatprep.subr.bf16.mxu1 %v6920_v42  ;;  %6136 = vmatprep.subr.bf16.mxu0 %v6920_v42  ;;  %v6681_v44 = vld [vmem:[%s8271_s8 + $0x10] sm:$0xff]   ;;  %v6683_v46 = vld [vmem:[%s8271_s8 + $0x8] sm:$0xff]   ;;  %v6685_v48 = vld [vmem:[%s8271_s8] sm:$0xff]   ;;  %vm6921_vm1 = vmmov 0   ;;  %vm892_vm2 = vcmask 130048  }
  0x52   :  { %6137 = vmatpush3.bf16.msra.mxu0 %v6679_v41  ;;  %6120 = vmatprep.mubr.msk.bf16.mxu1 %vm6921_vm1, %v6920_v42  ;;  %s8304_s5 = sld [smem:[#allocation9_spill]]  ;;  %v6686_v1 = vld [vmem:[%s8270_s7 + $0x18] sm:$0xff]   ;;  %vm5210_vm3 = vcmask 1040384   ;;  %vm5214_vm4 = vcmask 517120   ;;  %vm5267_vm5 = vcmask 516096  }
  0x53   :  { %6138 = vmatprep.subr.bf16.mxu0 %v6920_v42  ;;  %6144 = vmatprep.mubr.msk.bf16.mxu0 %vm6921_vm1, %v6920_v42  ;;  %s8305_s26 = sld [smem:[#allocation10_spill]] }
  0x54   :  { %s8306_s27 = sld [smem:[#allocation7_spill]] }
  0x56   :  { %v187_v8 = vld [vmem:[%s8302_s3] sm:$0xff]  ;;  %v188_v14 = vld [vmem:[%s8302_s3 + $0x8] sm:$0xff]  ;;  %6139 = vmatpush3.bf16.msra.mxu0 %v6681_v44 }
  0x57   :  { %v6678_v40 = vld [vmem:[%s8303_s0 + $0x18] sm:$0xff]   ;;  %v6680_v43 = vld [vmem:[%s8303_s0 + $0x10] sm:$0xff]   ;;  %6140 = vmatprep.subr.bf16.mxu0 %v6920_v42  ;;  %v6682_v45 = vld [vmem:[%s8303_s0 + $0x8] sm:$0xff]  }
  0x58   :  { %6113 = vmatpush3.bf16.msra.mxu1 %v6678_v40  ;;  %v6684_v47 = vld [vmem:[%s8303_s0] sm:$0xff]  }
  0x59   :  { %6114 = vmatprep.subr.bf16.mxu1 %v6920_v42  ;;  %v5334_v57 = vld [vmem:[%s8304_s5] ss:$0 sm:$0xff] }
  0x5a   :  { %6141 = vmatpush3.bf16.msra.mxu0 %v6683_v46  ;;  %v5335_v61 = vld [vmem:[%s8305_s26] ss:$0 sm:$0xff]  ;;  %v7353_v41 = vld [vmem:[%s8306_s27 + $0x8] sm:$0xff] }
  0x5b   :  { %6142 = vmatprep.subr.bf16.mxu0 %v6920_v42 }
  0x5c   :  { %6115 = vmatpush3.bf16.msra.mxu1 %v6680_v43 }
  0x5d   :  { %6116 = vmatprep.subr.bf16.mxu1 %v6920_v42 }
  0x5e   :  { %6143 = vmatpush3.bf16.msra.mxu0 %v6685_v48 }
  0x5f   :  { %6174 = vmatprep.subr.bf16.mxu0 %v6920_v42 }
  0x60   :  { %6117 = vmatpush3.bf16.msra.mxu1 %v6682_v45  ;;  %v7358_v45 = vld [vmem:[%s8306_s27] sm:$0xff] }
  0x61   :  { %6118 = vmatprep.subr.bf16.mxu1 %v6920_v42 }
  0x64   :  { %6119 = vmatpush3.bf16.msra.mxu1 %v6684_v47 }
  0x65   :  { %6124 = vmatprep.subr.bf16.mxu1 %v6920_v42 }
  0xef   :  { %v5834_v2 = vpop.f32.mrf.mxu0 }
  0xf1   :  { %v5835_v3 = vpop.f32.mrf.mxu0  ;;  %v5856_v4 = vpop.f32.mrf.mxu1 }
  0xf2   :  { %v5836_v7 = vadd.f32 %v5835_v3, %v5834_v2  ;;  %v6687_v2 = vld [vmem:[%s8270_s7 + $0x38] sm:$0xff]  }
  0xf3   :  { %v5837_v5 = vpop.f32.mrf.mxu0  ;;  %v5857_v6 = vpop.f32.mrf.mxu1 }
  0xf4   :  { %v512_v11 = vadd.f32 %v5836_v7, %v187_v8  ;;  %v5858_v12 = vadd.f32 %v5857_v6, %v5856_v4  ;;  %v6688_v4 = vld [vmem:[%s8270_s7 + $0x10] sm:$0xff]   ;;  %v6690_v6 = vld [vmem:[%s8270_s7 + $0x8] sm:$0xff]   ;;  %v6692_v8 = vld [vmem:[%s8270_s7] sm:$0xff]  }
  0xf5   :  { %v5838_v9 = vpop.f32.mrf.mxu0  ;;  %v5859_v10 = vpop.f32.mrf.mxu1  ;;  %v6691_v7 = vld [vmem:[%s8270_s7 + $0x28] sm:$0xff]  }
  0xf6   :  { %v5839_v13 = vadd.f32 %v5838_v9, %v5837_v5  ;;  %v553_v18 = vadd.f32 %v5858_v12, %v512_v11  ;;  %v6689_v5 = vld [vmem:[%s8270_s7 + $0x30] sm:$0xff]   ;;  %v6693_v9 = vld [vmem:[%s8270_s7 + $0x20] sm:$0xff]  }
  0xf7   :  { %v5860_v15 = vpop.f32.mrf.mxu1 }
  0xf8   :  { %v515_v19 = vadd.f32 %v5839_v13, %v188_v14  ;;  %v5861_v20 = vadd.f32 %v5860_v15, %v5859_v10  ;;  %v5336_v10 = vld [vmem:[%s8272_s9] ss:$0 sm:$0xff] }
  0xfa   :  { %v556_v25 = vadd.f32 %v5861_v20, %v515_v19 }
 0x10f   :  { %v5878_v16 = vpop.f32.mrf.mxu0 }
 0x111   :  { %v5879_v17 = vpop.f32.mrf.mxu0 }
 0x112   :  { %v5880_v21 = vadd.f32 %v5879_v17, %v5878_v16 }
 0x113   :  { %v5881_v22 = vpop.f32.mrf.mxu0 }
 0x114   :  { %v7227_v23 = vadd.f32 %v5880_v21, %v553_v18 }
 0x115   :  { %v5882_v24 = vpop.f32.mrf.mxu0 }
 0x116   :  { %v5883_v26 = vadd.f32 %v5882_v24, %v5881_v22  ;;  %v605_v27 = vsel %vm604_vm0, %v7227_v23, 0.0 }
 0x117   :  { %606 = vadd.xlane.f32.xlu0 %v605_v27 }
 0x118   :  { %v7231_v28 = vadd.f32 %v5883_v26, %v556_v25  ;;  %v5342_v25 = vld [vmem:[%s8273_s10] ss:$0 sm:$0xff]  ;;  %v5384_v26 = vld [vmem:[%s8273_s10 + $0x1] ss:$0 sm:$0xff] }
 0x11a   :  { %v608_v29 = vsel %vm604_vm0, %v7231_v28, 0.0 }
 0x11b   :  { %609 = vadd.xlane.f32.xlu0 %v608_v29 }
 0x1a0   :  { %v607_v30 = vpop.xlane.xlu0 %606 }
 0x1a1   :  { %v612_v31 = vmul.f32 0.015625, %v607_v30 }
 0x1a3   :  { %v614_v32 = vsub.f32 %v7227_v23, %v612_v31 }
 0x1a4   :  { %v610_v33 = vpop.xlane.xlu0 %609 }
 0x1a5   :  { %v613_v34 = vmul.f32 0.015625, %v610_v33  ;;  %v616_v35 = vmul.f32 %v614_v32, %v614_v32 }
 0x1a7   :  { %v615_v36 = vsub.f32 %v7231_v28, %v613_v34  ;;  %v618_v37 = vsel %vm604_vm0, %v616_v35, 0.0 }
 0x1a8   :  { %619 = vadd.xlane.f32.xlu1 %v618_v37 }
 0x1a9   :  { %v617_v38 = vmul.f32 %v615_v36, %v615_v36 }
 0x1ab   :  { %v621_v39 = vsel %vm604_vm0, %v617_v38, 0.0 }
 0x1ac   :  { %622 = vadd.xlane.f32.xlu1 %v621_v39 }
 0x231   :  { %v620_v49 = vpop.xlane.xlu1 %619 }
 0x232   :  { %v624_v50 = vmul.f32 0.015625, %v620_v49 }
 0x234   :  { %v626_v51 = vadd.f32 1e-06, %v624_v50 }
 0x235   :  { %v623_v52 = vpop.xlane.xlu1 %622 }
 0x236   :  { %6806 = vrsqrt.f32 %v626_v51  ;;  %v625_v53 = vmul.f32 0.015625, %v623_v52 }
 0x238   :  { %v627_v54 = vadd.f32 1e-06, %v625_v53 }
 0x23a   :  { %6808 = vrsqrt.f32 %v627_v54 }
 0x243   :  { %v6807_v55 = vpop.eup %6806 }
 0x244   :  { %v630_v56 = vmul.f32 %v6807_v55, %v614_v32 }
 0x246   :  { %v638_v59 = vmul.f32 %v5334_v57, %v630_v56 }
 0x247   :  { %v6809_v58 = vpop.eup %6808 }
 0x248   :  { %v631_v60 = vmul.f32 %v6809_v58, %v615_v36  ;;  %v646_v63 = vadd.f32 %v5335_v61, %v638_v59  ;;  %v5348_v36 = vld [vmem:[%s8274_s11] ss:$0 sm:$0xff] }
 0x24a   :  { %v639_v62 = vmul.f32 %v5334_v57, %v631_v60 }
 0x24c   :  { %v647_v0 = vadd.f32 %v5335_v61, %v639_v62 }
 0x24e   :  { %v7289_v3 = vpack.c.bf16 %v647_v0, %v646_v63 }
 0x250   :  { %6121 = vmatmul.mubr.msk.bf16.vlgmr.msra.gmra.mxu1 %vm604_vm0, %v7289_v3  ;;  %6145 = vmatmul.mubr.msk.bf16.vlgmr.msra.gmra.mxu0 %vm604_vm0, %v7289_v3 }
 0x251   :  { %6125 = vmatpush3.bf16.msra.mxu1 %v6686_v1  ;;  %6175 = vmatpush3.bf16.msra.mxu0 %v6687_v2  ;;  %v6694_v2 = vld [vmem:[%s8303_s0 + $0x38] sm:$0xff]  }
 0x252   :  { %6126 = vmatprep.subr.bf16.mxu1 %v6920_v42  ;;  %6176 = vmatprep.subr.bf16.mxu0 %v6920_v42 }
 0x253   :  { %6132 = vmatprep.mubr.msk.bf16.mxu1 %vm6921_vm1, %v6920_v42  ;;  %6182 = vmatprep.mubr.msk.bf16.mxu0 %vm6921_vm1, %v6920_v42 }
 0x255   :  { %6127 = vmatpush3.bf16.msra.mxu1 %v6688_v4  ;;  %6177 = vmatpush3.bf16.msra.mxu0 %v6689_v5  ;;  %v6695_v5 = vld [vmem:[%s8303_s0 + $0x30] sm:$0xff]  }
 0x256   :  { %6128 = vmatprep.subr.bf16.mxu1 %v6920_v42  ;;  %6178 = vmatprep.subr.bf16.mxu0 %v6920_v42 }
 0x259   :  { %6129 = vmatpush3.bf16.msra.mxu1 %v6690_v6  ;;  %6179 = vmatpush3.bf16.msra.mxu0 %v6691_v7  ;;  %v6696_v6 = vld [vmem:[%s8303_s0 + $0x28] sm:$0xff]   ;;  %v6697_v7 = vld [vmem:[%s8303_s0 + $0x20] sm:$0xff]  }
 0x25a   :  { %6130 = vmatprep.subr.bf16.mxu1 %v6920_v42  ;;  %6180 = vmatprep.subr.bf16.mxu0 %v6920_v42 }
 0x25d   :  { %6131 = vmatpush3.bf16.msra.mxu1 %v6692_v8  ;;  %6181 = vmatpush3.bf16.msra.mxu0 %v6693_v9  ;;  %v6698_v8 = vld [vmem:[%s8271_s8 + $0x38] sm:$0xff]   ;;  %v6699_v9 = vld [vmem:[%s8271_s8 + $0x30] sm:$0xff]  }
 0x260   :  { %6133 = vmatmul.mubr.msk.bf16.vlgmr.msra.gmra.mxu1 %vm604_vm0, %v7289_v3  ;;  %6183 = vmatmul.mubr.msk.bf16.vlgmr.msra.gmra.mxu0 %vm604_vm0, %v7289_v3 }
 0x310   :  { %v725_v11 = vpop.f32.mrf.mxu1  ;;  %v885_v12 = vpop.f32.mrf.mxu0 }
 0x311   :  { %v726_v13 = vadd.f32 %v5336_v10, %v725_v11  ;;  %v886_v39 = vadd.f32 %v5348_v36, %v885_v12  ;;  %v6701_v11 = vld [vmem:[%s8271_s8 + $0x20] sm:$0xff]   ;;  %v6702_v12 = vld [vmem:[%s8270_s7 + $0x58] sm:$0xff]  }
 0x312   :  { %v6122_v14 = vpop.f32.mrf.mxu1  ;;  %v6146_v15 = vpop.f32.mrf.mxu0 }
 0x313   :  { %6152 = vmatprep.mubr.msk.f32.mxu1 %vm892_vm2, %v726_v13  ;;  %v6703_v13 = vld [vmem:[%s8270_s7 + $0x50] sm:$0xff]   ;;  %v6704_v14 = vld [vmem:[%s8270_s7 + $0x48] sm:$0xff]   ;;  %v6705_v15 = vld [vmem:[%s8270_s7 + $0x40] sm:$0xff]  }
 0x314   :  { %v728_v16 = vpop.f32.mrf.mxu1  ;;  %v888_v17 = vpop.f32.mrf.mxu0 }
 0x315   :  { %v889_v37 = vadd.f32 %v5348_v36, %v888_v17  ;;  %v729_v38 = vadd.f32 %v5336_v10, %v728_v16  ;;  %v6700_v10 = vld [vmem:[%s8271_s8 + $0x28] sm:$0xff]  }
 0x316   :  { %v6123_v18 = vpop.f32.mrf.mxu1  ;;  %v6147_v19 = vpop.f32.mrf.mxu0 }
 0x317   :  { %v5369_v19 = vld [vmem:[%s8272_s9 + $0x1] ss:$0 sm:$0xff] }
 0x320   :  { %v805_v20 = vpop.f32.mrf.mxu1  ;;  %v1247_v21 = vpop.f32.mrf.mxu0 }
 0x321   :  { %v806_v34 = vadd.f32 %v5342_v25, %v805_v20  ;;  %v1248_v35 = vadd.f32 %v5384_v26, %v1247_v21 }
 0x322   :  { %v6134_v22 = vpop.f32.mrf.mxu1  ;;  %v6184_v24 = vpop.f32.mrf.mxu0 }
 0x324   :  { %v808_v27 = vpop.f32.mrf.mxu1  ;;  %v1250_v29 = vpop.f32.mrf.mxu0 }
 0x325   :  { %v809_v30 = vadd.f32 %v5342_v25, %v808_v27  ;;  %v1251_v31 = vadd.f32 %v5384_v26, %v1250_v29 }
 0x326   :  { %v6135_v32 = vpop.f32.mrf.mxu1  ;;  %v6185_v33 = vpop.f32.mrf.mxu0 }
 0x327   :  { %6148 = vmatprep.subr.msk.mxu1 %vm892_vm2, %v809_v30  ;;  %6198 = vmatprep.subr.msk.mxu0 %vm892_vm2, %v1251_v31 }
 0x328   :  { %6149 = vmatpush3.xpose.msk.msra.mxu1 %vm892_vm2, %v809_v30  ;;  %6199 = vmatpush3.xpose.msk.msra.mxu0 %vm892_vm2, %v1251_v31  ;;  %v5399_v30 = vld [vmem:[%s8274_s11 + $0x1] ss:$0 sm:$0xff] }
 0x329   :  { %6150 = vmatprep.subr.msk.mxu1 %vm892_vm2, %v806_v34  ;;  %6200 = vmatprep.subr.msk.mxu0 %vm892_vm2, %v1248_v35 }
 0x32c   :  { %6151 = vmatpush3.xpose.msk.msra.mxu1 %vm892_vm2, %v806_v34  ;;  %6201 = vmatpush3.xpose.msk.msra.mxu0 %vm892_vm2, %v1248_v35 }
 0x32d   :  { %6155 = vmatprep.subr.mxu1 %v889_v37 }
 0x32f   :  { %6153 = vmatmul.mubr.msk.f32.vlgmr.msra.gmra.mxu1 %vm892_vm2, %v729_v38 }
 0x330   :  { %6156 = vmatpush3.msra.mxu1 %v889_v37  ;;  %v5441_v37 = vld [vmem:[%s8273_s10 + $0x2] ss:$0 sm:$0xff] }
 0x331   :  { %6157 = vmatprep.subr.mxu1 %v886_v39 }
 0x332   :  { %6158 = vmatpush3.msra.mxu1 %v886_v39 }
 0x333   :  { %6162 = vmatprep.subr.bf16.mxu1 %v6920_v42 }
 0x3ef   :  { %v6154_v40 = vpop.f32.mrf.mxu1 }
 0x3f0   :  { %v981_v43 = vmul.f32 0.25, %v6154_v40 }
 0x3f1   :  { %v971_v44 = vpop.f32.mrf.mxu1 }
 0x3f2   :  { %v980_v46 = vmul.f32 0.25, %v971_v44  ;;  %v983_v47 = vadd.f32 %v981_v43, %v7353_v41 }
 0x3f4   :  { %v987_v48 = vsel %vm892_vm2, %v983_v47, -inf  ;;  %v982_v49 = vadd.f32 %v980_v46, %v7358_v45 }
 0x3f5   :  { %988 = vmax.xlane.f32.xlu1 %v987_v48 }
 0x3f6   :  { %v984_v50 = vsel %vm892_vm2, %v982_v49, -inf }
 0x3f7   :  { %985 = vmax.xlane.f32.xlu0 %v984_v50 }
 0x47e   :  { %v989_v51 = vpop.xlane.xlu1 %988 }
 0x47f   :  { %v991_v52 = vsub.f32 %v983_v47, %v989_v51 }
 0x480   :  { %v986_v53 = vpop.xlane.xlu0 %985 }
 0x481   :  { %v994_v54 = vmul.f32 1.442695, %v991_v52  ;;  %v990_v55 = vsub.f32 %v982_v49, %v986_v53 }
 0x483   :  { %6810 = vpow2.f32 %v994_v54  ;;  %v992_v56 = vmul.f32 1.442695, %v990_v55 }
 0x485   :  { %6812 = vpow2.f32 %v992_v56 }
 0x490   :  { %v6811_v57 = vpop.eup %6810 }
 0x491   :  { %v999_v58 = vsel %vm892_vm2, %v6811_v57, 0.0 }
 0x492   :  { %v6813_v59 = vpop.eup %6812  ;;  %1000 = vadd.xlane.f32.xlu1 %v999_v58 }
 0x493   :  { %v996_v60 = vsel %vm892_vm2, %v6813_v59, 0.0 }
 0x494   :  { %997 = vadd.xlane.f32.xlu0 %v996_v60 }
 0x51b   :  { %v1001_v61 = vpop.xlane.xlu1 %1000 }
 0x51c   :  { %6814 = vrcp.f32 %v1001_v61 }
 0x51d   :  { %v998_v62 = vpop.xlane.xlu0 %997 }
 0x51e   :  { %6816 = vrcp.f32 %v998_v62 }
 0x529   :  { %v6815_v63 = vpop.eup %6814 }
 0x52a   :  { %v1005_v4 = vmul.f32 %v6815_v63, %v6811_v57 }
 0x52b   :  { %v6817_v0 = vpop.eup %6816 }
 0x52c   :  { %v1004_v1 = vmul.f32 %v6817_v0, %v6813_v59 }
 0x52e   :  { %6159 = vmatprep.mubr.msk.f32.mxu1 %vm892_vm2, %v1004_v1 }
 0x52f   :  { %6160 = vmatmul.mubr.msk.f32.vlgmr.msra.gmra.mxu1 %vm892_vm2, %v1005_v4 }
 0x530   :  { %6163 = vmatpush3.bf16.msra.mxu1 %v6694_v2  ;;  %6170 = vmatprep.mubr.msk.bf16.mxu1 %vm6921_vm1, %v6920_v42 }
 0x531   :  { %6164 = vmatprep.subr.bf16.mxu1 %v6920_v42 }
 0x534   :  { %6165 = vmatpush3.bf16.msra.mxu1 %v6695_v5 }
 0x535   :  { %6166 = vmatprep.subr.bf16.mxu1 %v6920_v42 }
 0x538   :  { %6167 = vmatpush3.bf16.msra.mxu1 %v6696_v6  ;;  %v6706_v6 = vld [vmem:[%s8275_s12 + $0x8] sm:$0xff]  }
 0x539   :  { %6168 = vmatprep.subr.bf16.mxu1 %v6920_v42 }
 0x53c   :  { %6169 = vmatpush3.bf16.msra.mxu1 %v6697_v7 }
 0x53d   :  { %6186 = vmatprep.subr.bf16.mxu1 %v6920_v42 }
 0x53f   :  { %6171 = vmatmul.mubr.msk.bf16.vlgmr.msra.gmra.mxu1 %vm604_vm0, %v7289_v3 }
 0x540   :  { %6187 = vmatpush3.bf16.msra.mxu1 %v6698_v8  ;;  %6194 = vmatprep.mubr.msk.bf16.mxu1 %vm6921_vm1, %v6920_v42 }
 0x541   :  { %6188 = vmatprep.subr.bf16.mxu1 %v6920_v42 }
 0x544   :  { %6189 = vmatpush3.bf16.msra.mxu1 %v6699_v9  ;;  %v6707_v9 = vld [vmem:[%s8275_s12] sm:$0xff]  }
 0x545   :  { %6190 = vmatprep.subr.bf16.mxu1 %v6920_v42 }
 0x548   :  { %6191 = vmatpush3.bf16.msra.mxu1 %v6700_v10 }
 0x549   :  { %6192 = vmatprep.subr.bf16.mxu1 %v6920_v42 }
 0x54c   :  { %6193 = vmatpush3.bf16.msra.mxu1 %v6701_v11  ;;  %v6708_v11 = vld [vmem:[%s8303_s0 + $0x58] sm:$0xff]  }
 0x54d   :  { %6236 = vmatprep.subr.bf16.mxu1 %v6920_v42 }
 0x54f   :  { %6195 = vmatmul.mubr.msk.bf16.vlgmr.msra.gmra.mxu1 %vm604_vm0, %v7289_v3 }
 0x550   :  { %6237 = vmatpush3.bf16.msra.mxu1 %v6702_v12  ;;  %6244 = vmatprep.mubr.msk.bf16.mxu1 %vm6921_vm1, %v6920_v42  ;;  %v6709_v12 = vld [vmem:[%s8303_s0 + $0x50] sm:$0xff]  }
 0x551   :  { %6238 = vmatprep.subr.bf16.mxu1 %v6920_v42 }
 0x554   :  { %6239 = vmatpush3.bf16.msra.mxu1 %v6703_v13  ;;  %v6710_v13 = vld [vmem:[%s8303_s0 + $0x48] sm:$0xff]  }
 0x555   :  { %6240 = vmatprep.subr.bf16.mxu1 %v6920_v42 }
 0x558   :  { %6241 = vmatpush3.bf16.msra.mxu1 %v6704_v14  ;;  %v6711_v14 = vld [vmem:[%s8303_s0 + $0x40] sm:$0xff]  }
 0x559   :  { %6242 = vmatprep.subr.bf16.mxu1 %v6920_v42 }
 0x55c   :  { %6243 = vmatpush3.bf16.msra.mxu1 %v6705_v15  ;;  %v6712_v15 = vld [vmem:[%s8271_s8 + $0x58] sm:$0xff]  }
 0x55f   :  { %6245 = vmatmul.mubr.msk.bf16.vlgmr.msra.gmra.mxu1 %vm604_vm0, %v7289_v3 }
 0x5ef   :  { %v7427_v16 = vpop.f32.mrf.mxu1 }
 0x5f1   :  { %v7429_v17 = vpop.f32.mrf.mxu1 }
 0x5f2   :  { %v1087_v18 = vpack.c.bf16 %v7427_v16, %v7429_v17  ;;  %v6713_v16 = vld [vmem:[%s8271_s8 + $0x50] sm:$0xff]   ;;  %v6714_v17 = vld [vmem:[%s8271_s8 + $0x48] sm:$0xff]  }
 0x5ff   :  { %v1165_v20 = vpop.f32.mrf.mxu1 }
 0x600   :  { %v1166_v21 = vadd.f32 %v5369_v19, %v1165_v20  ;;  %v6717_v20 = vld [vmem:[%s8303_s0 + $0x70] sm:$0xff]  }
 0x601   :  { %v6172_v22 = vpop.f32.mrf.mxu1 }
 0x602   :  { %6202 = vmatprep.mubr.msk.f32.mxu0 %vm892_vm2, %v1166_v21  ;;  %v6718_v21 = vld [vmem:[%s8303_s0 + $0x68] sm:$0xff]   ;;  %v6719_v22 = vld [vmem:[%s8303_s0 + $0x60] sm:$0xff]  }
 0x603   :  { %v1168_v24 = vpop.f32.mrf.mxu1 }
 0x604   :  { %v1169_v25 = vadd.f32 %v5369_v19, %v1168_v24  ;;  %v6716_v19 = vld [vmem:[%s8303_s0 + $0x78] sm:$0xff]  }
 0x605   :  { %v6173_v26 = vpop.f32.mrf.mxu1  ;;  %v6720_v24 = vld [vmem:[%s8271_s8 + $0x78] sm:$0xff]  }
 0x606   :  { %6203 = vmatmul.mubr.msk.f32.vlgmr.msra.gmra.mxu0 %vm892_vm2, %v1169_v25  ;;  %v6721_v25 = vld [vmem:[%s8271_s8 + $0x70] sm:$0xff]   ;;  %v6722_v26 = vld [vmem:[%s8271_s8 + $0x68] sm:$0xff]  }
 0x60f   :  { %v1329_v27 = vpop.f32.mrf.mxu1 }
 0x610   :  { %v1330_v34 = vadd.f32 %v5399_v30, %v1329_v27  ;;  %v6723_v27 = vld [vmem:[%s8271_s8 + $0x60] sm:$0xff]  }
 0x611   :  { %v6196_v29 = vpop.f32.mrf.mxu1 }
 0x613   :  { %v1332_v31 = vpop.f32.mrf.mxu1 }
 0x614   :  { %v1333_v32 = vadd.f32 %v5399_v30, %v1332_v31 }
 0x615   :  { %v6197_v33 = vpop.f32.mrf.mxu1 }
 0x616   :  { %6205 = vmatprep.subr.mxu0 %v1333_v32 }
 0x617   :  { %6206 = vmatpush3.msra.mxu0 %v1333_v32 }
 0x618   :  { %6207 = vmatprep.subr.mxu0 %v1330_v34 }
 0x619   :  { %6208 = vmatpush3.msra.mxu0 %v1330_v34 }
 0x61a   :  { %6212 = vmatprep.subr.bf16.mxu0 %v6920_v42 }
 0x61f   :  { %v1791_v35 = vpop.f32.mrf.mxu1 }
 0x620   :  { %v1792_v43 = vadd.f32 %v5441_v37, %v1791_v35 }
 0x621   :  { %v6246_v36 = vpop.f32.mrf.mxu1 }
 0x623   :  { %v1794_v38 = vpop.f32.mrf.mxu1 }
 0x624   :  { %v1795_v39 = vadd.f32 %v5441_v37, %v1794_v38 }
 0x625   :  { %v6247_v40 = vpop.f32.mrf.mxu1 }
 0x626   :  { %6260 = vmatprep.subr.msk.mxu1 %vm892_vm2, %v1795_v39 }
 0x627   :  { %6261 = vmatpush3.xpose.msk.msra.mxu1 %vm892_vm2, %v1795_v39  ;;  %v5426_v39 = vld [vmem:[%s8272_s9 + $0x2] ss:$0 sm:$0xff] }
 0x628   :  { %6262 = vmatprep.subr.msk.mxu1 %vm892_vm2, %v1792_v43 }
 0x62b   :  { %6263 = vmatpush3.xpose.msk.msra.mxu1 %vm892_vm2, %v1792_v43 }
 0x6c6   :  { %v6204_v44 = vpop.f32.mrf.mxu0 }
 0x6c7   :  { %v1424_v46 = vmul.f32 0.25, %v6204_v44 }
 0x6c8   :  { %v1414_v47 = vpop.f32.mrf.mxu0 }
 0x6c9   :  { %v1423_v48 = vmul.f32 0.25, %v1414_v47  ;;  %v1426_v49 = vadd.f32 %v1424_v46, %v7353_v41 }
 0x6cb   :  { %v1430_v50 = vsel %vm892_vm2, %v1426_v49, -inf  ;;  %v1425_v51 = vadd.f32 %v1423_v48, %v7358_v45 }
 0x6cc   :  { %1431 = vmax.xlane.f32.xlu1 %v1430_v50 }
 0x6cd   :  { %v1427_v52 = vsel %vm892_vm2, %v1425_v51, -inf }
 0x6ce   :  { %1428 = vmax.xlane.f32.xlu0 %v1427_v52 }
 0x755   :  { %v1432_v53 = vpop.xlane.xlu1 %1431 }
 0x756   :  { %v1434_v54 = vsub.f32 %v1426_v49, %v1432_v53 }
 0x757   :  { %v1429_v55 = vpop.xlane.xlu0 %1428 }
 0x758   :  { %v1437_v56 = vmul.f32 1.442695, %v1434_v54  ;;  %v1433_v57 = vsub.f32 %v1425_v51, %v1429_v55  ;;  %v5456_v51 = vld [vmem:[%s8274_s11 + $0x2] ss:$0 sm:$0xff] }
 0x75a   :  { %6818 = vpow2.f32 %v1437_v56  ;;  %v1435_v58 = vmul.f32 1.442695, %v1433_v57 }
 0x75c   :  { %6820 = vpow2.f32 %v1435_v58  ;;  %v5481_v58 = vld [vmem:[%s8272_s9 + $0x3] ss:$0 sm:$0xff] }
 0x767   :  { %v6819_v59 = vpop.eup %6818 }
 0x768   :  { %v1442_v60 = vsel %vm892_vm2, %v6819_v59, 0.0 }
 0x769   :  { %v6821_v61 = vpop.eup %6820  ;;  %1443 = vadd.xlane.f32.xlu1 %v1442_v60 }
 0x76a   :  { %v1439_v62 = vsel %vm892_vm2, %v6821_v61, 0.0 }
 0x76b   :  { %1440 = vadd.xlane.f32.xlu0 %v1439_v62 }
 0x7f2   :  { %v1444_v63 = vpop.xlane.xlu1 %1443 }
 0x7f3   :  { %6822 = vrcp.f32 %v1444_v63 }
 0x7f4   :  { %v1441_v0 = vpop.xlane.xlu0 %1440 }
 0x7f5   :  { %6824 = vrcp.f32 %v1441_v0 }
 0x800   :  { %v6823_v1 = vpop.eup %6822 }
 0x801   :  { %v1448_v5 = vmul.f32 %v6823_v1, %v6819_v59 }
 0x802   :  { %v6825_v2 = vpop.eup %6824 }
 0x803   :  { %v1447_v4 = vmul.f32 %v6825_v2, %v6821_v61 }
 0x805   :  { %6209 = vmatprep.mubr.msk.f32.mxu0 %vm892_vm2, %v1447_v4 }
 0x806   :  { %6210 = vmatmul.mubr.msk.f32.vlgmr.msra.gmra.mxu0 %vm892_vm2, %v1448_v5 }
 0x807   :  { %6214 = vmatprep.mubr.msk.bf16.mxu0 %vm6921_vm1, %v6920_v42  ;;  %6213 = vmatpush3.bf16.msra.mxu0 %v6706_v6 }
 0x808   :  { %6218 = vmatprep.subr.bf16.mxu0 %v6920_v42 }
 0x8c6   :  { %v6211_v7 = vpop.f32.mrf.mxu0 }
 0x8c8   :  { %v1521_v8 = vpop.f32.mrf.mxu0 }
 0x8c9   :  { %v1530_v10 = vpack.c.bf16 %v6211_v7, %v1521_v8 }
 0x8cb   :  { %6215 = vmatmul.mubr.msk.bf16.vlgmr.msra.gmra.mxu0 %vm892_vm2, %v1530_v10 }
 0x8cc   :  { %6219 = vmatpush3.bf16.msra.mxu0 %v6707_v9  ;;  %6220 = vmatprep.mubr.msk.bf16.mxu0 %vm6921_vm1, %v6920_v42 }
 0x8cd   :  { %6224 = vmatprep.subr.bf16.mxu0 %v6920_v42 }
 0x8d3   :  { %6221 = vmatmul.mubr.msk.bf16.vlgmr.msra.gmra.mxu0 %vm892_vm2, %v1087_v18  ;;  %v6715_v18 = vld [vmem:[%s8271_s8 + $0x40] sm:$0xff]  }
 0x8d4   :  { %6225 = vmatpush3.bf16.msra.mxu0 %v6708_v11  ;;  %6232 = vmatprep.mubr.msk.bf16.mxu0 %vm6921_vm1, %v6920_v42 }
 0x8d5   :  { %6226 = vmatprep.subr.bf16.mxu0 %v6920_v42 }
 0x8d8   :  { %6227 = vmatpush3.bf16.msra.mxu0 %v6709_v12 }
 0x8d9   :  { %6228 = vmatprep.subr.bf16.mxu0 %v6920_v42 }
 0x8dc   :  { %6229 = vmatpush3.bf16.msra.mxu0 %v6710_v13 }
 0x8dd   :  { %6230 = vmatprep.subr.bf16.mxu0 %v6920_v42 }
 0x8e0   :  { %6231 = vmatpush3.bf16.msra.mxu0 %v6711_v14 }
 0x8e1   :  { %6248 = vmatprep.subr.bf16.mxu0 %v6920_v42 }
 0x8e3   :  { %6233 = vmatmul.mubr.msk.bf16.vlgmr.msra.gmra.mxu0 %vm604_vm0, %v7289_v3 }
 0x8e4   :  { %6249 = vmatpush3.bf16.msra.mxu0 %v6712_v15  ;;  %6256 = vmatprep.mubr.msk.bf16.mxu0 %vm6921_vm1, %v6920_v42 }
 0x8e5   :  { %6250 = vmatprep.subr.bf16.mxu0 %v6920_v42 }
 0x8e8   :  { %6251 = vmatpush3.bf16.msra.mxu0 %v6713_v16 }
 0x8e9   :  { %6252 = vmatprep.subr.bf16.mxu0 %v6920_v42 }
 0x8ec   :  { %6253 = vmatpush3.bf16.msra.mxu0 %v6714_v17 }
 0x8ed   :  { %6254 = vmatprep.subr.bf16.mxu0 %v6920_v42 }
 0x8f0   :  { %6255 = vmatpush3.bf16.msra.mxu0 %v6715_v18 }
 0x8f1   :  { %6280 = vmatprep.subr.bf16.mxu0 %v6920_v42 }
 0x8f3   :  { %6257 = vmatmul.mubr.msk.bf16.vlgmr.msra.gmra.mxu0 %vm604_vm0, %v7289_v3 }
 0x8f4   :  { %6281 = vmatpush3.bf16.msra.mxu0 %v6716_v19  ;;  %6288 = vmatprep.mubr.msk.bf16.mxu0 %vm6921_vm1, %v6920_v42 }
 0x8f5   :  { %6282 = vmatprep.subr.bf16.mxu0 %v6920_v42 }
 0x8f8   :  { %6283 = vmatpush3.bf16.msra.mxu0 %v6717_v20 }
 0x8f9   :  { %6284 = vmatprep.subr.bf16.mxu0 %v6920_v42 }
 0x8fc   :  { %6285 = vmatpush3.bf16.msra.mxu0 %v6718_v21 }
 0x8fd   :  { %6286 = vmatprep.subr.bf16.mxu0 %v6920_v42 }
 0x900   :  { %6287 = vmatpush3.bf16.msra.mxu0 %v6719_v22 }
 0x901   :  { %6304 = vmatprep.subr.bf16.mxu0 %v6920_v42 }
 0x903   :  { %6289 = vmatmul.mubr.msk.bf16.vlgmr.msra.gmra.mxu0 %vm604_vm0, %v7289_v3 }
 0x904   :  { %6305 = vmatpush3.bf16.msra.mxu0 %v6720_v24  ;;  %6312 = vmatprep.mubr.msk.bf16.mxu0 %vm6921_vm1, %v6920_v42 }
 0x905   :  { %6306 = vmatprep.subr.bf16.mxu0 %v6920_v42 }
 0x908   :  { %6307 = vmatpush3.bf16.msra.mxu0 %v6721_v25 }
 0x909   :  { %6308 = vmatprep.subr.bf16.mxu0 %v6920_v42 }
 0x90c   :  { %6309 = vmatpush3.bf16.msra.mxu0 %v6722_v26 }
 0x90d   :  { %6310 = vmatprep.subr.bf16.mxu0 %v6920_v42 }
 0x910   :  { %6311 = vmatpush3.bf16.msra.mxu0 %v6723_v27 }
 0x911   :  { %6336 = vmatprep.subr.bf16.mxu0 %v6920_v42 }
 0x913   :  { %6313 = vmatmul.mubr.msk.bf16.vlgmr.msra.gmra.mxu0 %vm604_vm0, %v7289_v3 }
 0x914   :  { %6344 = vmatprep.mubr.msk.bf16.mxu0 %vm6921_vm1, %v6920_v42 }
 0x98b   :  { %v1577_v29 = vpop.f32.mrf.mxu0 }
 0x98d   :  { %v6216_v30 = vpop.f32.mrf.mxu0 }
 0x98f   :  { %v1580_v31 = vpop.f32.mrf.mxu0 }
 0x991   :  { %v6217_v32 = vpop.f32.mrf.mxu0 }
 0x992   :  { %v6725_v32 = vld [vmem:[%s8270_s7 + $0x78] sm:$0xff]  }
 0x993   :  { %v1627_v33 = vpop.f32.mrf.mxu0 }
 0x994   :  { %v7556_v34 = vadd.f32 %v1627_v33, %v1577_v29  ;;  %v6724_v29 = vld [vmem:[%s8275_s12 + $0x10] sm:$0xff]  }
 0x995   :  { %v6222_v35 = vpop.f32.mrf.mxu0 }
 0x996   :  { %v6726_v35 = vld [vmem:[%s8270_s7 + $0x70] sm:$0xff]  }
 0x997   :  { %v1630_v36 = vpop.f32.mrf.mxu0 }
 0x998   :  { %v7558_v37 = vadd.f32 %v1630_v36, %v1580_v31  ;;  %v6727_v36 = vld [vmem:[%s8270_s7 + $0x68] sm:$0xff]  }
 0x999   :  { %v6223_v38 = vpop.f32.mrf.mxu0 }
 0x99a   :  { %v6728_v38 = vld [vmem:[%s8270_s7 + $0x60] sm:$0xff]  }
 0x9a3   :  { %v1709_v40 = vpop.f32.mrf.mxu0 }
 0x9a4   :  { %v1710_v43 = vadd.f32 %v5426_v39, %v1709_v40 }
 0x9a5   :  { %v6234_v44 = vpop.f32.mrf.mxu0 }
 0x9a6   :  { %6264 = vmatprep.mubr.msk.f32.mxu1 %vm892_vm2, %v1710_v43 }
 0x9a7   :  { %v1712_v46 = vpop.f32.mrf.mxu0 }
 0x9a8   :  { %v1713_v47 = vadd.f32 %v5426_v39, %v1712_v46 }
 0x9a9   :  { %v6235_v48 = vpop.f32.mrf.mxu0 }
 0x9aa   :  { %6265 = vmatmul.mubr.msk.f32.vlgmr.msra.gmra.mxu1 %vm892_vm2, %v1713_v47 }
 0x9b3   :  { %v1873_v49 = vpop.f32.mrf.mxu0 }
 0x9b4   :  { %v1874_v55 = vadd.f32 %v5456_v51, %v1873_v49 }
 0x9b5   :  { %v6258_v50 = vpop.f32.mrf.mxu0 }
 0x9b7   :  { %v1876_v52 = vpop.f32.mrf.mxu0 }
 0x9b8   :  { %v1877_v53 = vadd.f32 %v5456_v51, %v1876_v52  ;;  %v5496_v51 = vld [vmem:[%s8273_s10 + $0x3] ss:$0 sm:$0xff] }
 0x9b9   :  { %v6259_v54 = vpop.f32.mrf.mxu0 }
 0x9ba   :  { %6267 = vmatprep.subr.mxu1 %v1877_v53 }
 0x9bb   :  { %6268 = vmatpush3.msra.mxu1 %v1877_v53 }
 0x9bc   :  { %6269 = vmatprep.subr.mxu1 %v1874_v55 }
 0x9bd   :  { %6270 = vmatpush3.msra.mxu1 %v1874_v55 }
 0x9be   :  { %6274 = vmatprep.subr.bf16.mxu1 %v6920_v42 }
 0x9c3   :  { %v7569_v56 = vpop.f32.mrf.mxu0 }
 0x9c4   :  { %v2206_v39 = vadd.f32 %v5481_v58, %v7569_v56 }
 0x9c5   :  { %v6290_v57 = vpop.f32.mrf.mxu0 }
 0x9c7   :  { %v2208_v59 = vpop.f32.mrf.mxu0 }
 0x9c8   :  { %v7574_v60 = vadd.f32 %v5481_v58, %v2208_v59 }
 0x9c9   :  { %v6291_v61 = vpop.f32.mrf.mxu0 }
 0x9d3   :  { %v7576_v62 = vpop.f32.mrf.mxu0 }
 0x9d5   :  { %v6314_v63 = vpop.f32.mrf.mxu0 }
 0x9d7   :  { %v7578_v0 = vpop.f32.mrf.mxu0 }
 0x9d9   :  { %v6315_v1 = vpop.f32.mrf.mxu0 }
 0xa6a   :  { %v6266_v2 = vpop.f32.mrf.mxu1 }
 0xa6b   :  { %v1968_v4 = vmul.f32 0.25, %v6266_v2 }
 0xa6c   :  { %v1958_v5 = vpop.f32.mrf.mxu1 }
 0xa6d   :  { %v1967_v6 = vmul.f32 0.25, %v1958_v5  ;;  %v1970_v7 = vadd.f32 %v1968_v4, %v7353_v41 }
 0xa6f   :  { %v1974_v8 = vsel %vm892_vm2, %v1970_v7, -inf  ;;  %v1969_v9 = vadd.f32 %v1967_v6, %v7358_v45 }
 0xa70   :  { %1975 = vmax.xlane.f32.xlu1 %v1974_v8 }
 0xa71   :  { %v1971_v10 = vsel %vm892_vm2, %v1969_v9, -inf }
 0xa72   :  { %1972 = vmax.xlane.f32.xlu0 %v1971_v10 }
 0xaf9   :  { %v1976_v11 = vpop.xlane.xlu1 %1975 }
 0xafa   :  { %v1978_v12 = vsub.f32 %v1970_v7, %v1976_v11 }
 0xafb   :  { %v1973_v13 = vpop.xlane.xlu0 %1972 }
 0xafc   :  { %v1981_v14 = vmul.f32 1.442695, %v1978_v12  ;;  %v1977_v15 = vsub.f32 %v1969_v9, %v1973_v13 }
 0xafe   :  { %6826 = vpow2.f32 %v1981_v14  ;;  %v1979_v16 = vmul.f32 1.442695, %v1977_v15  ;;  %v6729_v15 = vld [vmem:[%s8275_s12 + $0x18] sm:$0xff]  }
 0xb00   :  { %6828 = vpow2.f32 %v1979_v16 }
 0xb0b   :  { %v6827_v17 = vpop.eup %6826 }
 0xb0c   :  { %v1986_v18 = vsel %vm892_vm2, %v6827_v17, 0.0 }
 0xb0d   :  { %v6829_v19 = vpop.eup %6828  ;;  %1987 = vadd.xlane.f32.xlu1 %v1986_v18 }
 0xb0e   :  { %v1983_v20 = vsel %vm892_vm2, %v6829_v19, 0.0 }
 0xb0f   :  { %1984 = vadd.xlane.f32.xlu0 %v1983_v20 }
 0xb96   :  { %v1988_v21 = vpop.xlane.xlu1 %1987 }
 0xb97   :  { %6830 = vrcp.f32 %v1988_v21  ;;  %v5527_v21 = vld [vmem:[%s8276_s13] ss:$0 sm:$0xff] }
 0xb98   :  { %v1985_v22 = vpop.xlane.xlu0 %1984 }
 0xb99   :  { %6832 = vrcp.f32 %v1985_v22 }
 0xba4   :  { %v6831_v24 = vpop.eup %6830 }
 0xba5   :  { %v1992_v27 = vmul.f32 %v6831_v24, %v6827_v17 }
 0xba6   :  { %v6833_v25 = vpop.eup %6832 }
 0xba7   :  { %v1991_v26 = vmul.f32 %v6833_v25, %v6829_v19 }
 0xba9   :  { %6271 = vmatprep.mubr.msk.f32.mxu1 %vm892_vm2, %v1991_v26 }
 0xbaa   :  { %6272 = vmatmul.mubr.msk.f32.vlgmr.msra.gmra.mxu1 %vm892_vm2, %v1992_v27 }
 0xbab   :  { %6276 = vmatprep.mubr.msk.bf16.mxu1 %vm6921_vm1, %v6920_v42  ;;  %6275 = vmatpush3.bf16.msra.mxu1 %v6724_v29 }
 0xbac   :  { %6292 = vmatprep.subr.bf16.mxu1 %v6920_v42 }
 0xc6a   :  { %v6273_v30 = vpop.f32.mrf.mxu1 }
 0xc6c   :  { %v2065_v31 = vpop.f32.mrf.mxu1 }
 0xc6d   :  { %v2074_v33 = vpack.c.bf16 %v6273_v30, %v2065_v31 }
 0xc6f   :  { %6277 = vmatmul.mubr.msk.bf16.vlgmr.msra.gmra.mxu1 %vm892_vm2, %v2074_v33 }
 0xc70   :  { %6293 = vmatpush3.bf16.msra.mxu1 %v6725_v32  ;;  %6300 = vmatprep.mubr.msk.bf16.mxu1 %vm6921_vm1, %v6920_v42 }
 0xc71   :  { %6294 = vmatprep.subr.bf16.mxu1 %v6920_v42 }
 0xc74   :  { %6295 = vmatpush3.bf16.msra.mxu1 %v6726_v35 }
 0xc75   :  { %6296 = vmatprep.subr.bf16.mxu1 %v6920_v42 }
 0xc78   :  { %6297 = vmatpush3.bf16.msra.mxu1 %v6727_v36 }
 0xc79   :  { %6298 = vmatprep.subr.bf16.mxu1 %v6920_v42 }
 0xc7c   :  { %6299 = vmatpush3.bf16.msra.mxu1 %v6728_v38 }
 0xc7f   :  { %6301 = vmatmul.mubr.msk.bf16.vlgmr.msra.gmra.mxu1 %vm604_vm0, %v7289_v3 }
 0xc80   :  { %6320 = vmatprep.mubr.msk.f32.mxu1 %vm892_vm2, %v2206_v39 }
 0xd2f   :  { %v2121_v40 = vpop.f32.mrf.mxu1 }
 0xd30   :  { %v7617_v43 = vadd.f32 %v2121_v40, %v7556_v34  ;;  %v5511_v34 = vld [vmem:[%s8274_s11 + $0x3] ss:$0 sm:$0xff] }
 0xd31   :  { %v6278_v44 = vpop.f32.mrf.mxu1  ;;  %v2370_v55 = vadd.f32 %v5511_v34, %v7576_v62 }
 0xd33   :  { %v2124_v46 = vpop.f32.mrf.mxu1 }
 0xd34   :  { %v7620_v47 = vadd.f32 %v2124_v46, %v7558_v37  ;;  %v2373_v37 = vadd.f32 %v5511_v34, %v7578_v0 }
 0xd35   :  { %v6279_v48 = vpop.f32.mrf.mxu1 }
 0xd36   :  { %v6731_v48 = vld [vmem:[%s8279_s16 + $0x10] sm:$0xff]  }
 0xd3f   :  { %v2287_v49 = vpop.f32.mrf.mxu1 }
 0xd40   :  { %v2288_v54 = vadd.f32 %v5496_v51, %v2287_v49  ;;  %v6732_v49 = vld [vmem:[%s8279_s16 + $0x8] sm:$0xff]  }
 0xd41   :  { %v6302_v50 = vpop.f32.mrf.mxu1 }
 0xd42   :  { %v6733_v50 = vld [vmem:[%s8279_s16] sm:$0xff]  }
 0xd43   :  { %v2290_v52 = vpop.f32.mrf.mxu1 }
 0xd44   :  { %v2291_v3 = vadd.f32 %v5496_v51, %v2290_v52 }
 0xd45   :  { %v6303_v53 = vpop.f32.mrf.mxu1 }
 0xd46   :  { %6316 = vmatprep.subr.msk.mxu1 %vm892_vm2, %v2291_v3 }
 0xd47   :  { %6317 = vmatpush3.xpose.msk.msra.mxu1 %vm892_vm2, %v2291_v3 }
 0xd48   :  { %6318 = vmatprep.subr.msk.mxu1 %vm892_vm2, %v2288_v54 }
 0xd4b   :  { %6319 = vmatpush3.xpose.msk.msra.mxu1 %vm892_vm2, %v2288_v54 }
 0xd4c   :  { %6323 = vmatprep.subr.mxu1 %v2373_v37 }
 0xd4e   :  { %6321 = vmatmul.mubr.msk.f32.vlgmr.msra.gmra.mxu1 %vm892_vm2, %v7574_v60 }
 0xd4f   :  { %6324 = vmatpush3.msra.mxu1 %v2373_v37 }
 0xd50   :  { %6325 = vmatprep.subr.mxu1 %v2370_v55 }
 0xd51   :  { %6326 = vmatpush3.msra.mxu1 %v2370_v55 }
 0xd52   :  { %6330 = vmatprep.subr.bf16.mxu1 %v6920_v42 }
 0xe0e   :  { %v6322_v56 = vpop.f32.mrf.mxu1 }
 0xe0f   :  { %v2464_v57 = vmul.f32 0.25, %v6322_v56  ;;  %v5528_v56 = vld [vmem:[%s8277_s14] ss:$0 sm:$0xff] }
 0xe10   :  { %v2454_v58 = vpop.f32.mrf.mxu1 }
 0xe11   :  { %v2463_v59 = vmul.f32 0.25, %v2454_v58  ;;  %v2466_v61 = vadd.f32 %v2464_v57, %v7353_v41 }
 0xe13   :  { %v2470_v63 = vsel %vm892_vm2, %v2466_v61, -inf  ;;  %v2465_v0 = vadd.f32 %v2463_v59, %v7358_v45 }
 0xe14   :  { %2471 = vmax.xlane.f32.xlu1 %v2470_v63 }
 0xe15   :  { %v2467_v62 = vsel %vm892_vm2, %v2465_v0, -inf }
 0xe16   :  { %2468 = vmax.xlane.f32.xlu0 %v2467_v62 }
 0xe9d   :  { %v2472_v60 = vpop.xlane.xlu1 %2471 }
 0xe9e   :  { %v2474_v1 = vsub.f32 %v2466_v61, %v2472_v60  ;;  %v5529_v61 = vld [vmem:[%s8278_s15] ss:$0 sm:$0xff] }
 0xe9f   :  { %v2469_v2 = vpop.xlane.xlu0 %2468 }
 0xea0   :  { %v2477_v4 = vmul.f32 1.442695, %v2474_v1  ;;  %v2473_v5 = vsub.f32 %v2465_v0, %v2469_v2  ;;  %v6734_v1 = vld [vmem:[%s8281_s18 + $0x38] sm:$0xff]   ;;  %v6735_v2 = vld [vmem:[%s8281_s18 + $0x30] sm:$0xff]  }
 0xea2   :  { %6834 = vpow2.f32 %v2477_v4  ;;  %v2475_v6 = vmul.f32 1.442695, %v2473_v5  ;;  %v6736_v4 = vld [vmem:[%s8281_s18 + $0x28] sm:$0xff]   ;;  %v6737_v5 = vld [vmem:[%s8281_s18 + $0x20] sm:$0xff]  }
 0xea4   :  { %6836 = vpow2.f32 %v2475_v6  ;;  %v6738_v6 = vld [vmem:[%s8281_s18 + $0x18] sm:$0xff]  }
 0xeaf   :  { %v6835_v7 = vpop.eup %6834 }
 0xeb0   :  { %v2482_v8 = vsel %vm892_vm2, %v6835_v7, 0.0 }
 0xeb1   :  { %v6837_v41 = vpop.eup %6836  ;;  %2483 = vadd.xlane.f32.xlu1 %v2482_v8  ;;  %v6740_v8 = vld [vmem:[%s8281_s18 + $0x8] sm:$0xff]  }
 0xeb2   :  { %v2479_v9 = vsel %vm892_vm2, %v6837_v41, 0.0 }
 0xeb3   :  { %2480 = vadd.xlane.f32.xlu0 %v2479_v9  ;;  %v5530_v9 = vld [vmem:[%s8280_s17] ss:$0 sm:$0xff] }
 0xf3a   :  { %v2484_v45 = vpop.xlane.xlu1 %2483 }
 0xf3b   :  { %6838 = vrcp.f32 %v2484_v45 }
 0xf3c   :  { %v2481_v10 = vpop.xlane.xlu0 %2480 }
 0xf3d   :  { %6840 = vrcp.f32 %v2481_v10 }
 0xf48   :  { %v6839_v11 = vpop.eup %6838 }
 0xf49   :  { %v2488_v14 = vmul.f32 %v6839_v11, %v6835_v7  ;;  %v6739_v7 = vld [vmem:[%s8281_s18 + $0x10] sm:$0xff]  }
 0xf4a   :  { %v6841_v12 = vpop.eup %6840 }
 0xf4b   :  { %v2487_v13 = vmul.f32 %v6841_v12, %v6837_v41  ;;  %v6741_v41 = vld [vmem:[%s8281_s18] sm:$0xff]  }
 0xf4d   :  { %6327 = vmatprep.mubr.msk.f32.mxu1 %vm892_vm2, %v2487_v13 }
 0xf4e   :  { %6328 = vmatmul.mubr.msk.f32.vlgmr.msra.gmra.mxu1 %vm892_vm2, %v2488_v14 }
 0xf4f   :  { %6332 = vmatprep.mubr.msk.bf16.mxu1 %vm6921_vm1, %v6920_v42  ;;  %6331 = vmatpush3.bf16.msra.mxu1 %v6729_v15 }
 0xf50   :  { %6348 = vmatprep.subr.bf16.mxu1 %v6920_v42 }
0x100e   :  { %v6329_v16 = vpop.f32.mrf.mxu1 }
0x1010   :  { %v2561_v17 = vpop.f32.mrf.mxu1 }
0x1011   :  { %v2570_v18 = vpack.c.bf16 %v6329_v16, %v2561_v17 }
0x1013   :  { %6333 = vmatmul.mubr.msk.bf16.vlgmr.msra.gmra.mxu1 %vm892_vm2, %v2570_v18 }
0x1014   :  { %6364 = vmatprep.mubr.msk.bf16.mxu1 %vm6921_vm1, %v6920_v42  ;;  %6349 = vmatpush3.bf16.msra.mxu1 %v6734_v1 }
0x1015   :  { %6350 = vmatprep.subr.bf16.mxu1 %v6920_v42 }
0x1018   :  { %6351 = vmatpush3.bf16.msra.mxu1 %v6735_v2 }
0x1019   :  { %6352 = vmatprep.subr.bf16.mxu1 %v6920_v42 }
0x101c   :  { %6353 = vmatpush3.bf16.msra.mxu1 %v6736_v4 }
0x101d   :  { %6354 = vmatprep.subr.bf16.mxu1 %v6920_v42 }
0x1020   :  { %6355 = vmatpush3.bf16.msra.mxu1 %v6737_v5 }
0x1021   :  { %6356 = vmatprep.subr.bf16.mxu1 %v6920_v42 }
0x1024   :  { %6357 = vmatpush3.bf16.msra.mxu1 %v6738_v6 }
0x1025   :  { %6358 = vmatprep.subr.bf16.mxu1 %v6920_v42 }
0x1028   :  { %6359 = vmatpush3.bf16.msra.mxu1 %v6739_v7 }
0x1029   :  { %6360 = vmatprep.subr.bf16.mxu1 %v6920_v42 }
0x102c   :  { %6361 = vmatpush3.bf16.msra.mxu1 %v6740_v8 }
0x102d   :  { %6362 = vmatprep.subr.bf16.mxu1 %v6920_v42 }
0x1030   :  { %6363 = vmatpush3.bf16.msra.mxu1 %v6741_v41 }
0x1031   :  { %6392 = vmatprep.subr.bf16.mxu1 %v6920_v42 }
0x10d3   :  { %v2617_v19 = vpop.f32.mrf.mxu1 }
0x10d4   :  { %v2624_v20 = vadd.f32 %v2617_v19, %v7617_v43 }
0x10d5   :  { %v6334_v22 = vpop.f32.mrf.mxu1 }
0x10d6   :  { %v2626_v24 = vadd.f32 %v2624_v20, %v7227_v23 }
0x10d7   :  { %v2620_v25 = vpop.f32.mrf.mxu1 }
0x10d8   :  { %v7659_v26 = vadd.f32 %v5527_v21, %v2626_v24  ;;  %v2625_v27 = vadd.f32 %v2620_v25, %v7620_v47  ;;  %v6730_v47 = vld [vmem:[%s8279_s16 + $0x18] sm:$0xff]  }
0x10d9   :  { %v6335_v29 = vpop.f32.mrf.mxu1  ;;  %6337 = vmatpush3.bf16.msra.mxu0 %v6730_v47 }
0x10da   :  { %v2627_v30 = vadd.f32 %v2625_v27, %v7231_v28  ;;  %v2639_v31 = vsel %vm604_vm0, %v7659_v26, 0.0  ;;  %6338 = vmatprep.subr.bf16.mxu0 %v6920_v42 }
0x10db   :  { %2640 = vadd.xlane.f32.xlu0 %v2639_v31 }
0x10dc   :  { %v7665_v32 = vadd.f32 %v5527_v21, %v2627_v30 }
0x10dd   :  { %6339 = vmatpush3.bf16.msra.mxu0 %v6731_v48 }
0x10de   :  { %v2642_v33 = vsel %vm604_vm0, %v7665_v32, 0.0  ;;  %6340 = vmatprep.subr.bf16.mxu0 %v6920_v42 }
0x10df   :  { %2643 = vadd.xlane.f32.xlu1 %v2642_v33 }
0x10e1   :  { %6341 = vmatpush3.bf16.msra.mxu0 %v6732_v49 }
0x10e2   :  { %6342 = vmatprep.subr.bf16.mxu0 %v6920_v42 }
0x10e5   :  { %6343 = vmatpush3.bf16.msra.mxu0 %v6733_v50 }
0x10e6   :  { %6368 = vmatprep.subr.bf16.mxu0 %v6920_v42 }
0x1164   :  { %v2641_v35 = vpop.xlane.xlu0 %2640 }
0x1165   :  { %v2645_v23 = vmul.f32 0.015625, %v2641_v35 }
0x1167   :  { %v2647_v36 = vsub.f32 %v7659_v26, %v2645_v23 }
0x1168   :  { %v2644_v38 = vpop.xlane.xlu1 %2643 }
0x1169   :  { %v2646_v39 = vmul.f32 0.015625, %v2644_v38  ;;  %v2649_v40 = vmul.f32 %v2647_v36, %v2647_v36 }
0x116b   :  { %v2648_v43 = vsub.f32 %v7665_v32, %v2646_v39  ;;  %v2651_v28 = vsel %vm604_vm0, %v2649_v40, 0.0  ;;  %v5536_v39 = vld [vmem:[%s8282_s19] ss:$0 sm:$0xff] }
0x116c   :  { %2652 = vadd.xlane.f32.xlu0 %v2651_v28 }
0x116d   :  { %v2650_v44 = vmul.f32 %v2648_v43, %v2648_v43 }
0x116f   :  { %v2654_v46 = vsel %vm604_vm0, %v2650_v44, 0.0 }
0x1170   :  { %2655 = vadd.xlane.f32.xlu1 %v2654_v46 }
0x11f5   :  { %v2653_v51 = vpop.xlane.xlu0 %2652 }
0x11f6   :  { %v2657_v52 = vmul.f32 0.015625, %v2653_v51 }
0x11f8   :  { %v2659_v3 = vadd.f32 1e-06, %v2657_v52 }
0x11f9   :  { %v2656_v53 = vpop.xlane.xlu1 %2655 }
0x11fa   :  { %6842 = vrsqrt.f32 %v2659_v3  ;;  %v2658_v54 = vmul.f32 0.015625, %v2656_v53 }
0x11fc   :  { %v2660_v34 = vadd.f32 1e-06, %v2658_v54 }
0x11fe   :  { %6844 = vrsqrt.f32 %v2660_v34 }
0x1207   :  { %v6843_v37 = vpop.eup %6842 }
0x1208   :  { %v2663_v55 = vmul.f32 %v6843_v37, %v2647_v36 }
0x120a   :  { %v2671_v59 = vmul.f32 %v5528_v56, %v2663_v55 }
0x120b   :  { %v6845_v57 = vpop.eup %6844 }
0x120c   :  { %v2664_v58 = vmul.f32 %v6845_v57, %v2648_v43  ;;  %v2679_v0 = vadd.f32 %v5529_v61, %v2671_v59  ;;  %v6742_v57 = vld [vmem:[%s8303_s0 + $0x98] sm:$0xff]   ;;  %v6744_v59 = vld [vmem:[%s8303_s0 + $0x90] sm:$0xff]  }
0x120e   :  { %v2672_v63 = vmul.f32 %v5528_v56, %v2664_v58  ;;  %v6743_v58 = vld [vmem:[%s8271_s8 + $0x98] sm:$0xff]  }
0x1210   :  { %v2680_v62 = vadd.f32 %v5529_v61, %v2672_v63  ;;  %v6745_v61 = vld [vmem:[%s8271_s8 + $0x90] sm:$0xff]   ;;  %v6746_v63 = vld [vmem:[%s8303_s0 + $0x88] sm:$0xff]  }
0x1212   :  { %v2681_v60 = vpack.c.bf16 %v2680_v62, %v2679_v0  ;;  %v6747_v0 = vld [vmem:[%s8271_s8 + $0x88] sm:$0xff]   ;;  %v6748_v62 = vld [vmem:[%s8303_s0 + $0x80] sm:$0xff]  }
0x1214   :  { %6345 = vmatmul.mubr.msk.bf16.vlgmr.msra.gmra.mxu0 %vm604_vm0, %v2681_v60  ;;  %v6749_v60 = vld [vmem:[%s8271_s8 + $0x80] sm:$0xff]  }
0x1215   :  { %6376 = vmatprep.mubr.msk.bf16.mxu0 %vm6921_vm1, %v6920_v42  ;;  %6369 = vmatpush3.bf16.msra.mxu0 %v6742_v57 }
0x1216   :  { %6370 = vmatprep.subr.bf16.mxu0 %v6920_v42 }
0x1219   :  { %6371 = vmatpush3.bf16.msra.mxu0 %v6744_v59 }
0x121a   :  { %6372 = vmatprep.subr.bf16.mxu0 %v6920_v42 }
0x121d   :  { %6373 = vmatpush3.bf16.msra.mxu0 %v6746_v63 }
0x121e   :  { %6374 = vmatprep.subr.bf16.mxu0 %v6920_v42 }
0x1221   :  { %6375 = vmatpush3.bf16.msra.mxu0 %v6748_v62 }
0x1222   :  { %6380 = vmatprep.subr.bf16.mxu0 %v6920_v42 }
0x12d4   :  { %v2758_v45 = vpop.f32.mrf.mxu0 }
0x12d5   :  { %v2759_v10 = vadd.f32 %v5530_v9, %v2758_v45 }
0x12d6   :  { %v6346_v11 = vpop.f32.mrf.mxu0 }
0x12d7   :  { %v2765_v12 = vmul.f32 %v2759_v10, %v2759_v10 }
0x12d8   :  { %v2761_v13 = vpop.f32.mrf.mxu0 }
0x12d9   :  { %v2767_v14 = vmul.f32 %v2765_v12, %v2759_v10  ;;  %v2762_v15 = vadd.f32 %v5530_v9, %v2761_v13  ;;  %v5547_v9 = vld [vmem:[%s8304_s5 + $0x1] ss:$0 sm:$0xff] }
0x12da   :  { %v6347_v16 = vpop.f32.mrf.mxu0  ;;  %v5548_v12 = vld [vmem:[%s8305_s26 + $0x1] ss:$0 sm:$0xff]  ;;  %s6923_s26 = smov [#allocation2]  }
0x12db   :  { %v2769_v17 = vmul.f32 0.044715, %v2767_v14  ;;  %v2766_v18 = vmul.f32 %v2762_v15, %v2762_v15  ;;  %v6750_v16 = vld [vmem:[%s8270_s7 + $0x98] sm:$0xff]   ;;  %s5275_s23 = sshll.u32 %s6923_s26, 4  ;;  %s5276_s23 = int_to_ptr.vmem [resolvable:$true] %s5275_s23 }
0x12dc   :  { %p6903_p1 = scmp.lt.s32.totalorder %s5276_s23, %s5276_s23 }
0x12dd   :  { %v2771_v19 = vadd.f32 %v2769_v17, %v2759_v10  ;;  %v2768_v20 = vmul.f32 %v2766_v18, %v2762_v15  ;;  %v6751_v17 = vld [vmem:[%s8303_s0 + $0xb8] sm:$0xff]  }
0x12df   :  { %v2773_v21 = vmul.f32 0.7978846, %v2771_v19  ;;  %v2770_v22 = vmul.f32 0.044715, %v2768_v20  ;;  %v6752_v19 = vld [vmem:[%s8270_s7 + $0x90] sm:$0xff]  }
0x12e0   :  { %v6753_v20 = vld [vmem:[%s8303_s0 + $0xb0] sm:$0xff]  }
0x12e1   :  { %6846 = vtanh.f32 %v2773_v21  ;;  %v2772_v24 = vadd.f32 %v2770_v22, %v2762_v15  ;;  %v6754_v21 = vld [vmem:[%s8270_s7 + $0x88] sm:$0xff]  }
0x12e2   :  { %v6755_v22 = vld [vmem:[%s8303_s0 + $0xa8] sm:$0xff]  }
0x12e3   :  { %v2774_v25 = vmul.f32 0.7978846, %v2772_v24  ;;  %v6756_v24 = vld [vmem:[%s8270_s7 + $0x80] sm:$0xff]  }
0x12e5   :  { %6848 = vtanh.f32 %v2774_v25  ;;  %v6757_v25 = vld [vmem:[%s8303_s0 + $0xa0] sm:$0xff]  }
0x12ee   :  { %v6847_v27 = vpop.eup %6846 }
0x12ef   :  { %v2777_v29 = vadd.f32 1.0, %v6847_v27  ;;  %v6758_v27 = vld [vmem:[%s8271_s8 + $0xb8] sm:$0xff]  }
0x12f1   :  { %v2779_v31 = vmul.f32 0.5, %v2777_v29  ;;  %v6759_v29 = vld [vmem:[%s8271_s8 + $0xb0] sm:$0xff]  }
0x12f2   :  { %v6849_v30 = vpop.eup %6848 }
0x12f3   :  { %v2778_v33 = vadd.f32 1.0, %v6849_v30  ;;  %v2781_v23 = vmul.f32 %v2779_v31, %v2759_v10  ;;  %v6760_v30 = vld [vmem:[%s8271_s8 + $0xa8] sm:$0xff]   ;;  %v6761_v31 = vld [vmem:[%s8271_s8 + $0xa0] sm:$0xff]  }
0x12f5   :  { %v2780_v35 = vmul.f32 0.5, %v2778_v33  ;;  %v5558_v33 = vld [vmem:[%s8272_s9 + $0x4] ss:$0 sm:$0xff] }
0x12f7   :  { %v2782_v36 = vmul.f32 %v2780_v35, %v2762_v15 }
0x12f9   :  { %v2783_v38 = vpack.c.bf16 %v2782_v36, %v2781_v23 }
0x12fb   :  { %6365 = vmatmul.mubr.bf16.vlgmr.msra.gmra.mxu1 %v2783_v38 }
0x12fc   :  { %6400 = vmatprep.mubr.msk.bf16.mxu1 %vm6921_vm1, %v6920_v42  ;;  %6393 = vmatpush3.bf16.msra.mxu1 %v6743_v58 }
0x12fd   :  { %6394 = vmatprep.subr.bf16.mxu1 %v6920_v42 }
0x1300   :  { %6395 = vmatpush3.bf16.msra.mxu1 %v6745_v61 }
0x1301   :  { %6396 = vmatprep.subr.bf16.mxu1 %v6920_v42 }
0x1304   :  { %6397 = vmatpush3.bf16.msra.mxu1 %v6747_v0 }
0x1305   :  { %6398 = vmatprep.subr.bf16.mxu1 %v6920_v42 }
0x1308   :  { %6399 = vmatpush3.bf16.msra.mxu1 %v6749_v60 }
0x1309   :  { %6418 = vmatprep.subr.bf16.mxu1 %v6920_v42 }
0x13bb   :  { %v2889_v40 = vpop.f32.mrf.mxu1 }
0x13bc   :  { %v2890_v43 = vadd.f32 %v5536_v39, %v2889_v40 }
0x13bd   :  { %v6366_v28 = vpop.f32.mrf.mxu1 }
0x13be   :  { %v7739_v44 = vadd.f32 %v2890_v43, %v7659_v26 }
0x13bf   :  { %v2892_v46 = vpop.f32.mrf.mxu1 }
0x13c0   :  { %v2893_v47 = vadd.f32 %v5536_v39, %v2892_v46  ;;  %v2902_v48 = vsel %vm604_vm0, %v7739_v44, 0.0 }
0x13c1   :  { %2903 = vadd.xlane.f32.xlu0 %v2902_v48  ;;  %v6367_v49 = vpop.f32.mrf.mxu1 }
0x13c2   :  { %v7744_v50 = vadd.f32 %v2893_v47, %v7665_v32 }
0x13c4   :  { %v2905_v51 = vsel %vm604_vm0, %v7744_v50, 0.0 }
0x13c5   :  { %2906 = vadd.xlane.f32.xlu1 %v2905_v51 }
0x144a   :  { %v2904_v52 = vpop.xlane.xlu0 %2903 }
0x144b   :  { %v2908_v3 = vmul.f32 0.015625, %v2904_v52  ;;  %v5573_v52 = vld [vmem:[%s8273_s10 + $0x4] ss:$0 sm:$0xff] }
0x144d   :  { %v2910_v53 = vsub.f32 %v7739_v44, %v2908_v3  ;;  %v7869_v3 = vld [vmem:[%s8272_s9 + $0x5] ss:$0 sm:$0xff] }
0x144e   :  { %v2907_v26 = vpop.xlane.xlu1 %2906 }
0x144f   :  { %v2909_v54 = vmul.f32 0.015625, %v2907_v26  ;;  %v2912_v34 = vmul.f32 %v2910_v53, %v2910_v53 }
0x1451   :  { %v2911_v37 = vsub.f32 %v7744_v50, %v2909_v54  ;;  %v2914_v55 = vsel %vm604_vm0, %v2912_v34, 0.0 }
0x1452   :  { %2915 = vadd.xlane.f32.xlu0 %v2914_v55 }
0x1453   :  { %v2913_v56 = vmul.f32 %v2911_v37, %v2911_v37 }
0x1455   :  { %v2917_v32 = vsel %vm604_vm0, %v2913_v56, 0.0 }
0x1456   :  { %2918 = vadd.xlane.f32.xlu1 %v2917_v32  ;;  %v5588_v32 = vld [vmem:[%s8274_s11 + $0x4] ss:$0 sm:$0xff] }
0x14db   :  { %v2916_v1 = vpop.xlane.xlu0 %2915 }
0x14dc   :  { %v2920_v2 = vmul.f32 0.015625, %v2916_v1 }
0x14de   :  { %v2922_v4 = vadd.f32 1e-06, %v2920_v2 }
0x14df   :  { %v2919_v5 = vpop.xlane.xlu1 %2918 }
0x14e0   :  { %6850 = vrsqrt.f32 %v2922_v4  ;;  %v2921_v6 = vmul.f32 0.015625, %v2919_v5  ;;  %v7890_v5 = vld [vmem:[%s8306_s27 + $0x8] sm:$0xff] }
0x14e2   :  { %v2923_v7 = vadd.f32 1e-06, %v2921_v6 }
0x14e4   :  { %6852 = vrsqrt.f32 %v2923_v7 }
0x14ed   :  { %v6851_v8 = vpop.eup %6850 }
0x14ee   :  { %v2926_v41 = vmul.f32 %v6851_v8, %v2910_v53  ;;  %v7897_v8 = vld [vmem:[%s8306_s27] sm:$0xff] }
0x14f0   :  { %v2934_v10 = vmul.f32 %v5547_v9, %v2926_v41 }
0x14f1   :  { %v6853_v45 = vpop.eup %6852 }
0x14f2   :  { %v2927_v11 = vmul.f32 %v6853_v45, %v2911_v37  ;;  %v2942_v14 = vadd.f32 %v5548_v12, %v2934_v10 }
0x14f4   :  { %v2935_v13 = vmul.f32 %v5547_v9, %v2927_v11 }
0x14f6   :  { %v2943_v15 = vadd.f32 %v5548_v12, %v2935_v13 }
0x14f8   :  { %v7796_v18 = vpack.c.bf16 %v2943_v15, %v2942_v14 }
0x14fa   :  { %6377 = vmatmul.mubr.msk.bf16.vlgmr.msra.gmra.mxu0 %vm604_vm0, %v7796_v18  ;;  %6401 = vmatmul.mubr.msk.bf16.vlgmr.msra.gmra.mxu1 %vm604_vm0, %v7796_v18 }
0x14fb   :  { %6381 = vmatpush3.bf16.msra.mxu0 %v6750_v16  ;;  %6419 = vmatpush3.bf16.msra.mxu1 %v6751_v17 }
0x14fc   :  { %6382 = vmatprep.subr.bf16.mxu0 %v6920_v42  ;;  %6420 = vmatprep.subr.bf16.mxu1 %v6920_v42 }
0x14fd   :  { %6388 = vmatprep.mubr.msk.bf16.mxu0 %vm6921_vm1, %v6920_v42  ;;  %6426 = vmatprep.mubr.msk.bf16.mxu1 %vm6921_vm1, %v6920_v42 }
0x14ff   :  { %6383 = vmatpush3.bf16.msra.mxu0 %v6752_v19  ;;  %6421 = vmatpush3.bf16.msra.mxu1 %v6753_v20 }
0x1500   :  { %6384 = vmatprep.subr.bf16.mxu0 %v6920_v42  ;;  %6422 = vmatprep.subr.bf16.mxu1 %v6920_v42 }
0x1503   :  { %6385 = vmatpush3.bf16.msra.mxu0 %v6754_v21  ;;  %6423 = vmatpush3.bf16.msra.mxu1 %v6755_v22 }
0x1504   :  { %6386 = vmatprep.subr.bf16.mxu0 %v6920_v42  ;;  %6424 = vmatprep.subr.bf16.mxu1 %v6920_v42 }
0x1507   :  { %6387 = vmatpush3.bf16.msra.mxu0 %v6756_v24  ;;  %6425 = vmatpush3.bf16.msra.mxu1 %v6757_v25 }
0x1508   :  { %6442 = vmatprep.subr.bf16.mxu1 %v6920_v42 }
0x150a   :  { %6389 = vmatmul.mubr.msk.bf16.vlgmr.msra.gmra.mxu0 %vm604_vm0, %v7796_v18  ;;  %6427 = vmatmul.mubr.msk.bf16.vlgmr.msra.gmra.mxu1 %vm604_vm0, %v7796_v18 }
0x150b   :  { %6443 = vmatpush3.bf16.msra.mxu1 %v6758_v27  ;;  %6450 = vmatprep.mubr.msk.bf16.mxu1 %vm6921_vm1, %v6920_v42  ;;  %v6762_v27 = vld [vmem:[%s8270_s7 + $0xb8] sm:$0xff]  }
0x150c   :  { %6444 = vmatprep.subr.bf16.mxu1 %v6920_v42 }
0x150f   :  { %6445 = vmatpush3.bf16.msra.mxu1 %v6759_v29 }
0x1510   :  { %6446 = vmatprep.subr.bf16.mxu1 %v6920_v42 }
0x1513   :  { %6447 = vmatpush3.bf16.msra.mxu1 %v6760_v30  ;;  %v6763_v30 = vld [vmem:[%s8270_s7 + $0xb0] sm:$0xff]  }
0x1514   :  { %6448 = vmatprep.subr.bf16.mxu1 %v6920_v42 }
0x1517   :  { %6449 = vmatpush3.bf16.msra.mxu1 %v6761_v31  ;;  %v6764_v31 = vld [vmem:[%s8270_s7 + $0xa8] sm:$0xff]  }
0x1518   :  { %6474 = vmatprep.subr.bf16.mxu1 %v6920_v42 }
0x151a   :  { %6451 = vmatmul.mubr.msk.bf16.vlgmr.msra.gmra.mxu1 %vm604_vm0, %v7796_v18 }
0x151b   :  { %6476 = vmatprep.mubr.msk.bf16.mxu1 %vm6921_vm1, %v6920_v42 }
0x15ba   :  { %v3023_v35 = vpop.f32.mrf.mxu0  ;;  %v3187_v23 = vpop.f32.mrf.mxu1 }
0x15bb   :  { %v3024_v36 = vadd.f32 %v5558_v33, %v3023_v35  ;;  %v3188_v59 = vadd.f32 %v5588_v32, %v3187_v23  ;;  %v6766_v23 = vld [vmem:[%s8275_s12 + $0x20] sm:$0xff]  }
0x15bc   :  { %v6378_v38 = vpop.f32.mrf.mxu0  ;;  %v6402_v39 = vpop.f32.mrf.mxu1  ;;  %6475 = vmatpush3.bf16.msra.mxu1 %v6766_v23  ;;  %v6773_v23 = vld [vmem:[%s8303_s0 + $0xd0] sm:$0xff]  }
0x15bd   :  { %6408 = vmatprep.mubr.msk.f32.mxu0 %vm892_vm2, %v3024_v36  ;;  %6492 = vmatprep.subr.bf16.mxu1 %v6920_v42  ;;  %v6767_v39 = vld [vmem:[%s8270_s7 + $0xd8] sm:$0xff]  }
0x15be   :  { %v3026_v40 = vpop.f32.mrf.mxu0  ;;  %v3190_v43 = vpop.f32.mrf.mxu1 }
0x15bf   :  { %v3191_v57 = vadd.f32 %v5588_v32, %v3190_v43  ;;  %v3027_v58 = vadd.f32 %v5558_v33, %v3026_v40  ;;  %v6765_v33 = vld [vmem:[%s8270_s7 + $0xa0] sm:$0xff]   ;;  %v6768_v43 = vld [vmem:[%s8270_s7 + $0xd0] sm:$0xff]  }
0x15c0   :  { %v6379_v28 = vpop.f32.mrf.mxu0  ;;  %v6403_v46 = vpop.f32.mrf.mxu1 }
0x15c1   :  { %v6769_v28 = vld [vmem:[%s8270_s7 + $0xc8] sm:$0xff]   ;;  %v6770_v46 = vld [vmem:[%s8270_s7 + $0xc0] sm:$0xff]  }
0x15ca   :  { %v3105_v47 = vpop.f32.mrf.mxu0  ;;  %v7861_v48 = vpop.f32.mrf.mxu1 }
0x15cb   :  { %v3106_v56 = vadd.f32 %v5573_v52, %v3105_v47  ;;  %v3468_v35 = vadd.f32 %v7869_v3, %v7861_v48 }
0x15cc   :  { %v6390_v49 = vpop.f32.mrf.mxu0  ;;  %v6428_v51 = vpop.f32.mrf.mxu1 }
0x15cd   :  { %v5626_v49 = vld [vmem:[%s8273_s10 + $0x5] ss:$0 sm:$0xff] }
0x15ce   :  { %v3108_v53 = vpop.f32.mrf.mxu0  ;;  %v3470_v26 = vpop.f32.mrf.mxu1 }
0x15cf   :  { %v3109_v54 = vadd.f32 %v5573_v52, %v3108_v53  ;;  %v7872_v34 = vadd.f32 %v7869_v3, %v3470_v26  ;;  %v5641_v26 = vld [vmem:[%s8274_s11 + $0x5] ss:$0 sm:$0xff] }
0x15d0   :  { %v6391_v37 = vpop.f32.mrf.mxu0  ;;  %v6429_v55 = vpop.f32.mrf.mxu1 }
0x15d1   :  { %6404 = vmatprep.subr.msk.mxu0 %vm892_vm2, %v3109_v54 }
0x15d2   :  { %6405 = vmatpush3.xpose.msk.msra.mxu0 %vm892_vm2, %v3109_v54 }
0x15d3   :  { %6406 = vmatprep.subr.msk.mxu0 %vm892_vm2, %v3106_v56 }
0x15d6   :  { %6407 = vmatpush3.xpose.msk.msra.mxu0 %vm892_vm2, %v3106_v56 }
0x15d7   :  { %6411 = vmatprep.subr.mxu0 %v3191_v57 }
0x15d9   :  { %6409 = vmatmul.mubr.msk.f32.vlgmr.msra.gmra.mxu0 %vm892_vm2, %v3027_v58 }
0x15da   :  { %6412 = vmatpush3.msra.mxu0 %v3191_v57  ;;  %v7882_v61 = vpop.f32.mrf.mxu1 }
0x15db   :  { %6413 = vmatprep.subr.mxu0 %v3188_v59  ;;  %v3632_v37 = vadd.f32 %v5641_v26, %v7882_v61  ;;  %v5683_v61 = vld [vmem:[%s8273_s10 + $0x6] ss:$0 sm:$0xff] }
0x15dc   :  { %6414 = vmatpush3.msra.mxu0 %v3188_v59  ;;  %v6452_v63 = vpop.f32.mrf.mxu1 }
0x15dd   :  { %6430 = vmatprep.subr.bf16.mxu0 %v6920_v42 }
0x15de   :  { %v7885_v0 = vpop.f32.mrf.mxu1 }
0x15df   :  { %v3635_v54 = vadd.f32 %v5641_v26, %v7885_v0 }
0x15e0   :  { %v6453_v62 = vpop.f32.mrf.mxu1 }
0x1699   :  { %v6410_v60 = vpop.f32.mrf.mxu0 }
0x169a   :  { %v3282_v1 = vmul.f32 0.25, %v6410_v60 }
0x169b   :  { %v3272_v2 = vpop.f32.mrf.mxu0 }
0x169c   :  { %v3281_v4 = vmul.f32 0.25, %v3272_v2  ;;  %v3284_v6 = vadd.f32 %v7890_v5, %v3282_v1 }
0x169e   :  { %v3288_v7 = vsel %vm892_vm2, %v3284_v6, -inf  ;;  %v3283_v41 = vadd.f32 %v7897_v8, %v3281_v4 }
0x169f   :  { %3289 = vmax.xlane.f32.xlu1 %v3288_v7 }
0x16a0   :  { %v3285_v9 = vsel %vm892_vm2, %v3283_v41, -inf }
0x16a1   :  { %3286 = vmax.xlane.f32.xlu0 %v3285_v9 }
0x1728   :  { %v3290_v45 = vpop.xlane.xlu1 %3289 }
0x1729   :  { %v3292_v10 = vsub.f32 %v3284_v6, %v3290_v45 }
0x172a   :  { %v3287_v11 = vpop.xlane.xlu0 %3286 }
0x172b   :  { %v3295_v12 = vmul.f32 1.442695, %v3292_v10  ;;  %v3291_v13 = vsub.f32 %v3283_v41, %v3287_v11 }
0x172d   :  { %6854 = vpow2.f32 %v3295_v12  ;;  %v3293_v14 = vmul.f32 1.442695, %v3291_v13 }
0x172f   :  { %6856 = vpow2.f32 %v3293_v14 }
0x173a   :  { %v6855_v15 = vpop.eup %6854 }
0x173b   :  { %v3300_v16 = vsel %vm892_vm2, %v6855_v15, 0.0 }
0x173c   :  { %v6857_v17 = vpop.eup %6856  ;;  %3301 = vadd.xlane.f32.xlu1 %v3300_v16 }
0x173d   :  { %v3297_v19 = vsel %vm892_vm2, %v6857_v17, 0.0 }
0x173e   :  { %3298 = vadd.xlane.f32.xlu0 %v3297_v19 }
0x17c5   :  { %v3302_v20 = vpop.xlane.xlu1 %3301 }
0x17c6   :  { %6858 = vrcp.f32 %v3302_v20 }
0x17c7   :  { %v3299_v21 = vpop.xlane.xlu0 %3298 }
0x17c8   :  { %6860 = vrcp.f32 %v3299_v21 }
0x17d3   :  { %v6859_v22 = vpop.eup %6858 }
0x17d4   :  { %v3306_v29 = vmul.f32 %v6859_v22, %v6855_v15 }
0x17d5   :  { %v6861_v24 = vpop.eup %6860 }
0x17d6   :  { %v3305_v25 = vmul.f32 %v6861_v24, %v6857_v17 }
0x17d8   :  { %6415 = vmatprep.mubr.msk.f32.mxu0 %vm892_vm2, %v3305_v25 }
0x17d9   :  { %6416 = vmatmul.mubr.msk.f32.vlgmr.msra.gmra.mxu0 %vm892_vm2, %v3306_v29  ;;  %v6771_v29 = vld [vmem:[%s8275_s12 + $0x28] sm:$0xff]  }
0x17da   :  { %6431 = vmatpush3.bf16.msra.mxu0 %v6762_v27  ;;  %6438 = vmatprep.mubr.msk.bf16.mxu0 %vm6921_vm1, %v6920_v42 }
0x17db   :  { %6432 = vmatprep.subr.bf16.mxu0 %v6920_v42 }
0x17de   :  { %6433 = vmatpush3.bf16.msra.mxu0 %v6763_v30 }
0x17df   :  { %6434 = vmatprep.subr.bf16.mxu0 %v6920_v42 }
0x17e2   :  { %6435 = vmatpush3.bf16.msra.mxu0 %v6764_v31 }
0x17e3   :  { %6436 = vmatprep.subr.bf16.mxu0 %v6920_v42 }
0x17e6   :  { %6437 = vmatpush3.bf16.msra.mxu0 %v6765_v33  ;;  %v6772_v33 = vld [vmem:[%s8303_s0 + $0xd8] sm:$0xff]  }
0x17e9   :  { %6439 = vmatmul.mubr.msk.bf16.vlgmr.msra.gmra.mxu0 %vm604_vm0, %v7796_v18 }
0x17ea   :  { %6458 = vmatprep.mubr.msk.f32.mxu0 %vm892_vm2, %v3468_v35 }
0x1899   :  { %v6417_v36 = vpop.f32.mrf.mxu0 }
0x189b   :  { %v3379_v38 = vpop.f32.mrf.mxu0 }
0x189c   :  { %v3388_v40 = vpack.c.bf16 %v6417_v36, %v3379_v38  ;;  %v6774_v36 = vld [vmem:[%s8303_s0 + $0xc8] sm:$0xff]   ;;  %v6775_v38 = vld [vmem:[%s8303_s0 + $0xc0] sm:$0xff]  }
0x189e   :  { %6477 = vmatmul.mubr.msk.bf16.vlgmr.msra.gmra.mxu1 %vm892_vm2, %v3388_v40  ;;  %v6777_v40 = vld [vmem:[%s8271_s8 + $0xd0] sm:$0xff]  }
0x189f   :  { %6493 = vmatpush3.bf16.msra.mxu1 %v6767_v39  ;;  %6500 = vmatprep.mubr.msk.bf16.mxu1 %vm6921_vm1, %v6920_v42  ;;  %v6776_v39 = vld [vmem:[%s8271_s8 + $0xd8] sm:$0xff]  }
0x18a0   :  { %6494 = vmatprep.subr.bf16.mxu1 %v6920_v42 }
0x18a3   :  { %6495 = vmatpush3.bf16.msra.mxu1 %v6768_v43  ;;  %v6778_v43 = vld [vmem:[%s8271_s8 + $0xc8] sm:$0xff]  }
0x18a4   :  { %6496 = vmatprep.subr.bf16.mxu1 %v6920_v42 }
0x18a7   :  { %6497 = vmatpush3.bf16.msra.mxu1 %v6769_v28  ;;  %v6779_v28 = vld [vmem:[%s8271_s8 + $0xc0] sm:$0xff]  }
0x18a8   :  { %6498 = vmatprep.subr.bf16.mxu1 %v6920_v42 }
0x18a9   :  { %v3549_v47 = vpop.f32.mrf.mxu0 }
0x18aa   :  { %v3550_v53 = vadd.f32 %v5626_v49, %v3549_v47  ;;  %v6781_v47 = vld [vmem:[%s8303_s0 + $0xf0] sm:$0xff]  }
0x18ab   :  { %v6440_v48 = vpop.f32.mrf.mxu0  ;;  %6499 = vmatpush3.bf16.msra.mxu1 %v6770_v46  ;;  %v6780_v46 = vld [vmem:[%s8303_s0 + $0xf8] sm:$0xff]  }
0x18ac   :  { %v6782_v48 = vld [vmem:[%s8303_s0 + $0xe8] sm:$0xff]  }
0x18ad   :  { %v3552_v51 = vpop.f32.mrf.mxu0 }
0x18ae   :  { %v3553_v52 = vadd.f32 %v5626_v49, %v3552_v51  ;;  %6501 = vmatmul.mubr.msk.bf16.vlgmr.msra.gmra.mxu1 %vm604_vm0, %v7796_v18  ;;  %v6783_v49 = vld [vmem:[%s8303_s0 + $0xe0] sm:$0xff]   ;;  %v6784_v51 = vld [vmem:[%s8271_s8 + $0xf8] sm:$0xff]  }
0x18af   :  { %v6441_v3 = vpop.f32.mrf.mxu0 }
0x18b0   :  { %6454 = vmatprep.subr.msk.mxu0 %vm892_vm2, %v3553_v52  ;;  %v6786_v3 = vld [vmem:[%s8271_s8 + $0xe8] sm:$0xff]  }
0x18b1   :  { %6455 = vmatpush3.xpose.msk.msra.mxu0 %vm892_vm2, %v3553_v52  ;;  %v6785_v52 = vld [vmem:[%s8271_s8 + $0xf0] sm:$0xff]  }
0x18b2   :  { %6456 = vmatprep.subr.msk.mxu0 %vm892_vm2, %v3550_v53 }
0x18b5   :  { %6457 = vmatpush3.xpose.msk.msra.mxu0 %vm892_vm2, %v3550_v53  ;;  %v6787_v53 = vld [vmem:[%s8271_s8 + $0xe0] sm:$0xff]  }
0x18b6   :  { %6461 = vmatprep.subr.mxu0 %v3635_v54 }
0x18b8   :  { %6459 = vmatmul.mubr.msk.f32.vlgmr.msra.gmra.mxu0 %vm892_vm2, %v7872_v34 }
0x18b9   :  { %6462 = vmatpush3.msra.mxu0 %v3635_v54 }
0x18ba   :  { %6463 = vmatprep.subr.mxu0 %v3632_v37 }
0x18bb   :  { %6464 = vmatpush3.msra.mxu0 %v3632_v37 }
0x18bc   :  { %6468 = vmatprep.subr.bf16.mxu0 %v6920_v42 }
0x195e   :  { %v7966_v55 = vpop.f32.mrf.mxu1 }
0x1960   :  { %v6478_v56 = vpop.f32.mrf.mxu1 }
0x1962   :  { %v7968_v32 = vpop.f32.mrf.mxu1 }
0x1964   :  { %v6479_v57 = vpop.f32.mrf.mxu1 }
0x1965   :  { %v5668_v57 = vld [vmem:[%s8272_s9 + $0x6] ss:$0 sm:$0xff] }
0x196e   :  { %v4093_v58 = vpop.f32.mrf.mxu1 }
0x196f   :  { %v4094_v62 = vadd.f32 %v5683_v61, %v4093_v58 }
0x1970   :  { %v6502_v59 = vpop.f32.mrf.mxu1 }
0x1972   :  { %v4096_v63 = vpop.f32.mrf.mxu1 }
0x1973   :  { %v4097_v0 = vadd.f32 %v5683_v61, %v4096_v63 }
0x1974   :  { %v6503_v34 = vpop.f32.mrf.mxu1 }
0x1975   :  { %6516 = vmatprep.subr.msk.mxu1 %vm892_vm2, %v4097_v0 }
0x1976   :  { %6517 = vmatpush3.xpose.msk.msra.mxu1 %vm892_vm2, %v4097_v0 }
0x1977   :  { %6518 = vmatprep.subr.msk.mxu1 %vm892_vm2, %v4094_v62 }
0x1978   :  { %v6460_v60 = vpop.f32.mrf.mxu0 }
0x1979   :  { %v3726_v1 = vmul.f32 0.25, %v6460_v60 }
0x197a   :  { %v3716_v2 = vpop.f32.mrf.mxu0  ;;  %6519 = vmatpush3.xpose.msk.msra.mxu1 %vm892_vm2, %v4094_v62 }
0x197b   :  { %v3725_v4 = vmul.f32 0.25, %v3716_v2  ;;  %v3728_v6 = vadd.f32 %v7890_v5, %v3726_v1  ;;  %v5698_v1 = vld [vmem:[%s8274_s11 + $0x6] ss:$0 sm:$0xff] }
0x197d   :  { %v3732_v7 = vsel %vm892_vm2, %v3728_v6, -inf  ;;  %v3727_v41 = vadd.f32 %v7897_v8, %v3725_v4 }
0x197e   :  { %3733 = vmax.xlane.f32.xlu1 %v3732_v7 }
0x197f   :  { %v3729_v9 = vsel %vm892_vm2, %v3727_v41, -inf }
0x1980   :  { %3730 = vmax.xlane.f32.xlu0 %v3729_v9 }
0x1a07   :  { %v3734_v45 = vpop.xlane.xlu1 %3733 }
0x1a08   :  { %v3736_v10 = vsub.f32 %v3728_v6, %v3734_v45  ;;  %v5723_v45 = vld [vmem:[%s8272_s9 + $0x7] ss:$0 sm:$0xff] }
0x1a09   :  { %v3731_v11 = vpop.xlane.xlu0 %3730 }
0x1a0a   :  { %v3739_v12 = vmul.f32 1.442695, %v3736_v10  ;;  %v3735_v13 = vsub.f32 %v3727_v41, %v3731_v11 }
0x1a0c   :  { %6862 = vpow2.f32 %v3739_v12  ;;  %v3737_v14 = vmul.f32 1.442695, %v3735_v13 }
0x1a0e   :  { %6864 = vpow2.f32 %v3737_v14 }
0x1a19   :  { %v6863_v15 = vpop.eup %6862 }
0x1a1a   :  { %v3744_v16 = vsel %vm892_vm2, %v6863_v15, 0.0 }
0x1a1b   :  { %v6865_v17 = vpop.eup %6864  ;;  %3745 = vadd.xlane.f32.xlu1 %v3744_v16 }
0x1a1c   :  { %v3741_v19 = vsel %vm892_vm2, %v6865_v17, 0.0 }
0x1a1d   :  { %3742 = vadd.xlane.f32.xlu0 %v3741_v19 }
0x1aa4   :  { %v3746_v20 = vpop.xlane.xlu1 %3745 }
0x1aa5   :  { %6866 = vrcp.f32 %v3746_v20 }
0x1aa6   :  { %v3743_v21 = vpop.xlane.xlu0 %3742 }
0x1aa7   :  { %6868 = vrcp.f32 %v3743_v21 }
0x1ab2   :  { %v6867_v22 = vpop.eup %6866 }
0x1ab3   :  { %v3750_v27 = vmul.f32 %v6867_v22, %v6863_v15 }
0x1ab4   :  { %v6869_v24 = vpop.eup %6868 }
0x1ab5   :  { %v3749_v25 = vmul.f32 %v6869_v24, %v6865_v17 }
0x1ab7   :  { %6465 = vmatprep.mubr.msk.f32.mxu0 %vm892_vm2, %v3749_v25 }
0x1ab8   :  { %6466 = vmatmul.mubr.msk.f32.vlgmr.msra.gmra.mxu0 %vm892_vm2, %v3750_v27 }
0x1ab9   :  { %6470 = vmatprep.mubr.msk.bf16.mxu0 %vm6921_vm1, %v6920_v42  ;;  %6469 = vmatpush3.bf16.msra.mxu0 %v6771_v29 }
0x1aba   :  { %6480 = vmatprep.subr.bf16.mxu0 %v6920_v42 }
0x1b78   :  { %v6467_v30 = vpop.f32.mrf.mxu0 }
0x1b7a   :  { %v3823_v31 = vpop.f32.mrf.mxu0 }
0x1b7b   :  { %v3832_v35 = vpack.c.bf16 %v6467_v30, %v3823_v31 }
0x1b7d   :  { %6471 = vmatmul.mubr.msk.bf16.vlgmr.msra.gmra.mxu0 %vm892_vm2, %v3832_v35 }
0x1b7e   :  { %6481 = vmatpush3.bf16.msra.mxu0 %v6772_v33  ;;  %6488 = vmatprep.mubr.msk.bf16.mxu0 %vm6921_vm1, %v6920_v42 }
0x1b7f   :  { %6482 = vmatprep.subr.bf16.mxu0 %v6920_v42 }
0x1b82   :  { %6483 = vmatpush3.bf16.msra.mxu0 %v6773_v23 }
0x1b83   :  { %6484 = vmatprep.subr.bf16.mxu0 %v6920_v42 }
0x1b86   :  { %6485 = vmatpush3.bf16.msra.mxu0 %v6774_v36 }
0x1b87   :  { %6486 = vmatprep.subr.bf16.mxu0 %v6920_v42 }
0x1b8a   :  { %6487 = vmatpush3.bf16.msra.mxu0 %v6775_v38 }
0x1b8b   :  { %6504 = vmatprep.subr.bf16.mxu0 %v6920_v42 }
0x1b8d   :  { %6489 = vmatmul.mubr.msk.bf16.vlgmr.msra.gmra.mxu0 %vm604_vm0, %v7796_v18 }
0x1b8e   :  { %6505 = vmatpush3.bf16.msra.mxu0 %v6776_v39  ;;  %6512 = vmatprep.mubr.msk.bf16.mxu0 %vm6921_vm1, %v6920_v42 }
0x1b8f   :  { %6506 = vmatprep.subr.bf16.mxu0 %v6920_v42 }
0x1b92   :  { %6507 = vmatpush3.bf16.msra.mxu0 %v6777_v40 }
0x1b93   :  { %6508 = vmatprep.subr.bf16.mxu0 %v6920_v42 }
0x1b96   :  { %6509 = vmatpush3.bf16.msra.mxu0 %v6778_v43 }
0x1b97   :  { %6510 = vmatprep.subr.bf16.mxu0 %v6920_v42 }
0x1b9a   :  { %6511 = vmatpush3.bf16.msra.mxu0 %v6779_v28 }
0x1b9b   :  { %6536 = vmatprep.subr.bf16.mxu0 %v6920_v42 }
0x1b9d   :  { %6513 = vmatmul.mubr.msk.bf16.vlgmr.msra.gmra.mxu0 %vm604_vm0, %v7796_v18 }
0x1b9e   :  { %6537 = vmatpush3.bf16.msra.mxu0 %v6780_v46  ;;  %6544 = vmatprep.mubr.msk.bf16.mxu0 %vm6921_vm1, %v6920_v42 }
0x1b9f   :  { %6538 = vmatprep.subr.bf16.mxu0 %v6920_v42 }
0x1ba2   :  { %6539 = vmatpush3.bf16.msra.mxu0 %v6781_v47 }
0x1ba3   :  { %6540 = vmatprep.subr.bf16.mxu0 %v6920_v42 }
0x1ba6   :  { %6541 = vmatpush3.bf16.msra.mxu0 %v6782_v48 }
0x1ba7   :  { %6542 = vmatprep.subr.bf16.mxu0 %v6920_v42 }
0x1baa   :  { %6543 = vmatpush3.bf16.msra.mxu0 %v6783_v49 }
0x1bab   :  { %6560 = vmatprep.subr.bf16.mxu0 %v6920_v42 }
0x1bad   :  { %6545 = vmatmul.mubr.msk.bf16.vlgmr.msra.gmra.mxu0 %vm604_vm0, %v7796_v18 }
0x1bae   :  { %6561 = vmatpush3.bf16.msra.mxu0 %v6784_v51  ;;  %6568 = vmatprep.mubr.msk.bf16.mxu0 %vm6921_vm1, %v6920_v42  ;;  %v6788_v51 = vld [vmem:[%s8275_s12 + $0x30] sm:$0xff]  }
0x1baf   :  { %6562 = vmatprep.subr.bf16.mxu0 %v6920_v42 }
0x1bb2   :  { %6563 = vmatpush3.bf16.msra.mxu0 %v6785_v52 }
0x1bb3   :  { %6564 = vmatprep.subr.bf16.mxu0 %v6920_v42 }
0x1bb6   :  { %6565 = vmatpush3.bf16.msra.mxu0 %v6786_v3 }
0x1bb7   :  { %6566 = vmatprep.subr.bf16.mxu0 %v6920_v42 }
0x1bba   :  { %6567 = vmatpush3.bf16.msra.mxu0 %v6787_v53  ;;  %v6789_v53 = vld [vmem:[%s8270_s7 + $0xf8] sm:$0xff]  }
0x1bbb   :  { %6592 = vmatprep.subr.bf16.mxu0 %v6920_v42 }
0x1bbd   :  { %6569 = vmatmul.mubr.msk.bf16.vlgmr.msra.gmra.mxu0 %vm604_vm0, %v7796_v18 }
0x1bbe   :  { %6600 = vmatprep.mubr.msk.bf16.mxu0 %vm6921_vm1, %v6920_v42 }
0x1c3d   :  { %v8074_v26 = vpop.f32.mrf.mxu0 }
0x1c3f   :  { %v6472_v54 = vpop.f32.mrf.mxu0 }
0x1c41   :  { %v8076_v37 = vpop.f32.mrf.mxu0 }
0x1c43   :  { %v6473_v56 = vpop.f32.mrf.mxu0 }
0x1c44   :  { %v6790_v56 = vld [vmem:[%s8270_s7 + $0xf0] sm:$0xff]  }
0x1c4d   :  { %v4011_v58 = vpop.f32.mrf.mxu0 }
0x1c4e   :  { %v4012_v59 = vadd.f32 %v5668_v57, %v4011_v58  ;;  %v6792_v58 = vld [vmem:[%s8270_s7 + $0xe0] sm:$0xff]  }
0x1c4f   :  { %v6490_v61 = vpop.f32.mrf.mxu0 }
0x1c50   :  { %6520 = vmatprep.mubr.msk.f32.mxu1 %vm892_vm2, %v4012_v59  ;;  %v3930_v61 = vadd.f32 %v7966_v55, %v8074_v26 }
0x1c51   :  { %v4014_v63 = vpop.f32.mrf.mxu0 }
0x1c52   :  { %v4015_v0 = vadd.f32 %v5668_v57, %v4014_v63  ;;  %v6791_v57 = vld [vmem:[%s8270_s7 + $0xe8] sm:$0xff]  }
0x1c53   :  { %v6491_v34 = vpop.f32.mrf.mxu0 }
0x1c54   :  { %6521 = vmatmul.mubr.msk.f32.vlgmr.msra.gmra.mxu1 %vm892_vm2, %v4015_v0 }
0x1c5d   :  { %v4175_v62 = vpop.f32.mrf.mxu0 }
0x1c5e   :  { %v4176_v7 = vadd.f32 %v5698_v1, %v4175_v62  ;;  %v3933_v62 = vadd.f32 %v7968_v32, %v8076_v37  ;;  %v5753_v32 = vld [vmem:[%s8274_s11 + $0x7] ss:$0 sm:$0xff] }
0x1c5f   :  { %v6514_v60 = vpop.f32.mrf.mxu0 }
0x1c61   :  { %v4178_v2 = vpop.f32.mrf.mxu0 }
0x1c62   :  { %v4179_v4 = vadd.f32 %v5698_v1, %v4178_v2 }
0x1c63   :  { %v6515_v6 = vpop.f32.mrf.mxu0 }
0x1c64   :  { %6523 = vmatprep.subr.mxu1 %v4179_v4 }
0x1c65   :  { %6524 = vmatpush3.msra.mxu1 %v4179_v4 }
0x1c66   :  { %6525 = vmatprep.subr.mxu1 %v4176_v7 }
0x1c67   :  { %6526 = vmatpush3.msra.mxu1 %v4176_v7 }
0x1c68   :  { %6530 = vmatprep.subr.bf16.mxu1 %v6920_v42 }
0x1c6d   :  { %v8087_v41 = vpop.f32.mrf.mxu0 }
0x1c6e   :  { %v4508_v59 = vadd.f32 %v5723_v45, %v8087_v41 }
0x1c6f   :  { %v6546_v9 = vpop.f32.mrf.mxu0 }
0x1c71   :  { %v4510_v10 = vpop.f32.mrf.mxu0 }
0x1c72   :  { %v8092_v11 = vadd.f32 %v5723_v45, %v4510_v10 }
0x1c73   :  { %v6547_v12 = vpop.f32.mrf.mxu0 }
0x1c7d   :  { %v8094_v13 = vpop.f32.mrf.mxu0 }
0x1c7e   :  { %v4672_v9 = vadd.f32 %v5753_v32, %v8094_v13 }
0x1c7f   :  { %v6570_v14 = vpop.f32.mrf.mxu0 }
0x1c81   :  { %v8096_v15 = vpop.f32.mrf.mxu0 }
0x1c82   :  { %v4675_v37 = vadd.f32 %v5753_v32, %v8096_v15 }
0x1c83   :  { %v6571_v16 = vpop.f32.mrf.mxu0 }
0x1d14   :  { %v6522_v17 = vpop.f32.mrf.mxu1 }
0x1d15   :  { %v4270_v19 = vmul.f32 0.25, %v6522_v17 }
0x1d16   :  { %v4260_v20 = vpop.f32.mrf.mxu1 }
0x1d17   :  { %v4269_v21 = vmul.f32 0.25, %v4260_v20  ;;  %v4272_v22 = vadd.f32 %v7890_v5, %v4270_v19 }
0x1d19   :  { %v4276_v24 = vsel %vm892_vm2, %v4272_v22, -inf  ;;  %v4271_v25 = vadd.f32 %v7897_v8, %v4269_v21 }
0x1d1a   :  { %4277 = vmax.xlane.f32.xlu1 %v4276_v24 }
0x1d1b   :  { %v4273_v27 = vsel %vm892_vm2, %v4271_v25, -inf }
0x1d1c   :  { %4274 = vmax.xlane.f32.xlu0 %v4273_v27 }
0x1da3   :  { %v4278_v29 = vpop.xlane.xlu1 %4277 }
0x1da4   :  { %v4280_v30 = vsub.f32 %v4272_v22, %v4278_v29 }
0x1da5   :  { %v4275_v31 = vpop.xlane.xlu0 %4274 }
0x1da6   :  { %v4283_v33 = vmul.f32 1.442695, %v4280_v30  ;;  %v4279_v35 = vsub.f32 %v4271_v25, %v4275_v31 }
0x1da8   :  { %6870 = vpow2.f32 %v4283_v33  ;;  %v4281_v23 = vmul.f32 1.442695, %v4279_v35 }
0x1daa   :  { %6872 = vpow2.f32 %v4281_v23 }
0x1db5   :  { %v6871_v36 = vpop.eup %6870 }
0x1db6   :  { %v4288_v38 = vsel %vm892_vm2, %v6871_v36, 0.0 }
0x1db7   :  { %v6873_v39 = vpop.eup %6872  ;;  %4289 = vadd.xlane.f32.xlu1 %v4288_v38 }
0x1db8   :  { %v4285_v40 = vsel %vm892_vm2, %v6873_v39, 0.0 }
0x1db9   :  { %4286 = vadd.xlane.f32.xlu0 %v4285_v40 }
0x1e40   :  { %v4290_v43 = vpop.xlane.xlu1 %4289 }
0x1e41   :  { %6874 = vrcp.f32 %v4290_v43 }
0x1e42   :  { %v4287_v28 = vpop.xlane.xlu0 %4286 }
0x1e43   :  { %6876 = vrcp.f32 %v4287_v28 }
0x1e4e   :  { %v6875_v46 = vpop.eup %6874 }
0x1e4f   :  { %v4294_v49 = vmul.f32 %v6875_v46, %v6871_v36  ;;  %v6793_v36 = vld [vmem:[%s8275_s12 + $0x38] sm:$0xff]   ;;  %v5770_v46 = vld [vmem:[%s8276_s13 + $0x1] ss:$0 sm:$0xff] }
0x1e50   :  { %v6877_v47 = vpop.eup %6876 }
0x1e51   :  { %v4293_v48 = vmul.f32 %v6877_v47, %v6873_v39 }
0x1e53   :  { %6527 = vmatprep.mubr.msk.f32.mxu1 %vm892_vm2, %v4293_v48 }
0x1e54   :  { %6528 = vmatmul.mubr.msk.f32.vlgmr.msra.gmra.mxu1 %vm892_vm2, %v4294_v49 }
0x1e55   :  { %6532 = vmatprep.mubr.msk.bf16.mxu1 %vm6921_vm1, %v6920_v42  ;;  %6531 = vmatpush3.bf16.msra.mxu1 %v6788_v51 }
0x1e56   :  { %6548 = vmatprep.subr.bf16.mxu1 %v6920_v42 }
0x1f14   :  { %v6529_v52 = vpop.f32.mrf.mxu1 }
0x1f16   :  { %v4367_v3 = vpop.f32.mrf.mxu1 }
0x1f17   :  { %v4376_v54 = vpack.c.bf16 %v6529_v52, %v4367_v3 }
0x1f19   :  { %6533 = vmatmul.mubr.msk.bf16.vlgmr.msra.gmra.mxu1 %vm892_vm2, %v4376_v54 }
0x1f1a   :  { %6549 = vmatpush3.bf16.msra.mxu1 %v6789_v53  ;;  %6556 = vmatprep.mubr.msk.bf16.mxu1 %vm6921_vm1, %v6920_v42 }
0x1f1b   :  { %6550 = vmatprep.subr.bf16.mxu1 %v6920_v42 }
0x1f1e   :  { %6551 = vmatpush3.bf16.msra.mxu1 %v6790_v56 }
0x1f1f   :  { %6552 = vmatprep.subr.bf16.mxu1 %v6920_v42 }
0x1f22   :  { %6553 = vmatpush3.bf16.msra.mxu1 %v6791_v57 }
0x1f23   :  { %6554 = vmatprep.subr.bf16.mxu1 %v6920_v42 }
0x1f26   :  { %6555 = vmatpush3.bf16.msra.mxu1 %v6792_v58 }
0x1f29   :  { %6557 = vmatmul.mubr.msk.bf16.vlgmr.msra.gmra.mxu1 %vm604_vm0, %v7796_v18  ;;  %v5738_v18 = vld [vmem:[%s8273_s10 + $0x7] ss:$0 sm:$0xff] }
0x1f2a   :  { %6576 = vmatprep.mubr.msk.f32.mxu1 %vm892_vm2, %v4508_v59 }
0x1fd9   :  { %v4423_v63 = vpop.f32.mrf.mxu1 }
0x1fda   :  { %v8136_v0 = vadd.f32 %v4423_v63, %v3930_v61 }
0x1fdb   :  { %v6534_v34 = vpop.f32.mrf.mxu1 }
0x1fdd   :  { %v4426_v60 = vpop.f32.mrf.mxu1 }
0x1fde   :  { %v8140_v1 = vadd.f32 %v4426_v60, %v3933_v62 }
0x1fdf   :  { %v6535_v2 = vpop.f32.mrf.mxu1 }
0x1fe0   :  { %v6795_v2 = vld [vmem:[%s8279_s16 + $0x30] sm:$0xff]  }
0x1fe9   :  { %v4589_v4 = vpop.f32.mrf.mxu1 }
0x1fea   :  { %v4590_v26 = vadd.f32 %v5738_v18, %v4589_v4  ;;  %v6796_v4 = vld [vmem:[%s8279_s16 + $0x28] sm:$0xff]  }
0x1feb   :  { %v6558_v6 = vpop.f32.mrf.mxu1 }
0x1fec   :  { %v6797_v6 = vld [vmem:[%s8279_s16 + $0x20] sm:$0xff]  }
0x1fed   :  { %v4592_v7 = vpop.f32.mrf.mxu1 }
0x1fee   :  { %v4593_v41 = vadd.f32 %v5738_v18, %v4592_v7 }
0x1fef   :  { %v6559_v55 = vpop.f32.mrf.mxu1 }
0x1ff0   :  { %6572 = vmatprep.subr.msk.mxu1 %vm892_vm2, %v4593_v41 }
0x1ff1   :  { %6573 = vmatpush3.xpose.msk.msra.mxu1 %vm892_vm2, %v4593_v41 }
0x1ff2   :  { %6574 = vmatprep.subr.msk.mxu1 %vm892_vm2, %v4590_v26 }
0x1ff5   :  { %6575 = vmatpush3.xpose.msk.msra.mxu1 %vm892_vm2, %v4590_v26 }
0x1ff6   :  { %6579 = vmatprep.subr.mxu1 %v4675_v37 }
0x1ff8   :  { %6577 = vmatmul.mubr.msk.f32.vlgmr.msra.gmra.mxu1 %vm892_vm2, %v8092_v11 }
0x1ff9   :  { %6580 = vmatpush3.msra.mxu1 %v4675_v37 }
0x1ffa   :  { %6581 = vmatprep.subr.mxu1 %v4672_v9 }
0x1ffb   :  { %6582 = vmatpush3.msra.mxu1 %v4672_v9 }
0x1ffc   :  { %6586 = vmatprep.subr.bf16.mxu1 %v6920_v42 }
0x20b8   :  { %v6578_v45 = vpop.f32.mrf.mxu1 }
0x20b9   :  { %v4766_v10 = vmul.f32 0.25, %v6578_v45  ;;  %v5773_v45 = vld [vmem:[%s8277_s14 + $0x1] ss:$0 sm:$0xff] }
0x20ba   :  { %v4756_v12 = vpop.f32.mrf.mxu1 }
0x20bb   :  { %v4765_v14 = vmul.f32 0.25, %v4756_v12  ;;  %v4768_v16 = vadd.f32 %v7890_v5, %v4766_v10 }
0x20bd   :  { %v4772_v15 = vsel %vm892_vm2, %v4768_v16, -inf  ;;  %v4767_v17 = vadd.f32 %v7897_v8, %v4765_v14 }
0x20be   :  { %4773 = vmax.xlane.f32.xlu1 %v4772_v15 }
0x20bf   :  { %v4769_v13 = vsel %vm892_vm2, %v4767_v17, -inf }
0x20c0   :  { %4770 = vmax.xlane.f32.xlu0 %v4769_v13 }
0x2147   :  { %v4774_v11 = vpop.xlane.xlu1 %4773 }
0x2148   :  { %v4776_v19 = vsub.f32 %v4768_v16, %v4774_v11  ;;  %v5774_v16 = vld [vmem:[%s8278_s15 + $0x1] ss:$0 sm:$0xff] }
0x2149   :  { %v4771_v20 = vpop.xlane.xlu0 %4770 }
0x214a   :  { %v4779_v21 = vmul.f32 1.442695, %v4776_v19  ;;  %v4775_v22 = vsub.f32 %v4767_v17, %v4771_v20  ;;  %v6798_v19 = vld [vmem:[%s8281_s18 + $0x78] sm:$0xff]   ;;  %v6799_v20 = vld [vmem:[%s8281_s18 + $0x70] sm:$0xff]  }
0x214c   :  { %6878 = vpow2.f32 %v4779_v21  ;;  %v4777_v24 = vmul.f32 1.442695, %v4775_v22  ;;  %v6800_v21 = vld [vmem:[%s8281_s18 + $0x68] sm:$0xff]   ;;  %v6801_v22 = vld [vmem:[%s8281_s18 + $0x60] sm:$0xff]  }
0x214e   :  { %6880 = vpow2.f32 %v4777_v24  ;;  %v6802_v24 = vld [vmem:[%s8281_s18 + $0x58] sm:$0xff]  }
0x2159   :  { %v6879_v25 = vpop.eup %6878 }
0x215a   :  { %v4784_v27 = vsel %vm892_vm2, %v6879_v25, 0.0 }
0x215b   :  { %v6881_v5 = vpop.eup %6880  ;;  %4785 = vadd.xlane.f32.xlu1 %v4784_v27  ;;  %v6804_v27 = vld [vmem:[%s8281_s18 + $0x48] sm:$0xff]  }
0x215c   :  { %v4781_v29 = vsel %vm892_vm2, %v6881_v5, 0.0 }
0x215d   :  { %4782 = vadd.xlane.f32.xlu0 %v4781_v29  ;;  %v5784_v29 = vld [vmem:[%s8280_s17 + $0x1] ss:$0 sm:$0xff] }
0x21e4   :  { %v4786_v8 = vpop.xlane.xlu1 %4785 }
0x21e5   :  { %6882 = vrcp.f32 %v4786_v8 }
0x21e6   :  { %v4783_v30 = vpop.xlane.xlu0 %4782 }
0x21e7   :  { %6884 = vrcp.f32 %v4783_v30 }
0x21f2   :  { %v6883_v31 = vpop.eup %6882 }
0x21f3   :  { %v4790_v23 = vmul.f32 %v6883_v31, %v6879_v25  ;;  %v6803_v25 = vld [vmem:[%s8281_s18 + $0x50] sm:$0xff]  }
0x21f4   :  { %v6885_v33 = vpop.eup %6884 }
0x21f5   :  { %v4789_v35 = vmul.f32 %v6885_v33, %v6881_v5  ;;  %v6805_v5 = vld [vmem:[%s8281_s18 + $0x40] sm:$0xff]  }
0x21f7   :  { %6583 = vmatprep.mubr.msk.f32.mxu1 %vm892_vm2, %v4789_v35 }
0x21f8   :  { %6584 = vmatmul.mubr.msk.f32.vlgmr.msra.gmra.mxu1 %vm892_vm2, %v4790_v23 }
0x21f9   :  { %6588 = vmatprep.mubr.msk.bf16.mxu1 %vm6921_vm1, %v6920_v42  ;;  %6587 = vmatpush3.bf16.msra.mxu1 %v6793_v36 }
0x21fa   :  { %6604 = vmatprep.subr.bf16.mxu1 %v6920_v42 }
0x22b8   :  { %v6585_v38 = vpop.f32.mrf.mxu1 }
0x22ba   :  { %v4863_v39 = vpop.f32.mrf.mxu1 }
0x22bb   :  { %v4872_v40 = vpack.c.bf16 %v6585_v38, %v4863_v39 }
0x22bd   :  { %6589 = vmatmul.mubr.msk.bf16.vlgmr.msra.gmra.mxu1 %vm892_vm2, %v4872_v40 }
0x22be   :  { %6620 = vmatprep.mubr.msk.bf16.mxu1 %vm6921_vm1, %v6920_v42  ;;  %6605 = vmatpush3.bf16.msra.mxu1 %v6798_v19 }
0x22bf   :  { %6606 = vmatprep.subr.bf16.mxu1 %v6920_v42 }
0x22c2   :  { %6607 = vmatpush3.bf16.msra.mxu1 %v6799_v20 }
0x22c3   :  { %6608 = vmatprep.subr.bf16.mxu1 %v6920_v42 }
0x22c6   :  { %6609 = vmatpush3.bf16.msra.mxu1 %v6800_v21 }
0x22c7   :  { %6610 = vmatprep.subr.bf16.mxu1 %v6920_v42 }
0x22ca   :  { %6611 = vmatpush3.bf16.msra.mxu1 %v6801_v22 }
0x22cb   :  { %6612 = vmatprep.subr.bf16.mxu1 %v6920_v42 }
0x22ce   :  { %6613 = vmatpush3.bf16.msra.mxu1 %v6802_v24 }
0x22cf   :  { %6614 = vmatprep.subr.bf16.mxu1 %v6920_v42 }
0x22d2   :  { %6615 = vmatpush3.bf16.msra.mxu1 %v6803_v25 }
0x22d3   :  { %6616 = vmatprep.subr.bf16.mxu1 %v6920_v42 }
0x22d6   :  { %6617 = vmatpush3.bf16.msra.mxu1 %v6804_v27 }
0x22d7   :  { %6618 = vmatprep.subr.bf16.mxu1 %v6920_v42 }
0x22da   :  { %6619 = vmatpush3.bf16.msra.mxu1 %v6805_v5 }
0x237d   :  { %v4919_v43 = vpop.f32.mrf.mxu1 }
0x237e   :  { %v4926_v28 = vadd.f32 %v4919_v43, %v8136_v0 }
0x237f   :  { %v6590_v47 = vpop.f32.mrf.mxu1 }
0x2380   :  { %v4928_v48 = vadd.f32 %v4926_v28, %v7739_v44 }
0x2381   :  { %v4922_v49 = vpop.f32.mrf.mxu1 }
0x2382   :  { %v8179_v51 = vadd.f32 %v5770_v46, %v4928_v48  ;;  %v4927_v52 = vadd.f32 %v4922_v49, %v8140_v1  ;;  %v6794_v1 = vld [vmem:[%s8279_s16 + $0x38] sm:$0xff]   ;;  %s6898_s16 = scalar_lea.vmem %s5276_s23, 32 }
0x2383   :  { %v6591_v3 = vpop.f32.mrf.mxu1  ;;  %6593 = vmatpush3.bf16.msra.mxu0 %v6794_v1  ;;  %p6899_p0 = scmp.ne.s32.totalorder %s5276_s23, %s6898_s16  ;;  %p6904_p2 = scmp.lt.s32.totalorder %s6898_s16, %s6898_s16 }
0x2384   :  { %v4929_v53 = vadd.f32 %v4927_v52, %v7744_v50  ;;  %v4944_v54 = vsel %vm604_vm0, %v8179_v51, 0.0  ;;  %6594 = vmatprep.subr.bf16.mxu0 %v6920_v42 }
0x2385   :  { %4945 = vadd.xlane.f32.xlu0 %v4944_v54  ;;  %p6905_p3 = por %p6904_p2, %p6903_p1 }
0x2386   :  { %v8185_v56 = vadd.f32 %v5770_v46, %v4929_v53 }
0x2387   :  { %6595 = vmatpush3.bf16.msra.mxu0 %v6795_v2  ;;  %p6906_p4 = pnand %p6905_p3, %p6899_p0 }
0x2388   :  { %v4947_v57 = vsel %vm604_vm0, %v8185_v56, 0.0  ;;  %6596 = vmatprep.subr.bf16.mxu0 %v6920_v42 }
0x2389   :  { %4948 = vadd.xlane.f32.xlu1 %v4947_v57 }
0x238b   :  { %6597 = vmatpush3.bf16.msra.mxu0 %v6796_v4 }
0x238c   :  { %6598 = vmatprep.subr.bf16.mxu0 %v6920_v42 }
0x238f   :  { %6599 = vmatpush3.bf16.msra.mxu0 %v6797_v6 }
0x240e   :  { %v4946_v58 = vpop.xlane.xlu0 %4945 }
0x240f   :  { %v4950_v44 = vmul.f32 0.015625, %v4946_v58 }
0x2411   :  { %v4952_v59 = vsub.f32 %v8179_v51, %v4950_v44 }
0x2412   :  { %v4949_v61 = vpop.xlane.xlu1 %4948 }
0x2413   :  { %v4951_v63 = vmul.f32 0.015625, %v4949_v61  ;;  %v4954_v0 = vmul.f32 %v4952_v59, %v4952_v59 }
0x2415   :  { %v4953_v34 = vsub.f32 %v8185_v56, %v4951_v63  ;;  %v4956_v50 = vsel %vm604_vm0, %v4954_v0, 0.0  ;;  %v5807_v63 = vld [vmem:[%s8282_s19 + $0x1] ss:$0 sm:$0xff] }
0x2416   :  { %4957 = vadd.xlane.f32.xlu0 %v4956_v50 }
0x2417   :  { %v4955_v62 = vmul.f32 %v4953_v34, %v4953_v34 }
0x2419   :  { %v4959_v60 = vsel %vm604_vm0, %v4955_v62, 0.0 }
0x241a   :  { %4960 = vadd.xlane.f32.xlu1 %v4959_v60 }
0x249f   :  { %v4958_v18 = vpop.xlane.xlu0 %4957 }
0x24a0   :  { %v4962_v7 = vmul.f32 0.015625, %v4958_v18 }
0x24a2   :  { %v4964_v41 = vadd.f32 1e-06, %v4962_v7 }
0x24a3   :  { %v4961_v55 = vpop.xlane.xlu1 %4960 }
0x24a4   :  { %6886 = vrsqrt.f32 %v4964_v41  ;;  %v4963_v26 = vmul.f32 0.015625, %v4961_v55 }
0x24a6   :  { %v4965_v32 = vadd.f32 1e-06, %v4963_v26 }
0x24a8   :  { %6888 = vrsqrt.f32 %v4965_v32 }
0x24b1   :  { %v6887_v37 = vpop.eup %6886 }
0x24b2   :  { %v4968_v9 = vmul.f32 %v6887_v37, %v4952_v59 }
0x24b4   :  { %v4976_v14 = vmul.f32 %v5773_v45, %v4968_v9 }
0x24b5   :  { %v6889_v10 = vpop.eup %6888 }
0x24b6   :  { %v4969_v12 = vmul.f32 %v6889_v10, %v4953_v34  ;;  %v4984_v17 = vadd.f32 %v5774_v16, %v4976_v14  ;;  %v6922_v10 = vmov 1966171168  }
0x24b8   :  { %v4977_v15 = vmul.f32 %v5773_v45, %v4969_v12  ;;  %v5246_v12 = vlaneseq }
0x24ba   :  { %v4985_v13 = vadd.f32 %v5774_v16, %v4977_v15  ;;  %v5816_v15 = vld [vmem:[%s8283_s20] ss:$0 sm:$0xff] }
0x24bc   :  { %v4986_v11 = vpack.c.bf16 %v4985_v13, %v4984_v17  ;;  %v5817_v13 = vld [vmem:[%s8284_s21] ss:$0 sm:$0xff] }
0x24be   :  { %6601 = vmatmul.mubr.msk.bf16.vlgmr.msra.gmra.mxu0 %vm604_vm0, %v4986_v11 }
0x257e   :  { %v5065_v8 = vpop.f32.mrf.mxu0 }
0x257f   :  { %v5066_v30 = vadd.f32 %v5784_v29, %v5065_v8 }
0x2580   :  { %v6602_v31 = vpop.f32.mrf.mxu0 }
0x2581   :  { %v5072_v33 = vmul.f32 %v5066_v30, %v5066_v30 }
0x2582   :  { %v5068_v35 = vpop.f32.mrf.mxu0 }
0x2583   :  { %v5074_v23 = vmul.f32 %v5072_v33, %v5066_v30  ;;  %v5069_v36 = vadd.f32 %v5784_v29, %v5068_v35 }
0x2584   :  { %v6603_v38 = vpop.f32.mrf.mxu0 }
0x2585   :  { %v5076_v39 = vmul.f32 0.044715, %v5074_v23  ;;  %v5073_v40 = vmul.f32 %v5069_v36, %v5069_v36 }
0x2587   :  { %v5078_v42 = vadd.f32 %v5076_v39, %v5066_v30  ;;  %v5075_v43 = vmul.f32 %v5073_v40, %v5069_v36 }
0x2589   :  { %v5080_v28 = vmul.f32 0.7978846, %v5078_v42  ;;  %v5077_v46 = vmul.f32 0.044715, %v5075_v43 }
0x258b   :  { %6890 = vtanh.f32 %v5080_v28  ;;  %v5079_v47 = vadd.f32 %v5077_v46, %v5069_v36 }
0x258d   :  { %v5081_v48 = vmul.f32 0.7978846, %v5079_v47 }
0x258f   :  { %6892 = vtanh.f32 %v5081_v48 }
0x2598   :  { %v6891_v49 = vpop.eup %6890 }
0x2599   :  { %v5084_v52 = vadd.f32 1.0, %v6891_v49 }
0x259b   :  { %v5086_v53 = vmul.f32 0.5, %v5084_v52 }
0x259c   :  { %v6893_v3 = vpop.eup %6892 }
0x259d   :  { %v5085_v54 = vadd.f32 1.0, %v6893_v3  ;;  %v5088_v58 = vmul.f32 %v5086_v53, %v5066_v30 }
0x259f   :  { %v5087_v57 = vmul.f32 0.5, %v5085_v54 }
0x25a1   :  { %v5089_v44 = vmul.f32 %v5087_v57, %v5069_v36 }
0x25a3   :  { %v5090_v59 = vpack.c.bf16 %v5089_v44, %v5088_v58 }
0x25a5   :  { %6621 = vmatmul.mubr.bf16.vlgmr.msra.gmra.mxu1 %v5090_v59 }
0x2665   :  { %v5198_v61 = vpop.f32.mrf.mxu1 }
0x2666   :  { %v5199_v50 = vadd.f32 %v5807_v63, %v5198_v61 }
0x2667   :  { %v6622_v0 = vpop.f32.mrf.mxu1 }
0x2668   :  { %v5205_v2 = vadd.f32 %v5199_v50, %v8179_v51  ;;  %v5247_v51 = vshrl.u32 %v5246_v12, 7 }
0x2669   :  { %v5201_v34 = vpop.f32.mrf.mxu1 }
0x266a   :  { %v5202_v62 = vadd.f32 %v5807_v63, %v5201_v34 }
0x266b   :  { %v6623_v60 = vpop.f32.mrf.mxu1 }
0x266c   :  { %v5206_v1 = vadd.f32 %v5202_v62, %v8185_v56  ;;  %v5244_v56 = vunpack.c.l.s4 %v6922_v10 }
0x266e   :  { %v5208_v4 = vrot.slane %v5206_v1, 7  ;;  %v5245_v14 = vunpack.c.0.s8 %v5244_v56 }
0x2670   :  { %v5211_v6 = vsel %vm5210_vm3, %v5205_v2, %v5208_v4  ;;  %v5248_v19 = vsub.s32 %v5245_v14, %v5247_v51 }
0x2671   :  { %v5215_v18 = vsel %vm5214_vm4, %v5211_v6, 0.0 }
0x2672   :  { %5216 = vadd.xlane.f32.xlu0 %v5215_v18 }
0x26fb   :  { %v5217_v7 = vpop.xlane.xlu0 %5216 }
0x26fc   :  { %v5218_v41 = vmul.f32 0.015625, %v5217_v7 }
0x26fe   :  { %v5219_v55 = vsub.f32 %v5211_v6, %v5218_v41 }
0x2700   :  { %v5220_v26 = vmul.f32 %v5219_v55, %v5219_v55 }
0x2702   :  { %v5221_v32 = vsel %vm5214_vm4, %v5220_v26, 0.0 }
0x2703   :  { %5222 = vadd.xlane.f32.xlu1 %v5221_v32 }
0x278c   :  { %v5223_v37 = vpop.xlane.xlu1 %5222 }
0x278d   :  { %v5224_v9 = vmul.f32 0.015625, %v5223_v37 }
0x278f   :  { %v5225_v45 = vadd.f32 1e-06, %v5224_v9 }
0x2791   :  { %6894 = vrsqrt.f32 %v5225_v45 }
0x279e   :  { %v6895_v16 = vpop.eup %6894 }
0x279f   :  { %v5227_v17 = vmul.f32 %v6895_v16, %v5219_v55 }
0x27a1   :  { %v5234_v11 = vmul.f32 %v5816_v15, %v5227_v17 }
0x27a3   :  { %v5241_v20 = vadd.f32 %v5817_v13, %v5234_v11 }
0x27a5   :  { %v5249_v21 = vrot.slane %v5241_v20, %v5248_v19 }
0x27a7   :  { %v5250_v22 = vcombine.high %v5249_v21, %v5249_v21  ;;  %v5257_v24 = vrot.slane %v5249_v21, %v5248_v19 }
0x27a9   :  { %v5264_v25 = vrot.slane %v5250_v22, %v5248_v19  ;;  %5268 = vst.msk [vmem:[#allocation2] sm:$0x1] %vm5267_vm5, %v5257_v24 }
0x27ab   :  { %5269 = vst.msk [vmem:[#allocation2 + $0x1] sm:$0x1] %vm5267_vm5, %v5264_v25 }
0x27ac   :  { %6909 = shalt.err (!%p6906_p4)
}
0x27ad   :  { %s6924_s20 = smov 16   ;;  %s6925_s21 = smov 1  }
0x27ae   :  { %5281 = dma.vmem_to_hbm [thread:$0]  %s5276_s23, 32, %s8285_s22, [#allocation3], %s6924_s20, %s6924_s20, %s6925_s21  }
0x27af   :  { %6918 = dma.done.wait [#allocation3], 32  }
0x27b0   :  { %6919 = vsyncadd [#allocation3], 4294967264 }
0x27b1   :  { %5285 = vsyncpa [#allocation3], 1 }

</bundles_post_ra>
